<compile_context>
chip_gen: v7x
topology: tpu7x:2x2x1
jax: 0.10.0
libtpu: 0.0.40
codegen_flags: <defaults>
</compile_context>

<pallas_src>
import math

import jax
import jax.numpy as jnp
import numpy as np
from jax.experimental import pallas as pl
from jax.experimental.pallas import tpu as pltpu

APPEAR_DIM = 128
N_R = 16
SINGLE_DIM = APPEAR_DIM // N_R  # 8
D_K = 64
D_G = 64
N_OBJ = 16  # number of objects (rows of appearance_feature)


def multi_relation_kernel(af_ref, gf_ref, s0_ref,
                          wv_ref, bv_ref, wk_ref, bk_ref, wq_ref, bq_ref,
                          wgbd_ref, bgb_ref, ws_ref, bs_ref,
                          score_ref):
    n = af_ref.shape[0]
    af = af_ref[...]                                                      # (N, 128)

    # Fused projections for all 16 heads (wide MXU matmuls).
    appear_all = jnp.dot(af, wv_ref[...],
                         preferred_element_type=jnp.float32) + bv_ref[...]  # (N, 128)
    k_all = jnp.dot(af, wk_ref[...],
                    preferred_element_type=jnp.float32) + bk_ref[...]       # (N, 1024)
    q_all = jnp.dot(af, wq_ref[...],
                    preferred_element_type=jnp.float32) + bq_ref[...]       # (N, 1024)

    # Geometric gate for all heads in one MXU matmul.
    # gf_ref is (N, N*64) with [n, m*64+d]; wgbd is block-diagonal so the result
    # is laid out as [n, h*N + m] -> per-head gate is a cheap static lane slice.
    gate = jnp.dot(gf_ref[...], wgbd_ref[...],
                   preferred_element_type=jnp.float32) + bgb_ref[...]        # (N, N_R*N)
    gate = jnp.maximum(gate, 0.0)

    ws = ws_ref[...]                                                         # (128, 1)
    inv_sqrt_dk = 1.0 / math.sqrt(D_K)

    # logit = (all_relation + af) @ W_S + b_S, accumulated head-by-head.
    logit = jnp.dot(af, ws, preferred_element_type=jnp.float32) + bs_ref[...]  # (N, 1)

    for h in range(N_R):  # statically unrolled; all operands already resident
        k_h = k_all[:, h * D_K:(h + 1) * D_K]                                # (N, 64)
        q_h = q_all[:, h * D_K:(h + 1) * D_K]                                # (N, 64)
        w_a = jax.lax.dot_general(k_h, q_h, (((1,), (1,)), ((), ())),
                                  preferred_element_type=jnp.float32)        # (N, N)
        w_a = w_a * inv_sqrt_dk

        w_g = gate[:, h * n:(h + 1) * n]                                     # (N, N)

        # normalized relation weights (normalization over dim 0, as in torch)
        w_nom = w_g * jnp.exp(w_a)
        w_den = jnp.sum(w_nom, axis=0, keepdims=True)                        # (1, N)
        w = w_nom / w_den                                                    # (N, N)

        appear_h = appear_all[:, h * SINGLE_DIM:(h + 1) * SINGLE_DIM]        # (N, 8)
        f_r_h = jnp.dot(w, appear_h, preferred_element_type=jnp.float32)     # (N, 8)

        # head h's contribution to W_S(all_relation): f_R_h @ W_S[h*8:(h+1)*8]
        logit = logit + jnp.dot(f_r_h, ws[h * SINGLE_DIM:(h + 1) * SINGLE_DIM, :],
                                preferred_element_type=jnp.float32)          # (N, 1)

    score_ref[...] = s0_ref[...] * jax.nn.sigmoid(logit)


def pack_params(params, n):
    """Host-side repacking of per-head weights into fused kernel operands."""
    packed = {
        # [c, h*8+e] = wv[h, c, e]   -> appear_all columns ordered by head
        "wv_all": jnp.moveaxis(params["wv"], 0, 1).reshape(APPEAR_DIM, N_R * SINGLE_DIM),
        "bv_all": params["bv"].reshape(1, N_R * SINGLE_DIM),
        "wk_all": jnp.moveaxis(params["wk"], 0, 1).reshape(APPEAR_DIM, N_R * D_K),
        "bk_all": params["bk"].reshape(1, N_R * D_K),
        "wq_all": jnp.moveaxis(params["wq"], 0, 1).reshape(APPEAR_DIM, N_R * D_K),
        "bq_all": params["bq"].reshape(1, N_R * D_K),
        "ws_col": params["ws_full"].reshape(APPEAR_DIM, 1),
        "bs": params["bs"],
    }
    # Block-diagonal gate weight: wg_bd[m*64+d, h*n+m'] = wg[h, d] * (m == m'),
    # so that (gf.reshape(n, n*64) @ wg_bd)[nn, h*n+m'] = sum_d gf[nn, m', d]*wg[h, d].
    wg_hd = params["wg"].reshape(N_R, D_G)
    eye_n = jnp.eye(n, dtype=jnp.float32)
    packed["wg_bd"] = jnp.einsum("mp,hd->mdhp", eye_n, wg_hd).reshape(n * D_G, N_R * n)
    packed["bg_b"] = jnp.broadcast_to(params["bg"].reshape(N_R, 1),
                                      (N_R, n)).reshape(1, N_R * n)
    return packed


def multi_relation_pallas(af, gf, s0, packed):
    n = af.shape[0]
    gf2 = gf.reshape(n, n * D_G)  # [n, m*64+d]

    grid_spec = pltpu.PrefetchScalarGridSpec(
        num_scalar_prefetch=0,
        grid=(1,),  # single step: whole working set (~2.3 MB) resident in VMEM
        in_specs=[
            pl.BlockSpec((n, APPEAR_DIM), lambda i: (0, 0)),              # af
            pl.BlockSpec((n, n * D_G), lambda i: (0, 0)),                 # gf (flattened)
            pl.BlockSpec((n, 1), lambda i: (0, 0)),                       # s0
            pl.BlockSpec((APPEAR_DIM, APPEAR_DIM), lambda i: (0, 0)),     # Wv (all heads)
            pl.BlockSpec((1, APPEAR_DIM), lambda i: (0, 0)),              # bv
            pl.BlockSpec((APPEAR_DIM, N_R * D_K), lambda i: (0, 0)),      # Wk (all heads)
            pl.BlockSpec((1, N_R * D_K), lambda i: (0, 0)),               # bk
            pl.BlockSpec((APPEAR_DIM, N_R * D_K), lambda i: (0, 0)),      # Wq (all heads)
            pl.BlockSpec((1, N_R * D_K), lambda i: (0, 0)),               # bq
            pl.BlockSpec((n * D_G, N_R * n), lambda i: (0, 0)),           # Wg block-diag
            pl.BlockSpec((1, N_R * n), lambda i: (0, 0)),                 # bg broadcast
            pl.BlockSpec((APPEAR_DIM, 1), lambda i: (0, 0)),              # W_S column
            pl.BlockSpec((1, 1), lambda i: (0, 0)),                       # b_S
        ],
        out_specs=pl.BlockSpec((n, 1), lambda i: (0, 0)),
    )
    return pl.pallas_call(
        multi_relation_kernel,
        out_shape=jax.ShapeDtypeStruct((n, 1), jnp.float32),
        grid_spec=grid_spec,
        compiler_params=pltpu.CompilerParams(
            dimension_semantics=("arbitrary",)),
    )(af, gf2, s0,
      packed["wv_all"], packed["bv_all"], packed["wk_all"], packed["bk_all"],
      packed["wq_all"], packed["bq_all"], packed["wg_bd"], packed["bg_b"],
      packed["ws_col"], packed["bs"])


def multi_relation_ref(af, gf, s0, params):
    """Pure-JAX reference mirroring the (fixed) PyTorch forward."""
    n = af.shape[0]
    feats = []
    for h in range(N_R):
        appear = af @ params["wv"][h] + params["bv"][h]            # (N, 8)
        k = af @ params["wk"][h] + params["bk"][h]                 # (N, 64)
        q = af @ params["wq"][h] + params["bq"][h]                 # (N, 64)
        w_a = (k @ q.T) / math.sqrt(D_K)                           # (N, N)
        geo = gf.reshape(-1, D_G)                                  # (N*N, 64)
        w_g = jax.nn.relu(
            geo @ params["wg"][h].reshape(D_G, 1) + params["bg"][h].reshape(1, 1)
        ).reshape(n, n)
        w_nom = w_g * jnp.exp(w_a)
        w_den = jnp.sum(w_nom, axis=0, keepdims=True)
        w = w_nom / w_den
        feats.append(w @ appear)
    all_rel = jnp.concatenate(feats, axis=1)                       # (N, 128)
    second = all_rel + af
    s1 = jax.nn.sigmoid(second @ params["ws_full"].reshape(APPEAR_DIM, 1) + params["bs"])
    return s0 * s1


def init_params(key):
    """Deterministic synthetic init (PyTorch-Linear-style uniform ranges)."""
    ks = jax.random.split(key, 8)

    def u(k, shape, fan_in):
        bound = 1.0 / math.sqrt(fan_in)
        return jax.random.uniform(k, shape, jnp.float32, -bound, bound)

    params = {
        "wv": u(ks[0], (N_R, APPEAR_DIM, SINGLE_DIM), APPEAR_DIM),
        "bv": u(ks[1], (N_R, 1, SINGLE_DIM), APPEAR_DIM),
        "wk": u(ks[2], (N_R, APPEAR_DIM, D_K), APPEAR_DIM),
        "bk": u(ks[3], (N_R, 1, D_K), APPEAR_DIM),
        "wq": u(ks[4], (N_R, APPEAR_DIM, D_K), APPEAR_DIM),
        "bq": u(ks[5], (N_R, 1, D_K), APPEAR_DIM),
        "wg": u(ks[6], (N_R, 1, D_G), D_G),
        # positive geometric bias so the relu gate is never all-zero along a column
        # (avoids 0/0 in the column-normalization for this synthetic init; the
        # kernel matches the reference exactly and adds no epsilon)
        "bg": jnp.full((N_R, 1, 1), 0.5, jnp.float32),
        "ws_full": u(ks[7], (1, APPEAR_DIM), APPEAR_DIM),
        "bs": jnp.full((1, 1), 0.01, jnp.float32),
    }
    return params


if __name__ == "__main__":
    key = jax.random.PRNGKey(0)
    k_af, k_gf, k_s0, k_p = jax.random.split(key, 4)

    af = jax.random.normal(k_af, (N_OBJ, APPEAR_DIM), jnp.float32)
    gf = jax.random.normal(k_gf, (N_OBJ, N_OBJ, D_G), jnp.float32)
    s0 = jax.random.uniform(k_s0, (N_OBJ, 1), jnp.float32)
    params = init_params(k_p)
    packed = pack_params(params, N_OBJ)

    score = multi_relation_pallas(af, gf, s0, packed)
    score = jax.block_until_ready(score)

    ref = jax.block_until_ready(multi_relation_ref(af, gf, s0, params))
    np.testing.assert_allclose(np.asarray(score), np.asarray(ref), rtol=2e-3, atol=2e-3)

    print("KERNEL_OK")
</pallas_src>

<mosaic_0001>
module attributes {stable_mosaic.version = 11 : i64} {
  func.func @multi_relation_kernel(%arg0: i32, %arg1: memref<16x128xf32, #tpu.memory_space<vmem>>, %arg2: memref<16x1024xf32, #tpu.memory_space<vmem>>, %arg3: memref<16x1xf32, #tpu.memory_space<vmem>>, %arg4: memref<128x128xf32, #tpu.memory_space<vmem>>, %arg5: memref<1x128xf32, #tpu.memory_space<vmem>>, %arg6: memref<128x1024xf32, #tpu.memory_space<vmem>>, %arg7: memref<1x1024xf32, #tpu.memory_space<vmem>>, %arg8: memref<128x1024xf32, #tpu.memory_space<vmem>>, %arg9: memref<1x1024xf32, #tpu.memory_space<vmem>>, %arg10: memref<1024x256xf32, #tpu.memory_space<vmem>>, %arg11: memref<1x256xf32, #tpu.memory_space<vmem>>, %arg12: memref<128x1xf32, #tpu.memory_space<vmem>>, %arg13: memref<1x1xf32, #tpu.memory_space<vmem>>, %arg14: memref<16x1xf32, #tpu.memory_space<vmem>>) attributes {dimension_semantics = [#tpu.dimension_semantics<arbitrary>], iteration_bounds = array<i64: 1>, scalar_prefetch = 0 : i64, scratch_operands = 0 : i64, tpu.core_type = #tpu.core_type<tc>, window_params = [{pipeline_mode = #tpu.pipeline_mode<synchronous>, transform_indices = @transform_0, window_bounds = array<i64: 16, 128>}, {pipeline_mode = #tpu.pipeline_mode<synchronous>, transform_indices = @transform_1, window_bounds = array<i64: 16, 1024>}, {pipeline_mode = #tpu.pipeline_mode<synchronous>, transform_indices = @transform_2, window_bounds = array<i64: 16, 1>}, {pipeline_mode = #tpu.pipeline_mode<synchronous>, transform_indices = @transform_3, window_bounds = array<i64: 128, 128>}, {pipeline_mode = #tpu.pipeline_mode<synchronous>, transform_indices = @transform_4, window_bounds = array<i64: 1, 128>}, {pipeline_mode = #tpu.pipeline_mode<synchronous>, transform_indices = @transform_5, window_bounds = array<i64: 128, 1024>}, {pipeline_mode = #tpu.pipeline_mode<synchronous>, transform_indices = @transform_6, window_bounds = array<i64: 1, 1024>}, {pipeline_mode = #tpu.pipeline_mode<synchronous>, transform_indices = @transform_7, window_bounds = array<i64: 128, 1024>}, {pipeline_mode = #tpu.pipeline_mode<synchronous>, transform_indices = @transform_8, window_bounds = array<i64: 1, 1024>}, {pipeline_mode = #tpu.pipeline_mode<synchronous>, transform_indices = @transform_9, window_bounds = array<i64: 1024, 256>}, {pipeline_mode = #tpu.pipeline_mode<synchronous>, transform_indices = @transform_10, window_bounds = array<i64: 1, 256>}, {pipeline_mode = #tpu.pipeline_mode<synchronous>, transform_indices = @transform_11, window_bounds = array<i64: 128, 1>}, {pipeline_mode = #tpu.pipeline_mode<synchronous>, transform_indices = @transform_12, window_bounds = array<i64: 1, 1>}, {pipeline_mode = #tpu.pipeline_mode<synchronous>, transform_indices = @transform_13, window_bounds = array<i64: 16, 1>}]} {
    %c0 = arith.constant 0 : index
    %c0_0 = arith.constant 0 : index
    %0 = vector.load %arg1[%c0, %c0_0] : memref<16x128xf32, #tpu.memory_space<vmem>>, vector<16x128xf32>
    %c0_1 = arith.constant 0 : index
    %c0_2 = arith.constant 0 : index
    %1 = vector.load %arg4[%c0_1, %c0_2] : memref<128x128xf32, #tpu.memory_space<vmem>>, vector<128x128xf32>
    %cst = arith.constant dense<0.000000e+00> : vector<16x128xf32>
    %2 = tpu.matmul %0, %1, %cst {dimension_numbers = #tpu.dot_dimension_numbers<[1], [0], [0], [1], [0, 0, 1, 1], [], []>} : vector<16x128xf32>, vector<128x128xf32>, vector<16x128xf32> -> vector<16x128xf32>
    %c0_3 = arith.constant 0 : index
    %c0_4 = arith.constant 0 : index
    %3 = vector.load %arg5[%c0_3, %c0_4] : memref<1x128xf32, #tpu.memory_space<vmem>>, vector<1x128xf32>
    %4 = vector.broadcast %3 : vector<1x128xf32> to vector<16x128xf32>
    %5 = arith.addf %2, %4 : vector<16x128xf32>
    %c0_5 = arith.constant 0 : index
    %c0_6 = arith.constant 0 : index
    %6 = vector.load %arg6[%c0_5, %c0_6] : memref<128x1024xf32, #tpu.memory_space<vmem>>, vector<128x1024xf32>
    %cst_7 = arith.constant dense<0.000000e+00> : vector<16x1024xf32>
    %7 = tpu.matmul %0, %6, %cst_7 {dimension_numbers = #tpu.dot_dimension_numbers<[1], [0], [0], [1], [0, 0, 1, 1], [], []>} : vector<16x128xf32>, vector<128x1024xf32>, vector<16x1024xf32> -> vector<16x1024xf32>
    %c0_8 = arith.constant 0 : index
    %c0_9 = arith.constant 0 : index
    %8 = vector.load %arg7[%c0_8, %c0_9] : memref<1x1024xf32, #tpu.memory_space<vmem>>, vector<1x1024xf32>
    %9 = vector.broadcast %8 : vector<1x1024xf32> to vector<16x1024xf32>
    %10 = arith.addf %7, %9 : vector<16x1024xf32>
    %c0_10 = arith.constant 0 : index
    %c0_11 = arith.constant 0 : index
    %11 = vector.load %arg8[%c0_10, %c0_11] : memref<128x1024xf32, #tpu.memory_space<vmem>>, vector<128x1024xf32>
    %cst_12 = arith.constant dense<0.000000e+00> : vector<16x1024xf32>
    %12 = tpu.matmul %0, %11, %cst_12 {dimension_numbers = #tpu.dot_dimension_numbers<[1], [0], [0], [1], [0, 0, 1, 1], [], []>} : vector<16x128xf32>, vector<128x1024xf32>, vector<16x1024xf32> -> vector<16x1024xf32>
    %c0_13 = arith.constant 0 : index
    %c0_14 = arith.constant 0 : index
    %13 = vector.load %arg9[%c0_13, %c0_14] : memref<1x1024xf32, #tpu.memory_space<vmem>>, vector<1x1024xf32>
    %14 = vector.broadcast %13 : vector<1x1024xf32> to vector<16x1024xf32>
    %15 = arith.addf %12, %14 : vector<16x1024xf32>
    %c0_15 = arith.constant 0 : index
    %c0_16 = arith.constant 0 : index
    %16 = vector.load %arg2[%c0_15, %c0_16] : memref<16x1024xf32, #tpu.memory_space<vmem>>, vector<16x1024xf32>
    %c0_17 = arith.constant 0 : index
    %c0_18 = arith.constant 0 : index
    %17 = vector.load %arg10[%c0_17, %c0_18] : memref<1024x256xf32, #tpu.memory_space<vmem>>, vector<1024x256xf32>
    %cst_19 = arith.constant dense<0.000000e+00> : vector<16x256xf32>
    %18 = tpu.matmul %16, %17, %cst_19 {dimension_numbers = #tpu.dot_dimension_numbers<[1], [0], [0], [1], [0, 0, 1, 1], [], []>} : vector<16x1024xf32>, vector<1024x256xf32>, vector<16x256xf32> -> vector<16x256xf32>
    %c0_20 = arith.constant 0 : index
    %c0_21 = arith.constant 0 : index
    %19 = vector.load %arg11[%c0_20, %c0_21] : memref<1x256xf32, #tpu.memory_space<vmem>>, vector<1x256xf32>
    %20 = vector.broadcast %19 : vector<1x256xf32> to vector<16x256xf32>
    %21 = arith.addf %18, %20 : vector<16x256xf32>
    %cst_22 = arith.constant 0.000000e+00 : f32
    %22 = vector.broadcast %cst_22 : f32 to vector<16x256xf32>
    %23 = arith.maximumf %21, %22 : vector<16x256xf32>
    %c0_23 = arith.constant 0 : index
    %c0_24 = arith.constant 0 : index
    %24 = vector.load %arg12[%c0_23, %c0_24] : memref<128x1xf32, #tpu.memory_space<vmem>>, vector<128x1xf32>
    %cst_25 = arith.constant dense<0.000000e+00> : vector<16x1xf32>
    %25 = tpu.matmul %0, %24, %cst_25 {dimension_numbers = #tpu.dot_dimension_numbers<[1], [0], [0], [1], [0, 0, 1, 1], [], []>} : vector<16x128xf32>, vector<128x1xf32>, vector<16x1xf32> -> vector<16x1xf32>
    %c0_26 = arith.constant 0 : index
    %c0_27 = arith.constant 0 : index
    %26 = vector.load %arg13[%c0_26, %c0_27] : memref<1x1xf32, #tpu.memory_space<vmem>>, vector<1x1xf32>
    %27 = vector.broadcast %26 : vector<1x1xf32> to vector<16x1xf32>
    %28 = arith.addf %25, %27 : vector<16x1xf32>
    %29 = vector.extract_strided_slice %10 {offsets = [0, 0], sizes = [16, 64], strides = [1, 1]} : vector<16x1024xf32> to vector<16x64xf32>
    %30 = vector.extract_strided_slice %15 {offsets = [0, 0], sizes = [16, 64], strides = [1, 1]} : vector<16x1024xf32> to vector<16x64xf32>
    %cst_28 = arith.constant dense<0.000000e+00> : vector<16x16xf32>
    %31 = tpu.matmul %29, %30, %cst_28 {dimension_numbers = #tpu.dot_dimension_numbers<[1], [1], [0], [0], [0, 0, 1, 0], [], []>} : vector<16x64xf32>, vector<16x64xf32>, vector<16x16xf32> -> vector<16x16xf32>
    %cst_29 = arith.constant 1.250000e-01 : f32
    %32 = vector.broadcast %cst_29 : f32 to vector<16x16xf32>
    %33 = arith.mulf %31, %32 : vector<16x16xf32>
    %34 = vector.extract_strided_slice %23 {offsets = [0, 0], sizes = [16, 16], strides = [1, 1]} : vector<16x256xf32> to vector<16x16xf32>
    %35 = math.exp %33 : vector<16x16xf32>
    %36 = arith.mulf %34, %35 : vector<16x16xf32>
    %cst_30 = arith.constant dense<0.000000e+00> : vector<16xf32>
    %37 = vector.multi_reduction <add>, %36, %cst_30 [0] : vector<16x16xf32> to vector<16xf32>
    %38 = vector.shape_cast %37 : vector<16xf32> to vector<1x16xf32>
    %39 = vector.broadcast %38 : vector<1x16xf32> to vector<16x16xf32>
    %40 = arith.divf %36, %39 : vector<16x16xf32>
    %41 = vector.extract_strided_slice %5 {offsets = [0, 0], sizes = [16, 8], strides = [1, 1]} : vector<16x128xf32> to vector<16x8xf32>
    %cst_31 = arith.constant dense<0.000000e+00> : vector<16x8xf32>
    %42 = tpu.matmul %40, %41, %cst_31 {dimension_numbers = #tpu.dot_dimension_numbers<[1], [0], [0], [1], [0, 0, 1, 1], [], []>} : vector<16x16xf32>, vector<16x8xf32>, vector<16x8xf32> -> vector<16x8xf32>
    %43 = vector.extract_strided_slice %24 {offsets = [0, 0], sizes = [8, 1], strides = [1, 1]} : vector<128x1xf32> to vector<8x1xf32>
    %cst_32 = arith.constant dense<0.000000e+00> : vector<16x1xf32>
    %44 = tpu.matmul %42, %43, %cst_32 {dimension_numbers = #tpu.dot_dimension_numbers<[1], [0], [0], [1], [0, 0, 1, 1], [], []>} : vector<16x8xf32>, vector<8x1xf32>, vector<16x1xf32> -> vector<16x1xf32>
    %45 = arith.addf %28, %44 : vector<16x1xf32>
    %46 = vector.extract_strided_slice %10 {offsets = [0, 64], sizes = [16, 64], strides = [1, 1]} : vector<16x1024xf32> to vector<16x64xf32>
    %47 = vector.extract_strided_slice %15 {offsets = [0, 64], sizes = [16, 64], strides = [1, 1]} : vector<16x1024xf32> to vector<16x64xf32>
    %cst_33 = arith.constant dense<0.000000e+00> : vector<16x16xf32>
    %48 = tpu.matmul %46, %47, %cst_33 {dimension_numbers = #tpu.dot_dimension_numbers<[1], [1], [0], [0], [0, 0, 1, 0], [], []>} : vector<16x64xf32>, vector<16x64xf32>, vector<16x16xf32> -> vector<16x16xf32>
    %cst_34 = arith.constant 1.250000e-01 : f32
    %49 = vector.broadcast %cst_34 : f32 to vector<16x16xf32>
    %50 = arith.mulf %48, %49 : vector<16x16xf32>
    %51 = vector.extract_strided_slice %23 {offsets = [0, 16], sizes = [16, 16], strides = [1, 1]} : vector<16x256xf32> to vector<16x16xf32>
    %52 = math.exp %50 : vector<16x16xf32>
    %53 = arith.mulf %51, %52 : vector<16x16xf32>
    %cst_35 = arith.constant dense<0.000000e+00> : vector<16xf32>
    %54 = vector.multi_reduction <add>, %53, %cst_35 [0] : vector<16x16xf32> to vector<16xf32>
    %55 = vector.shape_cast %54 : vector<16xf32> to vector<1x16xf32>
    %56 = vector.broadcast %55 : vector<1x16xf32> to vector<16x16xf32>
    %57 = arith.divf %53, %56 : vector<16x16xf32>
    %58 = vector.extract_strided_slice %5 {offsets = [0, 8], sizes = [16, 8], strides = [1, 1]} : vector<16x128xf32> to vector<16x8xf32>
    %cst_36 = arith.constant dense<0.000000e+00> : vector<16x8xf32>
    %59 = tpu.matmul %57, %58, %cst_36 {dimension_numbers = #tpu.dot_dimension_numbers<[1], [0], [0], [1], [0, 0, 1, 1], [], []>} : vector<16x16xf32>, vector<16x8xf32>, vector<16x8xf32> -> vector<16x8xf32>
    %60 = vector.extract_strided_slice %24 {offsets = [8, 0], sizes = [8, 1], strides = [1, 1]} : vector<128x1xf32> to vector<8x1xf32>
    %cst_37 = arith.constant dense<0.000000e+00> : vector<16x1xf32>
    %61 = tpu.matmul %59, %60, %cst_37 {dimension_numbers = #tpu.dot_dimension_numbers<[1], [0], [0], [1], [0, 0, 1, 1], [], []>} : vector<16x8xf32>, vector<8x1xf32>, vector<16x1xf32> -> vector<16x1xf32>
    %62 = arith.addf %45, %61 : vector<16x1xf32>
    %63 = vector.extract_strided_slice %10 {offsets = [0, 128], sizes = [16, 64], strides = [1, 1]} : vector<16x1024xf32> to vector<16x64xf32>
    %64 = vector.extract_strided_slice %15 {offsets = [0, 128], sizes = [16, 64], strides = [1, 1]} : vector<16x1024xf32> to vector<16x64xf32>
    %cst_38 = arith.constant dense<0.000000e+00> : vector<16x16xf32>
    %65 = tpu.matmul %63, %64, %cst_38 {dimension_numbers = #tpu.dot_dimension_numbers<[1], [1], [0], [0], [0, 0, 1, 0], [], []>} : vector<16x64xf32>, vector<16x64xf32>, vector<16x16xf32> -> vector<16x16xf32>
    %cst_39 = arith.constant 1.250000e-01 : f32
    %66 = vector.broadcast %cst_39 : f32 to vector<16x16xf32>
    %67 = arith.mulf %65, %66 : vector<16x16xf32>
    %68 = vector.extract_strided_slice %23 {offsets = [0, 32], sizes = [16, 16], strides = [1, 1]} : vector<16x256xf32> to vector<16x16xf32>
    %69 = math.exp %67 : vector<16x16xf32>
    %70 = arith.mulf %68, %69 : vector<16x16xf32>
    %cst_40 = arith.constant dense<0.000000e+00> : vector<16xf32>
    %71 = vector.multi_reduction <add>, %70, %cst_40 [0] : vector<16x16xf32> to vector<16xf32>
    %72 = vector.shape_cast %71 : vector<16xf32> to vector<1x16xf32>
    %73 = vector.broadcast %72 : vector<1x16xf32> to vector<16x16xf32>
    %74 = arith.divf %70, %73 : vector<16x16xf32>
    %75 = vector.extract_strided_slice %5 {offsets = [0, 16], sizes = [16, 8], strides = [1, 1]} : vector<16x128xf32> to vector<16x8xf32>
    %cst_41 = arith.constant dense<0.000000e+00> : vector<16x8xf32>
    %76 = tpu.matmul %74, %75, %cst_41 {dimension_numbers = #tpu.dot_dimension_numbers<[1], [0], [0], [1], [0, 0, 1, 1], [], []>} : vector<16x16xf32>, vector<16x8xf32>, vector<16x8xf32> -> vector<16x8xf32>
    %77 = vector.extract_strided_slice %24 {offsets = [16, 0], sizes = [8, 1], strides = [1, 1]} : vector<128x1xf32> to vector<8x1xf32>
    %cst_42 = arith.constant dense<0.000000e+00> : vector<16x1xf32>
    %78 = tpu.matmul %76, %77, %cst_42 {dimension_numbers = #tpu.dot_dimension_numbers<[1], [0], [0], [1], [0, 0, 1, 1], [], []>} : vector<16x8xf32>, vector<8x1xf32>, vector<16x1xf32> -> vector<16x1xf32>
    %79 = arith.addf %62, %78 : vector<16x1xf32>
    %80 = vector.extract_strided_slice %10 {offsets = [0, 192], sizes = [16, 64], strides = [1, 1]} : vector<16x1024xf32> to vector<16x64xf32>
    %81 = vector.extract_strided_slice %15 {offsets = [0, 192], sizes = [16, 64], strides = [1, 1]} : vector<16x1024xf32> to vector<16x64xf32>
    %cst_43 = arith.constant dense<0.000000e+00> : vector<16x16xf32>
    %82 = tpu.matmul %80, %81, %cst_43 {dimension_numbers = #tpu.dot_dimension_numbers<[1], [1], [0], [0], [0, 0, 1, 0], [], []>} : vector<16x64xf32>, vector<16x64xf32>, vector<16x16xf32> -> vector<16x16xf32>
    %cst_44 = arith.constant 1.250000e-01 : f32
    %83 = vector.broadcast %cst_44 : f32 to vector<16x16xf32>
    %84 = arith.mulf %82, %83 : vector<16x16xf32>
    %85 = vector.extract_strided_slice %23 {offsets = [0, 48], sizes = [16, 16], strides = [1, 1]} : vector<16x256xf32> to vector<16x16xf32>
    %86 = math.exp %84 : vector<16x16xf32>
    %87 = arith.mulf %85, %86 : vector<16x16xf32>
    %cst_45 = arith.constant dense<0.000000e+00> : vector<16xf32>
    %88 = vector.multi_reduction <add>, %87, %cst_45 [0] : vector<16x16xf32> to vector<16xf32>
    %89 = vector.shape_cast %88 : vector<16xf32> to vector<1x16xf32>
    %90 = vector.broadcast %89 : vector<1x16xf32> to vector<16x16xf32>
    %91 = arith.divf %87, %90 : vector<16x16xf32>
    %92 = vector.extract_strided_slice %5 {offsets = [0, 24], sizes = [16, 8], strides = [1, 1]} : vector<16x128xf32> to vector<16x8xf32>
    %cst_46 = arith.constant dense<0.000000e+00> : vector<16x8xf32>
    %93 = tpu.matmul %91, %92, %cst_46 {dimension_numbers = #tpu.dot_dimension_numbers<[1], [0], [0], [1], [0, 0, 1, 1], [], []>} : vector<16x16xf32>, vector<16x8xf32>, vector<16x8xf32> -> vector<16x8xf32>
    %94 = vector.extract_strided_slice %24 {offsets = [24, 0], sizes = [8, 1], strides = [1, 1]} : vector<128x1xf32> to vector<8x1xf32>
    %cst_47 = arith.constant dense<0.000000e+00> : vector<16x1xf32>
    %95 = tpu.matmul %93, %94, %cst_47 {dimension_numbers = #tpu.dot_dimension_numbers<[1], [0], [0], [1], [0, 0, 1, 1], [], []>} : vector<16x8xf32>, vector<8x1xf32>, vector<16x1xf32> -> vector<16x1xf32>
    %96 = arith.addf %79, %95 : vector<16x1xf32>
    %97 = vector.extract_strided_slice %10 {offsets = [0, 256], sizes = [16, 64], strides = [1, 1]} : vector<16x1024xf32> to vector<16x64xf32>
    %98 = vector.extract_strided_slice %15 {offsets = [0, 256], sizes = [16, 64], strides = [1, 1]} : vector<16x1024xf32> to vector<16x64xf32>
    %cst_48 = arith.constant dense<0.000000e+00> : vector<16x16xf32>
    %99 = tpu.matmul %97, %98, %cst_48 {dimension_numbers = #tpu.dot_dimension_numbers<[1], [1], [0], [0], [0, 0, 1, 0], [], []>} : vector<16x64xf32>, vector<16x64xf32>, vector<16x16xf32> -> vector<16x16xf32>
    %cst_49 = arith.constant 1.250000e-01 : f32
    %100 = vector.broadcast %cst_49 : f32 to vector<16x16xf32>
    %101 = arith.mulf %99, %100 : vector<16x16xf32>
    %102 = vector.extract_strided_slice %23 {offsets = [0, 64], sizes = [16, 16], strides = [1, 1]} : vector<16x256xf32> to vector<16x16xf32>
    %103 = math.exp %101 : vector<16x16xf32>
    %104 = arith.mulf %102, %103 : vector<16x16xf32>
    %cst_50 = arith.constant dense<0.000000e+00> : vector<16xf32>
    %105 = vector.multi_reduction <add>, %104, %cst_50 [0] : vector<16x16xf32> to vector<16xf32>
    %106 = vector.shape_cast %105 : vector<16xf32> to vector<1x16xf32>
    %107 = vector.broadcast %106 : vector<1x16xf32> to vector<16x16xf32>
    %108 = arith.divf %104, %107 : vector<16x16xf32>
    %109 = vector.extract_strided_slice %5 {offsets = [0, 32], sizes = [16, 8], strides = [1, 1]} : vector<16x128xf32> to vector<16x8xf32>
    %cst_51 = arith.constant dense<0.000000e+00> : vector<16x8xf32>
    %110 = tpu.matmul %108, %109, %cst_51 {dimension_numbers = #tpu.dot_dimension_numbers<[1], [0], [0], [1], [0, 0, 1, 1], [], []>} : vector<16x16xf32>, vector<16x8xf32>, vector<16x8xf32> -> vector<16x8xf32>
    %111 = vector.extract_strided_slice %24 {offsets = [32, 0], sizes = [8, 1], strides = [1, 1]} : vector<128x1xf32> to vector<8x1xf32>
    %cst_52 = arith.constant dense<0.000000e+00> : vector<16x1xf32>
    %112 = tpu.matmul %110, %111, %cst_52 {dimension_numbers = #tpu.dot_dimension_numbers<[1], [0], [0], [1], [0, 0, 1, 1], [], []>} : vector<16x8xf32>, vector<8x1xf32>, vector<16x1xf32> -> vector<16x1xf32>
    %113 = arith.addf %96, %112 : vector<16x1xf32>
    %114 = vector.extract_strided_slice %10 {offsets = [0, 320], sizes = [16, 64], strides = [1, 1]} : vector<16x1024xf32> to vector<16x64xf32>
    %115 = vector.extract_strided_slice %15 {offsets = [0, 320], sizes = [16, 64], strides = [1, 1]} : vector<16x1024xf32> to vector<16x64xf32>
    %cst_53 = arith.constant dense<0.000000e+00> : vector<16x16xf32>
    %116 = tpu.matmul %114, %115, %cst_53 {dimension_numbers = #tpu.dot_dimension_numbers<[1], [1], [0], [0], [0, 0, 1, 0], [], []>} : vector<16x64xf32>, vector<16x64xf32>, vector<16x16xf32> -> vector<16x16xf32>
    %cst_54 = arith.constant 1.250000e-01 : f32
    %117 = vector.broadcast %cst_54 : f32 to vector<16x16xf32>
    %118 = arith.mulf %116, %117 : vector<16x16xf32>
    %119 = vector.extract_strided_slice %23 {offsets = [0, 80], sizes = [16, 16], strides = [1, 1]} : vector<16x256xf32> to vector<16x16xf32>
    %120 = math.exp %118 : vector<16x16xf32>
    %121 = arith.mulf %119, %120 : vector<16x16xf32>
    %cst_55 = arith.constant dense<0.000000e+00> : vector<16xf32>
    %122 = vector.multi_reduction <add>, %121, %cst_55 [0] : vector<16x16xf32> to vector<16xf32>
    %123 = vector.shape_cast %122 : vector<16xf32> to vector<1x16xf32>
    %124 = vector.broadcast %123 : vector<1x16xf32> to vector<16x16xf32>
    %125 = arith.divf %121, %124 : vector<16x16xf32>
    %126 = vector.extract_strided_slice %5 {offsets = [0, 40], sizes = [16, 8], strides = [1, 1]} : vector<16x128xf32> to vector<16x8xf32>
    %cst_56 = arith.constant dense<0.000000e+00> : vector<16x8xf32>
    %127 = tpu.matmul %125, %126, %cst_56 {dimension_numbers = #tpu.dot_dimension_numbers<[1], [0], [0], [1], [0, 0, 1, 1], [], []>} : vector<16x16xf32>, vector<16x8xf32>, vector<16x8xf32> -> vector<16x8xf32>
    %128 = vector.extract_strided_slice %24 {offsets = [40, 0], sizes = [8, 1], strides = [1, 1]} : vector<128x1xf32> to vector<8x1xf32>
    %cst_57 = arith.constant dense<0.000000e+00> : vector<16x1xf32>
    %129 = tpu.matmul %127, %128, %cst_57 {dimension_numbers = #tpu.dot_dimension_numbers<[1], [0], [0], [1], [0, 0, 1, 1], [], []>} : vector<16x8xf32>, vector<8x1xf32>, vector<16x1xf32> -> vector<16x1xf32>
    %130 = arith.addf %113, %129 : vector<16x1xf32>
    %131 = vector.extract_strided_slice %10 {offsets = [0, 384], sizes = [16, 64], strides = [1, 1]} : vector<16x1024xf32> to vector<16x64xf32>
    %132 = vector.extract_strided_slice %15 {offsets = [0, 384], sizes = [16, 64], strides = [1, 1]} : vector<16x1024xf32> to vector<16x64xf32>
    %cst_58 = arith.constant dense<0.000000e+00> : vector<16x16xf32>
    %133 = tpu.matmul %131, %132, %cst_58 {dimension_numbers = #tpu.dot_dimension_numbers<[1], [1], [0], [0], [0, 0, 1, 0], [], []>} : vector<16x64xf32>, vector<16x64xf32>, vector<16x16xf32> -> vector<16x16xf32>
    %cst_59 = arith.constant 1.250000e-01 : f32
    %134 = vector.broadcast %cst_59 : f32 to vector<16x16xf32>
    %135 = arith.mulf %133, %134 : vector<16x16xf32>
    %136 = vector.extract_strided_slice %23 {offsets = [0, 96], sizes = [16, 16], strides = [1, 1]} : vector<16x256xf32> to vector<16x16xf32>
    %137 = math.exp %135 : vector<16x16xf32>
    %138 = arith.mulf %136, %137 : vector<16x16xf32>
    %cst_60 = arith.constant dense<0.000000e+00> : vector<16xf32>
    %139 = vector.multi_reduction <add>, %138, %cst_60 [0] : vector<16x16xf32> to vector<16xf32>
    %140 = vector.shape_cast %139 : vector<16xf32> to vector<1x16xf32>
    %141 = vector.broadcast %140 : vector<1x16xf32> to vector<16x16xf32>
    %142 = arith.divf %138, %141 : vector<16x16xf32>
    %143 = vector.extract_strided_slice %5 {offsets = [0, 48], sizes = [16, 8], strides = [1, 1]} : vector<16x128xf32> to vector<16x8xf32>
    %cst_61 = arith.constant dense<0.000000e+00> : vector<16x8xf32>
    %144 = tpu.matmul %142, %143, %cst_61 {dimension_numbers = #tpu.dot_dimension_numbers<[1], [0], [0], [1], [0, 0, 1, 1], [], []>} : vector<16x16xf32>, vector<16x8xf32>, vector<16x8xf32> -> vector<16x8xf32>
    %145 = vector.extract_strided_slice %24 {offsets = [48, 0], sizes = [8, 1], strides = [1, 1]} : vector<128x1xf32> to vector<8x1xf32>
    %cst_62 = arith.constant dense<0.000000e+00> : vector<16x1xf32>
    %146 = tpu.matmul %144, %145, %cst_62 {dimension_numbers = #tpu.dot_dimension_numbers<[1], [0], [0], [1], [0, 0, 1, 1], [], []>} : vector<16x8xf32>, vector<8x1xf32>, vector<16x1xf32> -> vector<16x1xf32>
    %147 = arith.addf %130, %146 : vector<16x1xf32>
    %148 = vector.extract_strided_slice %10 {offsets = [0, 448], sizes = [16, 64], strides = [1, 1]} : vector<16x1024xf32> to vector<16x64xf32>
    %149 = vector.extract_strided_slice %15 {offsets = [0, 448], sizes = [16, 64], strides = [1, 1]} : vector<16x1024xf32> to vector<16x64xf32>
    %cst_63 = arith.constant dense<0.000000e+00> : vector<16x16xf32>
    %150 = tpu.matmul %148, %149, %cst_63 {dimension_numbers = #tpu.dot_dimension_numbers<[1], [1], [0], [0], [0, 0, 1, 0], [], []>} : vector<16x64xf32>, vector<16x64xf32>, vector<16x16xf32> -> vector<16x16xf32>
    %cst_64 = arith.constant 1.250000e-01 : f32
    %151 = vector.broadcast %cst_64 : f32 to vector<16x16xf32>
    %152 = arith.mulf %150, %151 : vector<16x16xf32>
    %153 = vector.extract_strided_slice %23 {offsets = [0, 112], sizes = [16, 16], strides = [1, 1]} : vector<16x256xf32> to vector<16x16xf32>
    %154 = math.exp %152 : vector<16x16xf32>
    %155 = arith.mulf %153, %154 : vector<16x16xf32>
    %cst_65 = arith.constant dense<0.000000e+00> : vector<16xf32>
    %156 = vector.multi_reduction <add>, %155, %cst_65 [0] : vector<16x16xf32> to vector<16xf32>
    %157 = vector.shape_cast %156 : vector<16xf32> to vector<1x16xf32>
    %158 = vector.broadcast %157 : vector<1x16xf32> to vector<16x16xf32>
    %159 = arith.divf %155, %158 : vector<16x16xf32>
    %160 = vector.extract_strided_slice %5 {offsets = [0, 56], sizes = [16, 8], strides = [1, 1]} : vector<16x128xf32> to vector<16x8xf32>
    %cst_66 = arith.constant dense<0.000000e+00> : vector<16x8xf32>
    %161 = tpu.matmul %159, %160, %cst_66 {dimension_numbers = #tpu.dot_dimension_numbers<[1], [0], [0], [1], [0, 0, 1, 1], [], []>} : vector<16x16xf32>, vector<16x8xf32>, vector<16x8xf32> -> vector<16x8xf32>
    %162 = vector.extract_strided_slice %24 {offsets = [56, 0], sizes = [8, 1], strides = [1, 1]} : vector<128x1xf32> to vector<8x1xf32>
    %cst_67 = arith.constant dense<0.000000e+00> : vector<16x1xf32>
    %163 = tpu.matmul %161, %162, %cst_67 {dimension_numbers = #tpu.dot_dimension_numbers<[1], [0], [0], [1], [0, 0, 1, 1], [], []>} : vector<16x8xf32>, vector<8x1xf32>, vector<16x1xf32> -> vector<16x1xf32>
    %164 = arith.addf %147, %163 : vector<16x1xf32>
    %165 = vector.extract_strided_slice %10 {offsets = [0, 512], sizes = [16, 64], strides = [1, 1]} : vector<16x1024xf32> to vector<16x64xf32>
    %166 = vector.extract_strided_slice %15 {offsets = [0, 512], sizes = [16, 64], strides = [1, 1]} : vector<16x1024xf32> to vector<16x64xf32>
    %cst_68 = arith.constant dense<0.000000e+00> : vector<16x16xf32>
    %167 = tpu.matmul %165, %166, %cst_68 {dimension_numbers = #tpu.dot_dimension_numbers<[1], [1], [0], [0], [0, 0, 1, 0], [], []>} : vector<16x64xf32>, vector<16x64xf32>, vector<16x16xf32> -> vector<16x16xf32>
    %cst_69 = arith.constant 1.250000e-01 : f32
    %168 = vector.broadcast %cst_69 : f32 to vector<16x16xf32>
    %169 = arith.mulf %167, %168 : vector<16x16xf32>
    %170 = vector.extract_strided_slice %23 {offsets = [0, 128], sizes = [16, 16], strides = [1, 1]} : vector<16x256xf32> to vector<16x16xf32>
    %171 = math.exp %169 : vector<16x16xf32>
    %172 = arith.mulf %170, %171 : vector<16x16xf32>
    %cst_70 = arith.constant dense<0.000000e+00> : vector<16xf32>
    %173 = vector.multi_reduction <add>, %172, %cst_70 [0] : vector<16x16xf32> to vector<16xf32>
    %174 = vector.shape_cast %173 : vector<16xf32> to vector<1x16xf32>
    %175 = vector.broadcast %174 : vector<1x16xf32> to vector<16x16xf32>
    %176 = arith.divf %172, %175 : vector<16x16xf32>
    %177 = vector.extract_strided_slice %5 {offsets = [0, 64], sizes = [16, 8], strides = [1, 1]} : vector<16x128xf32> to vector<16x8xf32>
    %cst_71 = arith.constant dense<0.000000e+00> : vector<16x8xf32>
    %178 = tpu.matmul %176, %177, %cst_71 {dimension_numbers = #tpu.dot_dimension_numbers<[1], [0], [0], [1], [0, 0, 1, 1], [], []>} : vector<16x16xf32>, vector<16x8xf32>, vector<16x8xf32> -> vector<16x8xf32>
    %179 = vector.extract_strided_slice %24 {offsets = [64, 0], sizes = [8, 1], strides = [1, 1]} : vector<128x1xf32> to vector<8x1xf32>
    %cst_72 = arith.constant dense<0.000000e+00> : vector<16x1xf32>
    %180 = tpu.matmul %178, %179, %cst_72 {dimension_numbers = #tpu.dot_dimension_numbers<[1], [0], [0], [1], [0, 0, 1, 1], [], []>} : vector<16x8xf32>, vector<8x1xf32>, vector<16x1xf32> -> vector<16x1xf32>
    %181 = arith.addf %164, %180 : vector<16x1xf32>
    %182 = vector.extract_strided_slice %10 {offsets = [0, 576], sizes = [16, 64], strides = [1, 1]} : vector<16x1024xf32> to vector<16x64xf32>
    %183 = vector.extract_strided_slice %15 {offsets = [0, 576], sizes = [16, 64], strides = [1, 1]} : vector<16x1024xf32> to vector<16x64xf32>
    %cst_73 = arith.constant dense<0.000000e+00> : vector<16x16xf32>
    %184 = tpu.matmul %182, %183, %cst_73 {dimension_numbers = #tpu.dot_dimension_numbers<[1], [1], [0], [0], [0, 0, 1, 0], [], []>} : vector<16x64xf32>, vector<16x64xf32>, vector<16x16xf32> -> vector<16x16xf32>
    %cst_74 = arith.constant 1.250000e-01 : f32
    %185 = vector.broadcast %cst_74 : f32 to vector<16x16xf32>
    %186 = arith.mulf %184, %185 : vector<16x16xf32>
    %187 = vector.extract_strided_slice %23 {offsets = [0, 144], sizes = [16, 16], strides = [1, 1]} : vector<16x256xf32> to vector<16x16xf32>
    %188 = math.exp %186 : vector<16x16xf32>
    %189 = arith.mulf %187, %188 : vector<16x16xf32>
    %cst_75 = arith.constant dense<0.000000e+00> : vector<16xf32>
    %190 = vector.multi_reduction <add>, %189, %cst_75 [0] : vector<16x16xf32> to vector<16xf32>
    %191 = vector.shape_cast %190 : vector<16xf32> to vector<1x16xf32>
    %192 = vector.broadcast %191 : vector<1x16xf32> to vector<16x16xf32>
    %193 = arith.divf %189, %192 : vector<16x16xf32>
    %194 = vector.extract_strided_slice %5 {offsets = [0, 72], sizes = [16, 8], strides = [1, 1]} : vector<16x128xf32> to vector<16x8xf32>
    %cst_76 = arith.constant dense<0.000000e+00> : vector<16x8xf32>
    %195 = tpu.matmul %193, %194, %cst_76 {dimension_numbers = #tpu.dot_dimension_numbers<[1], [0], [0], [1], [0, 0, 1, 1], [], []>} : vector<16x16xf32>, vector<16x8xf32>, vector<16x8xf32> -> vector<16x8xf32>
    %196 = vector.extract_strided_slice %24 {offsets = [72, 0], sizes = [8, 1], strides = [1, 1]} : vector<128x1xf32> to vector<8x1xf32>
    %cst_77 = arith.constant dense<0.000000e+00> : vector<16x1xf32>
    %197 = tpu.matmul %195, %196, %cst_77 {dimension_numbers = #tpu.dot_dimension_numbers<[1], [0], [0], [1], [0, 0, 1, 1], [], []>} : vector<16x8xf32>, vector<8x1xf32>, vector<16x1xf32> -> vector<16x1xf32>
    %198 = arith.addf %181, %197 : vector<16x1xf32>
    %199 = vector.extract_strided_slice %10 {offsets = [0, 640], sizes = [16, 64], strides = [1, 1]} : vector<16x1024xf32> to vector<16x64xf32>
    %200 = vector.extract_strided_slice %15 {offsets = [0, 640], sizes = [16, 64], strides = [1, 1]} : vector<16x1024xf32> to vector<16x64xf32>
    %cst_78 = arith.constant dense<0.000000e+00> : vector<16x16xf32>
    %201 = tpu.matmul %199, %200, %cst_78 {dimension_numbers = #tpu.dot_dimension_numbers<[1], [1], [0], [0], [0, 0, 1, 0], [], []>} : vector<16x64xf32>, vector<16x64xf32>, vector<16x16xf32> -> vector<16x16xf32>
    %cst_79 = arith.constant 1.250000e-01 : f32
    %202 = vector.broadcast %cst_79 : f32 to vector<16x16xf32>
    %203 = arith.mulf %201, %202 : vector<16x16xf32>
    %204 = vector.extract_strided_slice %23 {offsets = [0, 160], sizes = [16, 16], strides = [1, 1]} : vector<16x256xf32> to vector<16x16xf32>
    %205 = math.exp %203 : vector<16x16xf32>
    %206 = arith.mulf %204, %205 : vector<16x16xf32>
    %cst_80 = arith.constant dense<0.000000e+00> : vector<16xf32>
    %207 = vector.multi_reduction <add>, %206, %cst_80 [0] : vector<16x16xf32> to vector<16xf32>
    %208 = vector.shape_cast %207 : vector<16xf32> to vector<1x16xf32>
    %209 = vector.broadcast %208 : vector<1x16xf32> to vector<16x16xf32>
    %210 = arith.divf %206, %209 : vector<16x16xf32>
    %211 = vector.extract_strided_slice %5 {offsets = [0, 80], sizes = [16, 8], strides = [1, 1]} : vector<16x128xf32> to vector<16x8xf32>
    %cst_81 = arith.constant dense<0.000000e+00> : vector<16x8xf32>
    %212 = tpu.matmul %210, %211, %cst_81 {dimension_numbers = #tpu.dot_dimension_numbers<[1], [0], [0], [1], [0, 0, 1, 1], [], []>} : vector<16x16xf32>, vector<16x8xf32>, vector<16x8xf32> -> vector<16x8xf32>
    %213 = vector.extract_strided_slice %24 {offsets = [80, 0], sizes = [8, 1], strides = [1, 1]} : vector<128x1xf32> to vector<8x1xf32>
    %cst_82 = arith.constant dense<0.000000e+00> : vector<16x1xf32>
    %214 = tpu.matmul %212, %213, %cst_82 {dimension_numbers = #tpu.dot_dimension_numbers<[1], [0], [0], [1], [0, 0, 1, 1], [], []>} : vector<16x8xf32>, vector<8x1xf32>, vector<16x1xf32> -> vector<16x1xf32>
    %215 = arith.addf %198, %214 : vector<16x1xf32>
    %216 = vector.extract_strided_slice %10 {offsets = [0, 704], sizes = [16, 64], strides = [1, 1]} : vector<16x1024xf32> to vector<16x64xf32>
    %217 = vector.extract_strided_slice %15 {offsets = [0, 704], sizes = [16, 64], strides = [1, 1]} : vector<16x1024xf32> to vector<16x64xf32>
    %cst_83 = arith.constant dense<0.000000e+00> : vector<16x16xf32>
    %218 = tpu.matmul %216, %217, %cst_83 {dimension_numbers = #tpu.dot_dimension_numbers<[1], [1], [0], [0], [0, 0, 1, 0], [], []>} : vector<16x64xf32>, vector<16x64xf32>, vector<16x16xf32> -> vector<16x16xf32>
    %cst_84 = arith.constant 1.250000e-01 : f32
    %219 = vector.broadcast %cst_84 : f32 to vector<16x16xf32>
    %220 = arith.mulf %218, %219 : vector<16x16xf32>
    %221 = vector.extract_strided_slice %23 {offsets = [0, 176], sizes = [16, 16], strides = [1, 1]} : vector<16x256xf32> to vector<16x16xf32>
    %222 = math.exp %220 : vector<16x16xf32>
    %223 = arith.mulf %221, %222 : vector<16x16xf32>
    %cst_85 = arith.constant dense<0.000000e+00> : vector<16xf32>
    %224 = vector.multi_reduction <add>, %223, %cst_85 [0] : vector<16x16xf32> to vector<16xf32>
    %225 = vector.shape_cast %224 : vector<16xf32> to vector<1x16xf32>
    %226 = vector.broadcast %225 : vector<1x16xf32> to vector<16x16xf32>
    %227 = arith.divf %223, %226 : vector<16x16xf32>
    %228 = vector.extract_strided_slice %5 {offsets = [0, 88], sizes = [16, 8], strides = [1, 1]} : vector<16x128xf32> to vector<16x8xf32>
    %cst_86 = arith.constant dense<0.000000e+00> : vector<16x8xf32>
    %229 = tpu.matmul %227, %228, %cst_86 {dimension_numbers = #tpu.dot_dimension_numbers<[1], [0], [0], [1], [0, 0, 1, 1], [], []>} : vector<16x16xf32>, vector<16x8xf32>, vector<16x8xf32> -> vector<16x8xf32>
    %230 = vector.extract_strided_slice %24 {offsets = [88, 0], sizes = [8, 1], strides = [1, 1]} : vector<128x1xf32> to vector<8x1xf32>
    %cst_87 = arith.constant dense<0.000000e+00> : vector<16x1xf32>
    %231 = tpu.matmul %229, %230, %cst_87 {dimension_numbers = #tpu.dot_dimension_numbers<[1], [0], [0], [1], [0, 0, 1, 1], [], []>} : vector<16x8xf32>, vector<8x1xf32>, vector<16x1xf32> -> vector<16x1xf32>
    %232 = arith.addf %215, %231 : vector<16x1xf32>
    %233 = vector.extract_strided_slice %10 {offsets = [0, 768], sizes = [16, 64], strides = [1, 1]} : vector<16x1024xf32> to vector<16x64xf32>
    %234 = vector.extract_strided_slice %15 {offsets = [0, 768], sizes = [16, 64], strides = [1, 1]} : vector<16x1024xf32> to vector<16x64xf32>
    %cst_88 = arith.constant dense<0.000000e+00> : vector<16x16xf32>
    %235 = tpu.matmul %233, %234, %cst_88 {dimension_numbers = #tpu.dot_dimension_numbers<[1], [1], [0], [0], [0, 0, 1, 0], [], []>} : vector<16x64xf32>, vector<16x64xf32>, vector<16x16xf32> -> vector<16x16xf32>
    %cst_89 = arith.constant 1.250000e-01 : f32
    %236 = vector.broadcast %cst_89 : f32 to vector<16x16xf32>
    %237 = arith.mulf %235, %236 : vector<16x16xf32>
    %238 = vector.extract_strided_slice %23 {offsets = [0, 192], sizes = [16, 16], strides = [1, 1]} : vector<16x256xf32> to vector<16x16xf32>
    %239 = math.exp %237 : vector<16x16xf32>
    %240 = arith.mulf %238, %239 : vector<16x16xf32>
    %cst_90 = arith.constant dense<0.000000e+00> : vector<16xf32>
    %241 = vector.multi_reduction <add>, %240, %cst_90 [0] : vector<16x16xf32> to vector<16xf32>
    %242 = vector.shape_cast %241 : vector<16xf32> to vector<1x16xf32>
    %243 = vector.broadcast %242 : vector<1x16xf32> to vector<16x16xf32>
    %244 = arith.divf %240, %243 : vector<16x16xf32>
    %245 = vector.extract_strided_slice %5 {offsets = [0, 96], sizes = [16, 8], strides = [1, 1]} : vector<16x128xf32> to vector<16x8xf32>
    %cst_91 = arith.constant dense<0.000000e+00> : vector<16x8xf32>
    %246 = tpu.matmul %244, %245, %cst_91 {dimension_numbers = #tpu.dot_dimension_numbers<[1], [0], [0], [1], [0, 0, 1, 1], [], []>} : vector<16x16xf32>, vector<16x8xf32>, vector<16x8xf32> -> vector<16x8xf32>
    %247 = vector.extract_strided_slice %24 {offsets = [96, 0], sizes = [8, 1], strides = [1, 1]} : vector<128x1xf32> to vector<8x1xf32>
    %cst_92 = arith.constant dense<0.000000e+00> : vector<16x1xf32>
    %248 = tpu.matmul %246, %247, %cst_92 {dimension_numbers = #tpu.dot_dimension_numbers<[1], [0], [0], [1], [0, 0, 1, 1], [], []>} : vector<16x8xf32>, vector<8x1xf32>, vector<16x1xf32> -> vector<16x1xf32>
    %249 = arith.addf %232, %248 : vector<16x1xf32>
    %250 = vector.extract_strided_slice %10 {offsets = [0, 832], sizes = [16, 64], strides = [1, 1]} : vector<16x1024xf32> to vector<16x64xf32>
    %251 = vector.extract_strided_slice %15 {offsets = [0, 832], sizes = [16, 64], strides = [1, 1]} : vector<16x1024xf32> to vector<16x64xf32>
    %cst_93 = arith.constant dense<0.000000e+00> : vector<16x16xf32>
    %252 = tpu.matmul %250, %251, %cst_93 {dimension_numbers = #tpu.dot_dimension_numbers<[1], [1], [0], [0], [0, 0, 1, 0], [], []>} : vector<16x64xf32>, vector<16x64xf32>, vector<16x16xf32> -> vector<16x16xf32>
    %cst_94 = arith.constant 1.250000e-01 : f32
    %253 = vector.broadcast %cst_94 : f32 to vector<16x16xf32>
    %254 = arith.mulf %252, %253 : vector<16x16xf32>
    %255 = vector.extract_strided_slice %23 {offsets = [0, 208], sizes = [16, 16], strides = [1, 1]} : vector<16x256xf32> to vector<16x16xf32>
    %256 = math.exp %254 : vector<16x16xf32>
    %257 = arith.mulf %255, %256 : vector<16x16xf32>
    %cst_95 = arith.constant dense<0.000000e+00> : vector<16xf32>
    %258 = vector.multi_reduction <add>, %257, %cst_95 [0] : vector<16x16xf32> to vector<16xf32>
    %259 = vector.shape_cast %258 : vector<16xf32> to vector<1x16xf32>
    %260 = vector.broadcast %259 : vector<1x16xf32> to vector<16x16xf32>
    %261 = arith.divf %257, %260 : vector<16x16xf32>
    %262 = vector.extract_strided_slice %5 {offsets = [0, 104], sizes = [16, 8], strides = [1, 1]} : vector<16x128xf32> to vector<16x8xf32>
    %cst_96 = arith.constant dense<0.000000e+00> : vector<16x8xf32>
    %263 = tpu.matmul %261, %262, %cst_96 {dimension_numbers = #tpu.dot_dimension_numbers<[1], [0], [0], [1], [0, 0, 1, 1], [], []>} : vector<16x16xf32>, vector<16x8xf32>, vector<16x8xf32> -> vector<16x8xf32>
    %264 = vector.extract_strided_slice %24 {offsets = [104, 0], sizes = [8, 1], strides = [1, 1]} : vector<128x1xf32> to vector<8x1xf32>
    %cst_97 = arith.constant dense<0.000000e+00> : vector<16x1xf32>
    %265 = tpu.matmul %263, %264, %cst_97 {dimension_numbers = #tpu.dot_dimension_numbers<[1], [0], [0], [1], [0, 0, 1, 1], [], []>} : vector<16x8xf32>, vector<8x1xf32>, vector<16x1xf32> -> vector<16x1xf32>
    %266 = arith.addf %249, %265 : vector<16x1xf32>
    %267 = vector.extract_strided_slice %10 {offsets = [0, 896], sizes = [16, 64], strides = [1, 1]} : vector<16x1024xf32> to vector<16x64xf32>
    %268 = vector.extract_strided_slice %15 {offsets = [0, 896], sizes = [16, 64], strides = [1, 1]} : vector<16x1024xf32> to vector<16x64xf32>
    %cst_98 = arith.constant dense<0.000000e+00> : vector<16x16xf32>
    %269 = tpu.matmul %267, %268, %cst_98 {dimension_numbers = #tpu.dot_dimension_numbers<[1], [1], [0], [0], [0, 0, 1, 0], [], []>} : vector<16x64xf32>, vector<16x64xf32>, vector<16x16xf32> -> vector<16x16xf32>
    %cst_99 = arith.constant 1.250000e-01 : f32
    %270 = vector.broadcast %cst_99 : f32 to vector<16x16xf32>
    %271 = arith.mulf %269, %270 : vector<16x16xf32>
    %272 = vector.extract_strided_slice %23 {offsets = [0, 224], sizes = [16, 16], strides = [1, 1]} : vector<16x256xf32> to vector<16x16xf32>
    %273 = math.exp %271 : vector<16x16xf32>
    %274 = arith.mulf %272, %273 : vector<16x16xf32>
    %cst_100 = arith.constant dense<0.000000e+00> : vector<16xf32>
    %275 = vector.multi_reduction <add>, %274, %cst_100 [0] : vector<16x16xf32> to vector<16xf32>
    %276 = vector.shape_cast %275 : vector<16xf32> to vector<1x16xf32>
    %277 = vector.broadcast %276 : vector<1x16xf32> to vector<16x16xf32>
    %278 = arith.divf %274, %277 : vector<16x16xf32>
    %279 = vector.extract_strided_slice %5 {offsets = [0, 112], sizes = [16, 8], strides = [1, 1]} : vector<16x128xf32> to vector<16x8xf32>
    %cst_101 = arith.constant dense<0.000000e+00> : vector<16x8xf32>
    %280 = tpu.matmul %278, %279, %cst_101 {dimension_numbers = #tpu.dot_dimension_numbers<[1], [0], [0], [1], [0, 0, 1, 1], [], []>} : vector<16x16xf32>, vector<16x8xf32>, vector<16x8xf32> -> vector<16x8xf32>
    %281 = vector.extract_strided_slice %24 {offsets = [112, 0], sizes = [8, 1], strides = [1, 1]} : vector<128x1xf32> to vector<8x1xf32>
    %cst_102 = arith.constant dense<0.000000e+00> : vector<16x1xf32>
    %282 = tpu.matmul %280, %281, %cst_102 {dimension_numbers = #tpu.dot_dimension_numbers<[1], [0], [0], [1], [0, 0, 1, 1], [], []>} : vector<16x8xf32>, vector<8x1xf32>, vector<16x1xf32> -> vector<16x1xf32>
    %283 = arith.addf %266, %282 : vector<16x1xf32>
    %284 = vector.extract_strided_slice %10 {offsets = [0, 960], sizes = [16, 64], strides = [1, 1]} : vector<16x1024xf32> to vector<16x64xf32>
    %285 = vector.extract_strided_slice %15 {offsets = [0, 960], sizes = [16, 64], strides = [1, 1]} : vector<16x1024xf32> to vector<16x64xf32>
    %cst_103 = arith.constant dense<0.000000e+00> : vector<16x16xf32>
    %286 = tpu.matmul %284, %285, %cst_103 {dimension_numbers = #tpu.dot_dimension_numbers<[1], [1], [0], [0], [0, 0, 1, 0], [], []>} : vector<16x64xf32>, vector<16x64xf32>, vector<16x16xf32> -> vector<16x16xf32>
    %cst_104 = arith.constant 1.250000e-01 : f32
    %287 = vector.broadcast %cst_104 : f32 to vector<16x16xf32>
    %288 = arith.mulf %286, %287 : vector<16x16xf32>
    %289 = vector.extract_strided_slice %23 {offsets = [0, 240], sizes = [16, 16], strides = [1, 1]} : vector<16x256xf32> to vector<16x16xf32>
    %290 = math.exp %288 : vector<16x16xf32>
    %291 = arith.mulf %289, %290 : vector<16x16xf32>
    %cst_105 = arith.constant dense<0.000000e+00> : vector<16xf32>
    %292 = vector.multi_reduction <add>, %291, %cst_105 [0] : vector<16x16xf32> to vector<16xf32>
    %293 = vector.shape_cast %292 : vector<16xf32> to vector<1x16xf32>
    %294 = vector.broadcast %293 : vector<1x16xf32> to vector<16x16xf32>
    %295 = arith.divf %291, %294 : vector<16x16xf32>
    %296 = vector.extract_strided_slice %5 {offsets = [0, 120], sizes = [16, 8], strides = [1, 1]} : vector<16x128xf32> to vector<16x8xf32>
    %cst_106 = arith.constant dense<0.000000e+00> : vector<16x8xf32>
    %297 = tpu.matmul %295, %296, %cst_106 {dimension_numbers = #tpu.dot_dimension_numbers<[1], [0], [0], [1], [0, 0, 1, 1], [], []>} : vector<16x16xf32>, vector<16x8xf32>, vector<16x8xf32> -> vector<16x8xf32>
    %298 = vector.extract_strided_slice %24 {offsets = [120, 0], sizes = [8, 1], strides = [1, 1]} : vector<128x1xf32> to vector<8x1xf32>
    %cst_107 = arith.constant dense<0.000000e+00> : vector<16x1xf32>
    %299 = tpu.matmul %297, %298, %cst_107 {dimension_numbers = #tpu.dot_dimension_numbers<[1], [0], [0], [1], [0, 0, 1, 1], [], []>} : vector<16x8xf32>, vector<8x1xf32>, vector<16x1xf32> -> vector<16x1xf32>
    %300 = arith.addf %283, %299 : vector<16x1xf32>
    %c0_108 = arith.constant 0 : index
    %c0_109 = arith.constant 0 : index
    %301 = vector.load %arg3[%c0_108, %c0_109] : memref<16x1xf32, #tpu.memory_space<vmem>>, vector<16x1xf32>
    %302 = arith.negf %300 : vector<16x1xf32>
    %303 = math.exp %302 : vector<16x1xf32>
    %cst_110 = arith.constant 1.000000e+00 : f32
    %304 = vector.broadcast %cst_110 : f32 to vector<16x1xf32>
    %305 = arith.addf %304, %303 : vector<16x1xf32>
    %306 = arith.divf %304, %305 : vector<16x1xf32>
    %307 = arith.mulf %301, %306 : vector<16x1xf32>
    %c0_111 = arith.constant 0 : index
    %c0_112 = arith.constant 0 : index
    %308 = vector.load %arg14[%c0_111, %c0_112] : memref<16x1xf32, #tpu.memory_space<vmem>>, vector<16x1xf32>
    tpu.vector_store %arg14[%c0_111, %c0_112], %307 {strides = array<i32>} : memref<16x1xf32, #tpu.memory_space<vmem>>, vector<16x1xf32>,
    return
  }
  func.func @transform_0(%arg0: i32) -> (i32, i32) {
    %c0_i32 = arith.constant 0 : i32
    %c0_i32_0 = arith.constant 0 : i32
    %c0_i32_1 = arith.constant 0 : i32
    return %c0_i32, %c0_i32_0 : i32, i32
  }
  func.func @transform_1(%arg0: i32) -> (i32, i32) {
    %c0_i32 = arith.constant 0 : i32
    %c0_i32_0 = arith.constant 0 : i32
    %c0_i32_1 = arith.constant 0 : i32
    return %c0_i32, %c0_i32_0 : i32, i32
  }
  func.func @transform_2(%arg0: i32) -> (i32, i32) {
    %c0_i32 = arith.constant 0 : i32
    %c0_i32_0 = arith.constant 0 : i32
    %c0_i32_1 = arith.constant 0 : i32
    return %c0_i32, %c0_i32_0 : i32, i32
  }
  func.func @transform_3(%arg0: i32) -> (i32, i32) {
    %c0_i32 = arith.constant 0 : i32
    %c0_i32_0 = arith.constant 0 : i32
    %c0_i32_1 = arith.constant 0 : i32
    return %c0_i32, %c0_i32_0 : i32, i32
  }
  func.func @transform_4(%arg0: i32) -> (i32, i32) {
    %c0_i32 = arith.constant 0 : i32
    %c0_i32_0 = arith.constant 0 : i32
    %c0_i32_1 = arith.constant 0 : i32
    return %c0_i32, %c0_i32_0 : i32, i32
  }
  func.func @transform_5(%arg0: i32) -> (i32, i32) {
    %c0_i32 = arith.constant 0 : i32
    %c0_i32_0 = arith.constant 0 : i32
    %c0_i32_1 = arith.constant 0 : i32
    return %c0_i32, %c0_i32_0 : i32, i32
  }
  func.func @transform_6(%arg0: i32) -> (i32, i32) {
    %c0_i32 = arith.constant 0 : i32
    %c0_i32_0 = arith.constant 0 : i32
    %c0_i32_1 = arith.constant 0 : i32
    return %c0_i32, %c0_i32_0 : i32, i32
  }
  func.func @transform_7(%arg0: i32) -> (i32, i32) {
    %c0_i32 = arith.constant 0 : i32
    %c0_i32_0 = arith.constant 0 : i32
    %c0_i32_1 = arith.constant 0 : i32
    return %c0_i32, %c0_i32_0 : i32, i32
  }
  func.func @transform_8(%arg0: i32) -> (i32, i32) {
    %c0_i32 = arith.constant 0 : i32
    %c0_i32_0 = arith.constant 0 : i32
    %c0_i32_1 = arith.constant 0 : i32
    return %c0_i32, %c0_i32_0 : i32, i32
  }
  func.func @transform_9(%arg0: i32) -> (i32, i32) {
    %c0_i32 = arith.constant 0 : i32
    %c0_i32_0 = arith.constant 0 : i32
    %c0_i32_1 = arith.constant 0 : i32
    return %c0_i32, %c0_i32_0 : i32, i32
  }
  func.func @transform_10(%arg0: i32) -> (i32, i32) {
    %c0_i32 = arith.constant 0 : i32
    %c0_i32_0 = arith.constant 0 : i32
    %c0_i32_1 = arith.constant 0 : i32
    return %c0_i32, %c0_i32_0 : i32, i32
  }
  func.func @transform_11(%arg0: i32) -> (i32, i32) {
    %c0_i32 = arith.constant 0 : i32
    %c0_i32_0 = arith.constant 0 : i32
    %c0_i32_1 = arith.constant 0 : i32
    return %c0_i32, %c0_i32_0 : i32, i32
  }
  func.func @transform_12(%arg0: i32) -> (i32, i32) {
    %c0_i32 = arith.constant 0 : i32
    %c0_i32_0 = arith.constant 0 : i32
    %c0_i32_1 = arith.constant 0 : i32
    return %c0_i32, %c0_i32_0 : i32, i32
  }
  func.func @transform_13(%arg0: i32) -> (i32, i32) {
    %c0_i32 = arith.constant 0 : i32
    %c0_i32_0 = arith.constant 0 : i32
    %c0_i32_1 = arith.constant 0 : i32
    return %c0_i32, %c0_i32_0 : i32, i32
  }
}

</mosaic_0001>

<bundles_post_ra>
// kernel: tpu_custom_call.1
= control target key start
LH: loop header
LB: loop body
LE: loop exit
PB: predicated region body
PF: predicated region fallthrough
CT: control target
= control target key end

     0   :  { %s9357_s0 = inlined_call_operand.vmem [shape: f32[16,128], index: 0, kind: input, shape index: {}]   ;;  %s9358_s1 = inlined_call_operand.vmem [shape: f32[16,1024], index: 1, kind: input, shape index: {}]   ;;  %s9359_s2 = inlined_call_operand.vmem [shape: f32[16,1], index: 2, kind: input, shape index: {}]   ;;  %s9360_s3 = inlined_call_operand.hbm [shape: f32[128,128], index: 3, kind: input, shape index: {}]   ;;  %s9361_s4 = inlined_call_operand.vmem [shape: f32[1,128], index: 4, kind: input, shape index: {}]   ;;  %s9362_s5 = inlined_call_operand.hbm [shape: f32[128,1024], index: 5, kind: input, shape index: {}]   ;;  %s9363_s6 = inlined_call_operand.vmem [shape: f32[1,1024], index: 6, kind: input, shape index: {}]   ;;  %s9364_s7 = inlined_call_operand.hbm [shape: f32[128,1024], index: 7, kind: input, shape index: {}]   ;;  %s9365_s8 = inlined_call_operand.vmem [shape: f32[1,1024], index: 8, kind: input, shape index: {}]   ;;  %s9366_s9 = inlined_call_operand.hbm [shape: f32[1024,256], index: 9, kind: input, shape index: {}]   ;;  %s9367_s10 = inlined_call_operand.vmem [shape: f32[1,256], index: 10, kind: input, shape index: {}]   ;;  %s9368_s11 = inlined_call_operand.vmem [shape: f32[128,1], index: 11, kind: input, shape index: {}]   ;;  %s9369_s12 = inlined_call_operand.<no memory space> [shape: f32[1,1], index: 12, kind: input, shape index: {}]   ;;  %s9370_s13 = inlined_call_operand.vmem [shape: f32[16,1], index: 13, kind: output, shape index: {}]  }
   0x1   :  { %v18_v0 = vstv %s9369_s12 }
   0x2   :  { %19 = vst [vmem:[#allocation2] sm:$0x1] %v18_v0 }
   0x3   :  { %20 = vsyncpa [#allocation4], 0 }
   0x4   :  { %21 = vsyncpa [#allocation6], 0 }
   0x5   :  { %22 = vsyncpa [#allocation9], 0  ;;  %s8375_s27 = smov [#allocation5]   ;;  %s8281_s14 = scalar_lea.hbm %s9362_s5, 16384 }
   0x6   :  { %s48_s28 = sshll.u32 %s8375_s27, 4  ;;  %p8282_p0 = scmp.ne.s32.totalorder %s9362_s5, %s8281_s14  ;;  %s49_s28 = int_to_ptr.vmem [resolvable:$true] %s48_s28 }
   0x7   :  { %p8285_p1 = scmp.lt.u32.totalorder %s8281_s14, %s9362_s5 }
   0x9   :  { %p8287_p2 = pnand %p8285_p1, %p8282_p0 }
   0xb   :  { %8290 = shalt.err (!%p8287_p2)
}
   0xc   :  { %s8291_s12 = scalar_lea.vmem %s49_s28, 16384  ;;  %p8296_p4 = scmp.lt.s32.totalorder %s49_s28, %s49_s28 }
   0xd   :  { %p8292_p3 = scmp.ne.s32.totalorder %s49_s28, %s8291_s12  ;;  %p8297_p5 = scmp.lt.s32.totalorder %s8291_s12, %s8291_s12 }
   0xf   :  { %p8298_p6 = por %p8297_p5, %p8296_p4 }
  0x11   :  { %p8299_p7 = pnand %p8298_p6, %p8292_p3 }
  0x13   :  { %8302 = shalt.err (!%p8299_p7)
}
  0x14   :  { %s8376_s19 = smov 1024   ;;  %s8377_s20 = smov 64  }
  0x15   :  { %54 = dma.hbm_to_vmem [thread:$0]  %s9362_s5, 16384, %s49_s28, [#allocation6], %s8376_s19, %s8376_s19, %s8377_s20  }
  0x16   :  { %s8378_s23 = smov [#allocation3]   ;;  %s8303_s27 = scalar_lea.hbm %s9360_s3, 2048 }
  0x17   :  { %s34_s24 = sshll.u32 %s8378_s23, 4  ;;  %p8304_p8 = scmp.ne.s32.totalorder %s9360_s3, %s8303_s27  ;;  %s35_s24 = int_to_ptr.vmem [resolvable:$true] %s34_s24 }
  0x18   :  { %p8307_p9 = scmp.lt.u32.totalorder %s8303_s27, %s9360_s3 }
  0x1a   :  { %p8309_p10 = pnand %p8307_p9, %p8304_p8 }
  0x1c   :  { %8312 = shalt.err (!%p8309_p10)
}
  0x1d   :  { %s8313_s16 = scalar_lea.vmem %s35_s24, 2048  ;;  %p8318_p12 = scmp.lt.s32.totalorder %s35_s24, %s35_s24 }
  0x1e   :  { %p8314_p11 = scmp.ne.s32.totalorder %s35_s24, %s8313_s16  ;;  %p8319_p13 = scmp.lt.s32.totalorder %s8313_s16, %s8313_s16 }
  0x20   :  { %p8320_p0 = por %p8319_p13, %p8318_p12 }
  0x22   :  { %p8321_p1 = pnand %p8320_p0, %p8314_p11 }
  0x24   :  { %8324 = shalt.err (!%p8321_p1)
}
  0x25   :  { %s8379_s5 = smov 128   ;;  %s8380_s28 = smov 8  }
  0x26   :  { %40 = dma.hbm_to_vmem [thread:$0]  %s9360_s3, 2048, %s35_s24, [#allocation4], %s8379_s5, %s8379_s5, %s8380_s28  }
  0x27   :  { %s8381_s12 = smov [#allocation7]   ;;  %s8382_s22 = smov [#allocation8]  }
  0x28   :  { %s62_s21 = sshll.u32 %s8381_s12, 4  ;;  %s76_s23 = sshll.u32 %s8382_s22, 4  ;;  %s63_s21 = int_to_ptr.vmem [resolvable:$true] %s62_s21  ;;  %s8499_s23 = int_to_ptr.vmem [resolvable:$true] %s76_s23 }
  0x29   :  { %s8325_s27 = scalar_lea.hbm %s9364_s7, 16384 }
  0x2a   :  { %p8326_p2 = scmp.ne.s32.totalorder %s9364_s7, %s8325_s27  ;;  %p8329_p3 = scmp.lt.u32.totalorder %s8325_s27, %s9364_s7 }
  0x2c   :  { %p8331_p4 = pnand %p8329_p3, %p8326_p2 }
  0x2e   :  { %8334 = shalt.err (!%p8331_p4)
}
  0x2f   :  { %s8335_s3 = scalar_lea.vmem %s63_s21, 16384  ;;  %p8340_p6 = scmp.lt.s32.totalorder %s63_s21, %s63_s21 }
  0x30   :  { %p8336_p5 = scmp.ne.s32.totalorder %s63_s21, %s8335_s3  ;;  %p8341_p7 = scmp.lt.s32.totalorder %s8335_s3, %s8335_s3 }
  0x32   :  { %p8342_p8 = por %p8341_p7, %p8340_p6 }
  0x34   :  { %p8343_p9 = pnand %p8342_p8, %p8336_p5 }
  0x36   :  { %8346 = shalt.err (!%p8343_p9)
}
  0x37   :  { %68 = dma.hbm_to_vmem [thread:$0]  %s9364_s7, 16384, %s63_s21, [#allocation6], %s8376_s19, %s8376_s19, %s8377_s20  }
  0x38   :  { %s8347_s18 = scalar_lea.hbm %s9366_s9, 32768 }
  0x39   :  { %p8348_p10 = scmp.ne.s32.totalorder %s9366_s9, %s8347_s18  ;;  %p8351_p11 = scmp.lt.u32.totalorder %s8347_s18, %s9366_s9 }
  0x3b   :  { %p8353_p12 = pnand %p8351_p11, %p8348_p10 }
  0x3d   :  { %8356 = shalt.err (!%p8353_p12)
}
  0x3e   :  { %s8357_s27 = scalar_lea.vmem %s8499_s23, 32768  ;;  %p8362_p0 = scmp.lt.s32.totalorder %s8499_s23, %s8499_s23 }
  0x3f   :  { %p8358_p13 = scmp.ne.s32.totalorder %s8499_s23, %s8357_s27  ;;  %p8363_p1 = scmp.lt.s32.totalorder %s8357_s27, %s8357_s27 }
  0x41   :  { %p8364_p2 = por %p8363_p1, %p8362_p0 }
  0x43   :  { %p8365_p3 = pnand %p8364_p2, %p8358_p13 }
  0x45   :  { %8368 = shalt.err (!%p8365_p3)
}
  0x46   :  { %s8383_s7 = smov 256   ;;  %s8384_s19 = smov 16  }
  0x47   :  { %82 = dma.hbm_to_vmem [thread:$0]  %s9366_s9, 32768, %s8499_s23, [#allocation9], %s8383_s7, %s8383_s7, %s8384_s19  }
  0x48   :  { %8369 = dma.done.wait [#allocation4], 2048  }
  0x49   :  { %8370 = vsyncadd [#allocation4], 4294965248 }
  0x4a   :  { %8371 = dma.done.wait [#allocation6], 32768  }
  0x4b   :  { %8372 = vsyncadd [#allocation6], 4294934528 }
  0x4c   :  { %8373 = dma.done.wait [#allocation9], 32768  }
  0x4d   :  { %8374 = vsyncadd [#allocation9], 4294934528  ;;  %v8385_v1 = vmov 0.0   ;;  %v202_v2 = vld [vmem:[#allocation5 + $0x8] sm:$0xff]  ;;  %v201_v4 = vld [vmem:[#allocation5] sm:$0xff]  ;;  %vm1851_vm0 = vcmask 523264  }
  0x4e   :  { %435 = vmatprep.mubr.f32.mxu1 %v8385_v1  ;;  %v210_v3 = vld [vmem:[#allocation5 + $0x48] sm:$0xff]  ;;  %v209_v6 = vld [vmem:[#allocation5 + $0x40] sm:$0xff]  ;;  %v105_v47 = vld [vmem:[#allocation3 + $0x10] sm:$0xff]  ;;  %vm1947_vm2 = vcmask 130048   ;;  %vm2041_vm3 = vcmask 64512   ;;  %s8386_s29 = smov 120  }
  0x4f   :  { %v7265_v5 = vpack.c.bf16 %v210_v3, %v202_v2  ;;  %v218_v7 = vld [vmem:[#allocation5 + $0x88] sm:$0xff]  ;;  %v7267_v9 = vpack.c.bf16 %v209_v6, %v201_v4  ;;  %v217_v11 = vld [vmem:[#allocation5 + $0x80] sm:$0xff]  ;;  %v106_v48 = vld [vmem:[#allocation3 + $0x18] sm:$0xff]  ;;  %vm2232_vm4 = vcmask 261248   ;;  %s8387_s30 = smov 112   ;;  %vm2524_vm5 = vcmask 392448  }
  0x50   :  { %v226_v8 = vld [vmem:[#allocation5 + $0xc8] sm:$0xff]  ;;  %v225_v12 = vld [vmem:[#allocation5 + $0xc0] sm:$0xff]  ;;  %v7237_v51 = vpack.c.bf16 %v106_v48, %v105_v47  ;;  %v109_v59 = vld [vmem:[#allocation3 + $0x30] sm:$0xff]  ;;  %s8389_s24 = smov 96   ;;  %s8390_s16 = smov 48   ;;  %vm2818_vm6 = vcmask 523648  }
  0x51   :  { %v7269_v10 = vpack.c.bf16 %v226_v8, %v218_v7  ;;  %v234_v13 = vld [vmem:[#allocation5 + $0x108] sm:$0xff]  ;;  %7266 = vmatprep.subr.bf16.mxu1 %v7265_v5  ;;  %v7271_v15 = vpack.c.bf16 %v225_v12, %v217_v11  ;;  %v233_v17 = vld [vmem:[#allocation5 + $0x100] sm:$0xff]  ;;  %v110_v60 = vld [vmem:[#allocation3 + $0x38] sm:$0xff]  ;;  %s8391_s5 = smov 104   ;;  %s8392_s18 = smov 80   ;;  %vm3108_vm7 = vcmask 654848  }
  0x52   :  { %v242_v14 = vld [vmem:[#allocation5 + $0x148] sm:$0xff]  ;;  %7268 = vmatpush1.bf16.msra.mxu1 %v7267_v9  ;;  %v241_v18 = vld [vmem:[#allocation5 + $0x140] sm:$0xff]  ;;  %v7245_v0 = vpack.c.bf16 %v110_v60, %v109_v59  ;;  %vm8753_vm1 = vmpackc.low %vm1851_vm0, %vm1851_vm0  ;;  %s8393_s25 = smov 88   ;;  %vm3402_vm8 = vcmask 786048   ;;  %vm3692_vm9 = vcmask 917248   ;;  %vm3986_vm10 = vcmask 1048448  }
  0x53   :  { %7270 = vmatprep.subr.bf16.mxu1 %v7269_v10  ;;  %v7273_v16 = vpack.c.bf16 %v242_v14, %v234_v13  ;;  %v250_v19 = vld [vmem:[#allocation5 + $0x188] sm:$0xff]  ;;  %v7275_v21 = vpack.c.bf16 %v241_v18, %v233_v17  ;;  %v249_v23 = vld [vmem:[#allocation5 + $0x180] sm:$0xff]  ;;  %v114_v17 = vld [vmem:[#allocation3 + $0x58] sm:$0xff]  ;;  %s8396_s17 = smov 40   ;;  %vm6505_vm11 = vcmask 7168  }
  0x54   :  { %v258_v20 = vld [vmem:[#allocation5 + $0x1c8] sm:$0xff]  ;;  %v257_v24 = vld [vmem:[#allocation5 + $0x1c0] sm:$0xff] }
  0x55   :  { %v7277_v22 = vpack.c.bf16 %v258_v20, %v250_v19  ;;  %v266_v25 = vld [vmem:[#allocation5 + $0x208] sm:$0xff]  ;;  %v8538_v27 = vld [vmem:[%s9357_s0] sm:$0xff]  ;;  %v7279_v28 = vpack.c.bf16 %v257_v24, %v249_v23 }
  0x56   :  { %7272 = vmatpush1.bf16.msra.mxu1 %v7271_v15  ;;  %v274_v26 = vld [vmem:[#allocation5 + $0x248] sm:$0xff]  ;;  %6891 = vmatprep.mubr.f32.mxu0 %v8538_v27  ;;  %v265_v30 = vld [vmem:[#allocation5 + $0x200] sm:$0xff] }
  0x57   :  { %7274 = vmatprep.subr.bf16.mxu1 %v7273_v16  ;;  %v7281_v29 = vpack.c.bf16 %v274_v26, %v266_v25  ;;  %v273_v31 = vld [vmem:[#allocation5 + $0x240] sm:$0xff]  ;;  %v282_v32 = vld [vmem:[#allocation5 + $0x288] sm:$0xff]  ;;  %v113_v16 = vld [vmem:[#allocation3 + $0x50] sm:$0xff] }
  0x58   :  { %v290_v33 = vld [vmem:[#allocation5 + $0x2c8] sm:$0xff]  ;;  %v7283_v34 = vpack.c.bf16 %v273_v31, %v265_v30  ;;  %v281_v36 = vld [vmem:[#allocation5 + $0x280] sm:$0xff]  ;;  %v7253_v23 = vpack.c.bf16 %v114_v17, %v113_v16  ;;  %v260_v16 = vld [vmem:[#allocation5 + $0x1d8] sm:$0xff] }
  0x59   :  { %v7285_v35 = vpack.c.bf16 %v290_v33, %v282_v32  ;;  %v289_v37 = vld [vmem:[#allocation5 + $0x2c0] sm:$0xff]  ;;  %v298_v38 = vld [vmem:[#allocation5 + $0x308] sm:$0xff] }
  0x5a   :  { %7276 = vmatpush1.bf16.msra.mxu1 %v7275_v21  ;;  %v306_v39 = vld [vmem:[#allocation5 + $0x348] sm:$0xff]  ;;  %v103_v40 = vld [vmem:[#allocation3] sm:$0xff]  ;;  %v7287_v42 = vpack.c.bf16 %v289_v37, %v281_v36 }
  0x5b   :  { %7278 = vmatprep.subr.bf16.mxu1 %v7277_v22  ;;  %v104_v41 = vld [vmem:[#allocation3 + $0x8] sm:$0xff]  ;;  %v297_v43 = vld [vmem:[#allocation5 + $0x300] sm:$0xff]  ;;  %v7289_v45 = vpack.c.bf16 %v306_v39, %v298_v38 }
  0x5c   :  { %v7233_v44 = vpack.c.bf16 %v104_v41, %v103_v40  ;;  %v305_v46 = vld [vmem:[#allocation5 + $0x340] sm:$0xff]  ;;  %v314_v49 = vld [vmem:[#allocation5 + $0x388] sm:$0xff] }
  0x5d   :  { %v322_v50 = vld [vmem:[#allocation5 + $0x3c8] sm:$0xff]  ;;  %v107_v52 = vld [vmem:[#allocation3 + $0x20] sm:$0xff]  ;;  %v7291_v54 = vpack.c.bf16 %v305_v46, %v297_v43  ;;  %v204_v43 = vld [vmem:[#allocation5 + $0x18] sm:$0xff] }
  0x5e   :  { %7280 = vmatpush1.bf16.msra.mxu1 %v7279_v28  ;;  %7234 = vmatprep.subr.bf16.mxu0 %v7233_v44  ;;  %v108_v53 = vld [vmem:[#allocation3 + $0x28] sm:$0xff]  ;;  %v313_v55 = vld [vmem:[#allocation5 + $0x380] sm:$0xff]  ;;  %v7293_v57 = vpack.c.bf16 %v322_v50, %v314_v49  ;;  %v203_v50 = vld [vmem:[#allocation5 + $0x10] sm:$0xff] }
  0x5f   :  { %7282 = vmatprep.subr.bf16.mxu1 %v7281_v29  ;;  %7236 = vmatpush3.bf16.msra.mxu0 %v7233_v44  ;;  %v7241_v56 = vpack.c.bf16 %v108_v53, %v107_v52  ;;  %v321_v58 = vld [vmem:[#allocation5 + $0x3c0] sm:$0xff]  ;;  %v206_v61 = vld [vmem:[#allocation5 + $0x28] sm:$0xff]  ;;  %v212_v44 = vld [vmem:[#allocation5 + $0x58] sm:$0xff] }
  0x60   :  { %7238 = vmatprep.subr.bf16.mxu0 %v7237_v51  ;;  %v214_v62 = vld [vmem:[#allocation5 + $0x68] sm:$0xff]  ;;  %v7295_v63 = vpack.c.bf16 %v321_v58, %v313_v55  ;;  %v205_v3 = vld [vmem:[#allocation5 + $0x20] sm:$0xff]  ;;  %v7297_v49 = vpack.c.bf16 %v212_v44, %v204_v43  ;;  %v228_v55 = vld [vmem:[#allocation5 + $0xd8] sm:$0xff] }
  0x61   :  { %v7329_v2 = vpack.c.bf16 %v214_v62, %v206_v61  ;;  %v213_v4 = vld [vmem:[#allocation5 + $0x60] sm:$0xff]  ;;  %v222_v5 = vld [vmem:[#allocation5 + $0xa8] sm:$0xff]  ;;  %v219_v62 = vld [vmem:[#allocation5 + $0x90] sm:$0xff] }
  0x62   :  { %7284 = vmatpush1.bf16.msra.mxu1 %v7283_v34  ;;  %v230_v6 = vld [vmem:[#allocation5 + $0xe8] sm:$0xff]  ;;  %v111_v7 = vld [vmem:[#allocation3 + $0x40] sm:$0xff]  ;;  %v7331_v9 = vpack.c.bf16 %v213_v4, %v205_v3  ;;  %v117_v34 = vld [vmem:[#allocation3 + $0x70] sm:$0xff] }
  0x63   :  { %7286 = vmatprep.subr.bf16.mxu1 %v7285_v35  ;;  %7240 = vmatpush3.bf16.msra.mxu0 %v7237_v51  ;;  %v112_v8 = vld [vmem:[#allocation3 + $0x48] sm:$0xff]  ;;  %v7333_v10 = vpack.c.bf16 %v230_v6, %v222_v5  ;;  %v221_v11 = vld [vmem:[#allocation5 + $0xa0] sm:$0xff]  ;;  %v118_v35 = vld [vmem:[#allocation3 + $0x78] sm:$0xff] }
  0x64   :  { %7242 = vmatprep.subr.bf16.mxu0 %v7241_v56  ;;  %v229_v12 = vld [vmem:[#allocation5 + $0xe0] sm:$0xff]  ;;  %v238_v13 = vld [vmem:[#allocation5 + $0x128] sm:$0xff]  ;;  %v7249_v14 = vpack.c.bf16 %v112_v8, %v111_v7  ;;  %v7261_v40 = vpack.c.bf16 %v118_v35, %v117_v34  ;;  %v211_v51 = vld [vmem:[#allocation5 + $0x50] sm:$0xff] }
  0x65   :  { %v246_v15 = vld [vmem:[#allocation5 + $0x168] sm:$0xff]  ;;  %v7335_v18 = vpack.c.bf16 %v229_v12, %v221_v11  ;;  %v237_v19 = vld [vmem:[#allocation5 + $0x120] sm:$0xff]  ;;  %v7299_v58 = vpack.c.bf16 %v211_v51, %v203_v50  ;;  %v236_v3 = vld [vmem:[#allocation5 + $0x118] sm:$0xff] }
  0x66   :  { %7288 = vmatpush1.bf16.msra.mxu1 %v7287_v42  ;;  %v8546_v20 = vld [vmem:[%s9357_s0 + $0x8] sm:$0xff]  ;;  %v7337_v21 = vpack.c.bf16 %v246_v15, %v238_v13  ;;  %v244_v4 = vld [vmem:[#allocation5 + $0x158] sm:$0xff]  ;;  %v235_v11 = vld [vmem:[#allocation5 + $0x110] sm:$0xff] }
  0x67   :  { %7290 = vmatprep.subr.bf16.mxu1 %v7289_v45  ;;  %7244 = vmatpush3.bf16.msra.mxu0 %v7241_v56  ;;  %v245_v22 = vld [vmem:[#allocation5 + $0x160] sm:$0xff]  ;;  %v116_v25 = vld [vmem:[#allocation3 + $0x68] sm:$0xff]  ;;  %v243_v12 = vld [vmem:[#allocation5 + $0x150] sm:$0xff] }
  0x68   :  { %7246 = vmatprep.subr.bf16.mxu0 %v7245_v0  ;;  %v115_v24 = vld [vmem:[#allocation3 + $0x60] sm:$0xff]  ;;  %v254_v26 = vld [vmem:[#allocation5 + $0x1a8] sm:$0xff]  ;;  %v7339_v29 = vpack.c.bf16 %v245_v22, %v237_v19  ;;  %v252_v15 = vld [vmem:[#allocation5 + $0x198] sm:$0xff]  ;;  %v7307_v19 = vpack.c.bf16 %v243_v12, %v235_v11 }
  0x69   :  { %v262_v28 = vld [vmem:[#allocation5 + $0x1e8] sm:$0xff]  ;;  %v253_v30 = vld [vmem:[#allocation5 + $0x1a0] sm:$0xff]  ;;  %v7257_v31 = vpack.c.bf16 %v116_v25, %v115_v24  ;;  %v7309_v22 = vpack.c.bf16 %v260_v16, %v252_v15  ;;  %v259_v24 = vld [vmem:[#allocation5 + $0x1d0] sm:$0xff] }
  0x6a   :  { %7292 = vmatpush1.bf16.msra.mxu1 %v7291_v54  ;;  %v7341_v32 = vpack.c.bf16 %v262_v28, %v254_v26  ;;  %v261_v33 = vld [vmem:[#allocation5 + $0x1e0] sm:$0xff]  ;;  %v270_v36 = vld [vmem:[#allocation5 + $0x228] sm:$0xff]  ;;  %v220_v54 = vld [vmem:[#allocation5 + $0x98] sm:$0xff] }
  0x6b   :  { %7294 = vmatprep.subr.bf16.mxu1 %v7293_v57  ;;  %7248 = vmatpush3.bf16.msra.mxu0 %v7245_v0  ;;  %v278_v37 = vld [vmem:[#allocation5 + $0x268] sm:$0xff]  ;;  %v7343_v38 = vpack.c.bf16 %v261_v33, %v253_v30  ;;  %v269_v39 = vld [vmem:[#allocation5 + $0x220] sm:$0xff]  ;;  %v7301_v61 = vpack.c.bf16 %v228_v55, %v220_v54  ;;  %v267_v35 = vld [vmem:[#allocation5 + $0x210] sm:$0xff] }
  0x6c   :  { %7250 = vmatprep.subr.bf16.mxu0 %v7249_v14  ;;  %v7345_v41 = vpack.c.bf16 %v278_v37, %v270_v36  ;;  %v277_v42 = vld [vmem:[#allocation5 + $0x260] sm:$0xff]  ;;  %v286_v45 = vld [vmem:[#allocation5 + $0x2a8] sm:$0xff]  ;;  %v275_v36 = vld [vmem:[#allocation5 + $0x250] sm:$0xff] }
  0x6d   :  { %v294_v46 = vld [vmem:[#allocation5 + $0x2e8] sm:$0xff]  ;;  %v7347_v47 = vpack.c.bf16 %v277_v42, %v269_v39  ;;  %v285_v48 = vld [vmem:[#allocation5 + $0x2a0] sm:$0xff]  ;;  %v284_v43 = vld [vmem:[#allocation5 + $0x298] sm:$0xff] }
  0x6e   :  { %7296 = vmatpush1.bf16.msra.mxu1 %v7295_v63  ;;  %v7349_v52 = vpack.c.bf16 %v294_v46, %v286_v45  ;;  %v293_v53 = vld [vmem:[#allocation5 + $0x2e0] sm:$0xff]  ;;  %v302_v56 = vld [vmem:[#allocation5 + $0x328] sm:$0xff]  ;;  %v227_v63 = vld [vmem:[#allocation5 + $0xd0] sm:$0xff]  ;;  %v7315_v45 = vpack.c.bf16 %v275_v36, %v267_v35 }
  0x6f   :  { %7330 = vmatprep.subr.bf16.mxu1 %v7329_v2  ;;  %7252 = vmatpush3.bf16.msra.mxu0 %v7249_v14  ;;  %v310_v57 = vld [vmem:[#allocation5 + $0x368] sm:$0xff]  ;;  %v7351_v59 = vpack.c.bf16 %v293_v53, %v285_v48  ;;  %v301_v60 = vld [vmem:[#allocation5 + $0x320] sm:$0xff]  ;;  %v7303_v7 = vpack.c.bf16 %v227_v63, %v219_v62  ;;  %v292_v44 = vld [vmem:[#allocation5 + $0x2d8] sm:$0xff] }
  0x70   :  { %7254 = vmatprep.subr.bf16.mxu0 %v7253_v23  ;;  %v7353_v0 = vpack.c.bf16 %v310_v57, %v302_v56  ;;  %v309_v2 = vld [vmem:[#allocation5 + $0x360] sm:$0xff]  ;;  %v318_v5 = vld [vmem:[#allocation5 + $0x3a8] sm:$0xff]  ;;  %v283_v48 = vld [vmem:[#allocation5 + $0x290] sm:$0xff] }
  0x71   :  { %436 = vmatmul.mubr.f32.vlgmr.msra.gmra.mrb[0].mxu1 %v8538_v27  ;;  %v326_v6 = vld [vmem:[#allocation5 + $0x3e8] sm:$0xff]  ;;  %v7355_v8 = vpack.c.bf16 %v309_v2, %v301_v60  ;;  %v325_v14 = vld [vmem:[#allocation5 + $0x3e0] sm:$0xff]  ;;  %v300_v53 = vld [vmem:[#allocation5 + $0x318] sm:$0xff] }
  0x72   :  { %7332 = vmatpush1.bf16.msra.mxu1 %v7331_v9  ;;  %441 = vmatprep.mubr.f32.mxu1 %v8385_v1  ;;  %v317_v9 = vld [vmem:[#allocation5 + $0x3a0] sm:$0xff]  ;;  %v7357_v13 = vpack.c.bf16 %v326_v6, %v318_v5  ;;  %v680_v17 = vld [vmem:[#allocation7 + $0x8] sm:$0xff]  ;;  %v308_v54 = vld [vmem:[#allocation5 + $0x358] sm:$0xff] }
  0x73   :  { %7334 = vmatprep.subr.bf16.mxu1 %v7333_v10  ;;  %7256 = vmatpush3.bf16.msra.mxu0 %v7253_v23  ;;  %v7305_v10 = vpack.c.bf16 %v244_v4, %v236_v3  ;;  %v251_v23 = vld [vmem:[#allocation5 + $0x190] sm:$0xff]  ;;  %v679_v26 = vld [vmem:[#allocation7] sm:$0xff]  ;;  %v704_v30 = vld [vmem:[#allocation7 + $0xc8] sm:$0xff]  ;;  %v7321_v60 = vpack.c.bf16 %v308_v54, %v300_v53 }
  0x74   :  { %7258 = vmatprep.subr.bf16.mxu0 %v7257_v31  ;;  %v687_v28 = vld [vmem:[#allocation7 + $0x40] sm:$0xff]  ;;  %v7311_v33 = vpack.c.bf16 %v259_v24, %v251_v23  ;;  %v720_v42 = vld [vmem:[#allocation7 + $0x148] sm:$0xff]  ;;  %v307_v62 = vld [vmem:[#allocation5 + $0x350] sm:$0xff] }
  0x75   :  { %442 = vmatmul.mubr.f32.gmra.mrb[2].mxu1 %v8546_v20  ;;  %v7395_v34 = vpack.c.bf16 %v687_v28, %v679_v26  ;;  %v703_v39 = vld [vmem:[#allocation7 + $0xc0] sm:$0xff]  ;;  %v728_v55 = vld [vmem:[#allocation7 + $0x188] sm:$0xff]  ;;  %v316_v2 = vld [vmem:[#allocation5 + $0x398] sm:$0xff] }
  0x76   :  { %7336 = vmatpush1.bf16.msra.mxu1 %v7335_v18  ;;  %589 = vmatprep.mubr.f32.mxu1 %v8385_v1  ;;  %v688_v18 = vld [vmem:[#allocation7 + $0x48] sm:$0xff]  ;;  %v719_v51 = vld [vmem:[#allocation7 + $0x140] sm:$0xff]  ;;  %v324_v3 = vld [vmem:[#allocation5 + $0x3d8] sm:$0xff] }
  0x77   :  { %7338 = vmatprep.subr.bf16.mxu1 %v7337_v21  ;;  %7260 = vmatpush3.bf16.msra.mxu0 %v7257_v31  ;;  %v7359_v21 = vpack.c.bf16 %v325_v14, %v317_v9  ;;  %v7393_v25 = vpack.c.bf16 %v688_v18, %v680_v17  ;;  %v268_v31 = vld [vmem:[#allocation5 + $0x218] sm:$0xff]  ;;  %v736_v56 = vld [vmem:[#allocation7 + $0x1c8] sm:$0xff]  ;;  %v7325_v9 = vpack.c.bf16 %v324_v3, %v316_v2  ;;  %v323_v11 = vld [vmem:[#allocation5 + $0x3d0] sm:$0xff] }
  0x78   :  { %7262 = vmatprep.subr.bf16.mxu0 %v7261_v40  ;;  %v7405_v63 = vpack.c.bf16 %v736_v56, %v728_v55  ;;  %v744_v4 = vld [vmem:[#allocation7 + $0x208] sm:$0xff]  ;;  %v208_v14 = vld [vmem:[#allocation5 + $0x38] sm:$0xff]  ;;  %v207_v23 = vld [vmem:[#allocation5 + $0x30] sm:$0xff] }
  0x79   :  { %v752_v5 = vld [vmem:[#allocation7 + $0x248] sm:$0xff]  ;;  %v216_v15 = vld [vmem:[#allocation5 + $0x78] sm:$0xff]  ;;  %v215_v24 = vld [vmem:[#allocation5 + $0x70] sm:$0xff] }
  0x7a   :  { %7340 = vmatpush1.bf16.msra.mxu1 %v7339_v29  ;;  %v696_v29 = vld [vmem:[#allocation7 + $0x88] sm:$0xff]  ;;  %v7409_v12 = vpack.c.bf16 %v752_v5, %v744_v4  ;;  %v767_v26 = vld [vmem:[#allocation7 + $0x2c0] sm:$0xff]  ;;  %v224_v28 = vld [vmem:[#allocation5 + $0xb8] sm:$0xff] }
  0x7b   :  { %7342 = vmatprep.subr.bf16.mxu1 %v7341_v32  ;;  %7264 = vmatpush3.bf16.msra.mxu0 %v7261_v40  ;;  %v276_v32 = vld [vmem:[#allocation5 + $0x258] sm:$0xff]  ;;  %v7397_v37 = vpack.c.bf16 %v704_v30, %v696_v29  ;;  %v712_v40 = vld [vmem:[#allocation7 + $0x108] sm:$0xff]  ;;  %v223_v36 = vld [vmem:[#allocation5 + $0xb0] sm:$0xff] }
  0x7c   :  { %7298 = vmatprep.subr.bf16.mxu0 %v7297_v49  ;;  %v291_v49 = vld [vmem:[#allocation5 + $0x2d0] sm:$0xff]  ;;  %v7401_v50 = vpack.c.bf16 %v720_v42, %v712_v40  ;;  %v760_v16 = vld [vmem:[#allocation7 + $0x288] sm:$0xff]  ;;  %v232_v29 = vld [vmem:[#allocation5 + $0xf8] sm:$0xff] }
  0x7d   :  { %v7319_v57 = vpack.c.bf16 %v291_v49, %v283_v48  ;;  %v768_v17 = vld [vmem:[#allocation7 + $0x2c8] sm:$0xff]  ;;  %v7365_v35 = vpack.c.bf16 %v232_v29, %v224_v28  ;;  %v240_v40 = vld [vmem:[#allocation5 + $0x138] sm:$0xff]  ;;  %v239_v48 = vld [vmem:[#allocation5 + $0x130] sm:$0xff] }
  0x7e   :  { %7344 = vmatpush1.bf16.msra.mxu1 %v7343_v38  ;;  %6892 = vmatmul.mubr.f32.vlgmr.msra.gmra.mrb[0].mxu0 %v8546_v20  ;;  %v695_v38 = vld [vmem:[#allocation7 + $0x80] sm:$0xff]  ;;  %v776_v30 = vld [vmem:[#allocation7 + $0x308] sm:$0xff]  ;;  %v247_v49 = vld [vmem:[#allocation5 + $0x170] sm:$0xff] }
  0x7f   :  { %7346 = vmatprep.subr.bf16.mxu1 %v7345_v41  ;;  %7300 = vmatpush1.bf16.msra.mxu0 %v7299_v58  ;;  %v7313_v41 = vpack.c.bf16 %v276_v32, %v268_v31  ;;  %v7399_v46 = vpack.c.bf16 %v703_v39, %v695_v38  ;;  %v784_v31 = vld [vmem:[#allocation7 + $0x348] sm:$0xff]  ;;  %v7363_v32 = vpack.c.bf16 %v215_v24, %v207_v23  ;;  %v783_v39 = vld [vmem:[#allocation7 + $0x340] sm:$0xff]  ;;  %v264_v53 = vld [vmem:[#allocation5 + $0x1f8] sm:$0xff] }
  0x80   :  { %512 = vmatprep.mubr.f32.mxu0 %v8385_v1  ;;  %7302 = vmatprep.subr.bf16.mxu0 %v7301_v61  ;;  %v299_v61 = vld [vmem:[#allocation5 + $0x310] sm:$0xff]  ;;  %v7417_v38 = vpack.c.bf16 %v784_v31, %v776_v30  ;;  %v792_v42 = vld [vmem:[#allocation7 + $0x388] sm:$0xff]  ;;  %v7371_v56 = vpack.c.bf16 %v247_v49, %v239_v48  ;;  %v272_v3 = vld [vmem:[#allocation5 + $0x238] sm:$0xff] }
  0x81   :  { %v7323_v6 = vpack.c.bf16 %v307_v62, %v299_v61  ;;  %v684_v54 = vld [vmem:[#allocation7 + $0x28] sm:$0xff]  ;;  %v683_v62 = vld [vmem:[#allocation7 + $0x20] sm:$0xff]  ;;  %v280_v4 = vld [vmem:[#allocation5 + $0x278] sm:$0xff] }
  0x82   :  { %7348 = vmatpush1.bf16.msra.mxu1 %v7347_v47  ;;  %v711_v47 = vld [vmem:[#allocation7 + $0x100] sm:$0xff]  ;;  %v692_v55 = vld [vmem:[#allocation7 + $0x68] sm:$0xff]  ;;  %v312_v28 = vld [vmem:[#allocation5 + $0x378] sm:$0xff] }
  0x83   :  { %7350 = vmatprep.subr.bf16.mxu1 %v7349_v52  ;;  %7304 = vmatpush1.bf16.msra.mxu0 %v7303_v7  ;;  %v7317_v52 = vpack.c.bf16 %v292_v44, %v284_v43  ;;  %v7403_v58 = vpack.c.bf16 %v719_v51, %v711_v47  ;;  %v800_v43 = vld [vmem:[#allocation7 + $0x3c8] sm:$0xff]  ;;  %v799_v51 = vld [vmem:[#allocation7 + $0x3c0] sm:$0xff]  ;;  %v7457_v61 = vpack.c.bf16 %v692_v55, %v684_v54  ;;  %v327_v48 = vld [vmem:[#allocation5 + $0x3f0] sm:$0xff] }
  0x84   :  { %7306 = vmatprep.subr.bf16.mxu0 %v7305_v10  ;;  %v315_v10 = vld [vmem:[#allocation5 + $0x390] sm:$0xff]  ;;  %v708_v2 = vld [vmem:[#allocation7 + $0xe8] sm:$0xff]  ;;  %v723_v24 = vld [vmem:[#allocation7 + $0x160] sm:$0xff] }
  0x85   :  { %v7327_v18 = vpack.c.bf16 %v323_v11, %v315_v10  ;;  %v699_v10 = vld [vmem:[#allocation7 + $0xa0] sm:$0xff]  ;;  %v732_v29 = vld [vmem:[#allocation7 + $0x1a8] sm:$0xff] }
  0x86   :  { %7352 = vmatpush1.bf16.msra.mxu1 %v7351_v59  ;;  %v727_v59 = vld [vmem:[#allocation7 + $0x180] sm:$0xff]  ;;  %v740_v30 = vld [vmem:[#allocation7 + $0x1e8] sm:$0xff] }
  0x87   :  { %7354 = vmatprep.subr.bf16.mxu1 %v7353_v0  ;;  %7308 = vmatpush1.bf16.msra.mxu0 %v7307_v19  ;;  %v735_v0 = vld [vmem:[#allocation7 + $0x1c0] sm:$0xff]  ;;  %v772_v54 = vld [vmem:[#allocation7 + $0x2e8] sm:$0xff] }
  0x88   :  { %7310 = vmatprep.subr.bf16.mxu0 %v7309_v22  ;;  %v7407_v7 = vpack.c.bf16 %v735_v0, %v727_v59  ;;  %v7361_v22 = vpack.c.bf16 %v216_v15, %v208_v14  ;;  %v255_v59 = vld [vmem:[#allocation5 + $0x1b0] sm:$0xff]  ;;  %v700_v0 = vld [vmem:[#allocation7 + $0xa8] sm:$0xff]  ;;  %v707_v11 = vld [vmem:[#allocation7 + $0xe0] sm:$0xff] }
  0x89   :  { %v724_v14 = vld [vmem:[#allocation7 + $0x168] sm:$0xff]  ;;  %v288_v15 = vld [vmem:[#allocation5 + $0x2b8] sm:$0xff] }
  0x8a   :  { %7356 = vmatpush1.bf16.msra.mxu1 %v7355_v8  ;;  %v743_v8 = vld [vmem:[#allocation7 + $0x200] sm:$0xff] }
  0x8b   :  { %7358 = vmatprep.subr.bf16.mxu1 %v7357_v13  ;;  %7312 = vmatpush1.bf16.msra.mxu0 %v7311_v33  ;;  %v751_v13 = vld [vmem:[#allocation7 + $0x240] sm:$0xff] }
  0x8c   :  { %7314 = vmatprep.subr.bf16.mxu0 %v7313_v41  ;;  %v7411_v19 = vpack.c.bf16 %v751_v13, %v743_v8  ;;  %v248_v41 = vld [vmem:[#allocation5 + $0x178] sm:$0xff]  ;;  %v279_v8 = vld [vmem:[#allocation5 + $0x270] sm:$0xff]  ;;  %v7377_v13 = vpack.c.bf16 %v280_v4, %v272_v3  ;;  %v788_v3 = vld [vmem:[#allocation7 + $0x368] sm:$0xff] }
  0x8d   :  { %v7369_v47 = vpack.c.bf16 %v248_v41, %v240_v40  ;;  %v328_v40 = vld [vmem:[#allocation5 + $0x3f8] sm:$0xff]  ;;  %v748_v41 = vld [vmem:[#allocation7 + $0x228] sm:$0xff] }
  0x8e   :  { %7360 = vmatpush1.bf16.msra.mxu1 %v7359_v21  ;;  %v759_v21 = vld [vmem:[#allocation7 + $0x280] sm:$0xff] }
  0x8f   :  { %7394 = vmatprep.subr.bf16.mxu1 %v7393_v25  ;;  %7316 = vmatpush1.bf16.msra.mxu0 %v7315_v45  ;;  %v7413_v25 = vpack.c.bf16 %v768_v17, %v760_v16  ;;  %v7415_v33 = vpack.c.bf16 %v767_v26, %v759_v21  ;;  %v296_v16 = vld [vmem:[#allocation5 + $0x2f8] sm:$0xff]  ;;  %v287_v21 = vld [vmem:[#allocation5 + $0x2b0] sm:$0xff] }
  0x90   :  { %7318 = vmatprep.subr.bf16.mxu0 %v7317_v52  ;;  %v256_v52 = vld [vmem:[#allocation5 + $0x1b8] sm:$0xff] }
  0x91   :  { %590 = vmatmul.mubr.f32.vlgmr.msra.gmra.mrb[4].mxu1 %v8538_v27  ;;  %v304_v26 = vld [vmem:[#allocation5 + $0x338] sm:$0xff] }
  0x92   :  { %7396 = vmatpush1.bf16.msra.mxu1 %v7395_v34  ;;  %595 = vmatprep.mubr.f32.mxu1 %v8385_v1  ;;  %v775_v34 = vld [vmem:[#allocation7 + $0x300] sm:$0xff] }
  0x93   :  { %7398 = vmatprep.subr.bf16.mxu1 %v7397_v37  ;;  %7320 = vmatpush1.bf16.msra.mxu0 %v7319_v57  ;;  %v231_v37 = vld [vmem:[#allocation5 + $0xf0] sm:$0xff]  ;;  %v7419_v45 = vpack.c.bf16 %v783_v39, %v775_v34  ;;  %v7385_v34 = vpack.c.bf16 %v312_v28, %v304_v26  ;;  %v320_v39 = vld [vmem:[#allocation5 + $0x3b8] sm:$0xff]  ;;  %v1174_v28 = vld [vmem:[#allocation8 + $0x8] sm:$0xff] }
  0x94   :  { %7322 = vmatprep.subr.bf16.mxu0 %v7321_v60  ;;  %v7367_v44 = vpack.c.bf16 %v231_v37, %v223_v36  ;;  %v263_v60 = vld [vmem:[#allocation5 + $0x1f0] sm:$0xff]  ;;  %v7469_v37 = vpack.c.bf16 %v740_v30, %v732_v29  ;;  %v738_v26 = vld [vmem:[#allocation7 + $0x1d8] sm:$0xff] }
  0x95   :  { %596 = vmatmul.mubr.f32.gmra.mrb[6].mxu1 %v8546_v20  ;;  %v7375_v5 = vpack.c.bf16 %v263_v60, %v255_v59  ;;  %v311_v36 = vld [vmem:[#allocation5 + $0x370] sm:$0xff]  ;;  %v1176_v29 = vld [vmem:[#allocation8 + $0x18] sm:$0xff] }
  0x96   :  { %7400 = vmatpush1.bf16.msra.mxu1 %v7399_v46  ;;  %913 = vmatprep.mubr.f32.mxu1 %v8385_v1  ;;  %v791_v46 = vld [vmem:[#allocation7 + $0x380] sm:$0xff]  ;;  %v681_v59 = vld [vmem:[#allocation7 + $0x10] sm:$0xff] }
  0x97   :  { %7402 = vmatprep.subr.bf16.mxu1 %v7401_v50  ;;  %7324 = vmatpush1.bf16.msra.mxu0 %v7323_v6  ;;  %v7421_v50 = vpack.c.bf16 %v800_v43, %v792_v42  ;;  %v7423_v57 = vpack.c.bf16 %v799_v51, %v791_v46  ;;  %v756_v42 = vld [vmem:[#allocation7 + $0x268] sm:$0xff]  ;;  %v7389_v46 = vpack.c.bf16 %v328_v40, %v320_v39  ;;  %v682_v51 = vld [vmem:[#allocation7 + $0x18] sm:$0xff]  ;;  %v689_v60 = vld [vmem:[#allocation7 + $0x50] sm:$0xff] }
  0x98   :  { %7326 = vmatprep.subr.bf16.mxu0 %v7325_v9  ;;  %v7461_v9 = vpack.c.bf16 %v708_v2, %v700_v0  ;;  %v7473_v49 = vpack.c.bf16 %v756_v42, %v748_v41  ;;  %v706_v0 = vld [vmem:[#allocation7 + $0xd8] sm:$0xff]  ;;  %v780_v2 = vld [vmem:[#allocation7 + $0x328] sm:$0xff]  ;;  %v7427_v4 = vpack.c.bf16 %v689_v60, %v681_v59  ;;  %v769_v59 = vld [vmem:[#allocation7 + $0x2d0] sm:$0xff] }
  0x99   :  { %v1180_v39 = vld [vmem:[#allocation8 + $0x38] sm:$0xff] }
  0x9a   :  { %7404 = vmatpush1.bf16.msra.mxu1 %v7403_v58  ;;  %v7373_v58 = vpack.c.bf16 %v264_v53, %v256_v52  ;;  %v690_v52 = vld [vmem:[#allocation7 + $0x58] sm:$0xff]  ;;  %v764_v53 = vld [vmem:[#allocation7 + $0x2a8] sm:$0xff] }
  0x9b   :  { %7406 = vmatprep.subr.bf16.mxu1 %v7405_v63  ;;  %7328 = vmatpush1.bf16.msra.mxu0 %v7327_v18  ;;  %v691_v63 = vld [vmem:[#allocation7 + $0x60] sm:$0xff]  ;;  %v7463_v18 = vpack.c.bf16 %v707_v11, %v699_v10  ;;  %v7481_v10 = vpack.c.bf16 %v788_v3, %v780_v2  ;;  %v746_v40 = vld [vmem:[#allocation7 + $0x218] sm:$0xff] }
  0x9c   :  { %7362 = vmatprep.subr.bf16.mxu0 %v7361_v22  ;;  %v7459_v6 = vpack.c.bf16 %v691_v63, %v683_v62  ;;  %v295_v22 = vld [vmem:[#allocation5 + $0x2f0] sm:$0xff]  ;;  %v771_v62 = vld [vmem:[#allocation7 + $0x2e0] sm:$0xff]  ;;  %v698_v63 = vld [vmem:[#allocation7 + $0x98] sm:$0xff] }
  0x9d   :  { %v7383_v31 = vpack.c.bf16 %v295_v22, %v287_v21  ;;  %v787_v11 = vld [vmem:[#allocation7 + $0x360] sm:$0xff]  ;;  %v713_v21 = vld [vmem:[#allocation7 + $0x110] sm:$0xff]  ;;  %v754_v41 = vld [vmem:[#allocation7 + $0x258] sm:$0xff] }
  0x9e   :  { %7408 = vmatpush1.bf16.msra.mxu1 %v7407_v7  ;;  %513 = vmatmul.mubr.f32.vlgmr.msra.gmra.mrb[2].mxu0 %v8538_v27  ;;  %v271_v7 = vld [vmem:[#allocation5 + $0x230] sm:$0xff]  ;;  %v1188_v2 = vld [vmem:[#allocation8 + $0x78] sm:$0xff] }
  0x9f   :  { %7410 = vmatprep.subr.bf16.mxu1 %v7409_v12  ;;  %7364 = vmatpush1.bf16.msra.mxu0 %v7363_v32  ;;  %v716_v12 = vld [vmem:[#allocation7 + $0x128] sm:$0xff]  ;;  %v7379_v17 = vpack.c.bf16 %v279_v8, %v271_v7  ;;  %v7429_v7 = vpack.c.bf16 %v706_v0, %v698_v63  ;;  %v697_v8 = vld [vmem:[#allocation7 + $0x90] sm:$0xff]  ;;  %v786_v63 = vld [vmem:[#allocation7 + $0x358] sm:$0xff] }
  0xa0   :  { %518 = vmatprep.mubr.f32.mxu0 %v8385_v1  ;;  %7366 = vmatprep.subr.bf16.mxu0 %v7365_v35  ;;  %v7465_v23 = vpack.c.bf16 %v724_v14, %v716_v12  ;;  %v303_v35 = vld [vmem:[#allocation5 + $0x330] sm:$0xff]  ;;  %v714_v12 = vld [vmem:[#allocation7 + $0x118] sm:$0xff]  ;;  %v796_v14 = vld [vmem:[#allocation7 + $0x3a8] sm:$0xff] }
  0xa1   :  { %v7387_v43 = vpack.c.bf16 %v311_v36, %v303_v35  ;;  %v721_v22 = vld [vmem:[#allocation7 + $0x150] sm:$0xff]  ;;  %v7521_v35 = vpack.c.bf16 %v1176_v29, %v1174_v28  ;;  %v1173_v36 = vld [vmem:[#allocation8] sm:$0xff]  ;;  %v1186_v0 = vld [vmem:[#allocation8 + $0x68] sm:$0xff] }
  0xa2   :  { %7412 = vmatpush1.bf16.msra.mxu1 %v7411_v19  ;;  %519 = vmatmul.mubr.f32.gmra.mrb[4].mxu0 %v8546_v20  ;;  %v715_v19 = vld [vmem:[#allocation7 + $0x120] sm:$0xff]  ;;  %v7435_v30 = vpack.c.bf16 %v721_v22, %v713_v21  ;;  %v801_v21 = vld [vmem:[#allocation7 + $0x3d0] sm:$0xff]  ;;  %v1196_v28 = vld [vmem:[#allocation8 + $0xb8] sm:$0xff] }
  0xa3   :  { %7414 = vmatprep.subr.bf16.mxu1 %v7413_v25  ;;  %7368 = vmatpush1.bf16.msra.mxu0 %v7367_v44  ;;  %v7381_v25 = vpack.c.bf16 %v296_v16, %v288_v15  ;;  %v7467_v32 = vpack.c.bf16 %v723_v24, %v715_v19  ;;  %v804_v15 = vld [vmem:[#allocation7 + $0x3e8] sm:$0xff]  ;;  %v803_v24 = vld [vmem:[#allocation7 + $0x3e0] sm:$0xff] }
  0xa4   :  { %666 = vmatprep.mubr.f32.mxu0 %v8385_v1  ;;  %7370 = vmatprep.subr.bf16.mxu0 %v7369_v47  ;;  %v319_v47 = vld [vmem:[#allocation5 + $0x3b0] sm:$0xff] }
  0xa5   :  { %v7391_v55 = vpack.c.bf16 %v327_v48, %v319_v47  ;;  %v1179_v48 = vld [vmem:[#allocation8 + $0x30] sm:$0xff] }
  0xa6   :  { %7416 = vmatpush1.bf16.msra.mxu1 %v7415_v33  ;;  %v731_v33 = vld [vmem:[#allocation7 + $0x1a0] sm:$0xff] }
  0xa7   :  { %7418 = vmatprep.subr.bf16.mxu1 %v7417_v38  ;;  %7372 = vmatpush1.bf16.msra.mxu0 %v7371_v56  ;;  %v739_v38 = vld [vmem:[#allocation7 + $0x1e0] sm:$0xff] }
  0xa8   :  { %7374 = vmatprep.subr.bf16.mxu0 %v7373_v58  ;;  %v7471_v44 = vpack.c.bf16 %v739_v38, %v731_v33  ;;  %v7425_v58 = vpack.c.bf16 %v690_v52, %v682_v51  ;;  %v729_v33 = vld [vmem:[#allocation7 + $0x190] sm:$0xff]  ;;  %v1178_v38 = vld [vmem:[#allocation8 + $0x28] sm:$0xff]  ;;  %v770_v51 = vld [vmem:[#allocation7 + $0x2d8] sm:$0xff] }
  0xa9   :  { %v7525_v47 = vpack.c.bf16 %v1180_v39, %v1178_v38  ;;  %v1182_v52 = vld [vmem:[#allocation8 + $0x48] sm:$0xff]  ;;  %v710_v38 = vld [vmem:[#allocation7 + $0xf8] sm:$0xff] }
  0xaa   :  { %7420 = vmatpush1.bf16.msra.mxu1 %v7419_v45  ;;  %v747_v45 = vld [vmem:[#allocation7 + $0x220] sm:$0xff]  ;;  %v1198_v39 = vld [vmem:[#allocation8 + $0xc8] sm:$0xff] }
  0xab   :  { %7422 = vmatprep.subr.bf16.mxu1 %v7421_v50  ;;  %7376 = vmatpush1.bf16.msra.mxu0 %v7375_v5  ;;  %v755_v50 = vld [vmem:[#allocation7 + $0x260] sm:$0xff] }
  0xac   :  { %7378 = vmatprep.subr.bf16.mxu0 %v7377_v13  ;;  %v7475_v56 = vpack.c.bf16 %v755_v50, %v747_v45  ;;  %v722_v13 = vld [vmem:[#allocation7 + $0x158] sm:$0xff]  ;;  %v745_v45 = vld [vmem:[#allocation7 + $0x210] sm:$0xff] }
  0xad   :  { %v7433_v19 = vpack.c.bf16 %v722_v13, %v714_v12  ;;  %v762_v50 = vld [vmem:[#allocation7 + $0x298] sm:$0xff]  ;;  %v1190_v13 = vld [vmem:[#allocation8 + $0x88] sm:$0xff] }
  0xae   :  { %7424 = vmatpush1.bf16.msra.mxu1 %v7423_v57  ;;  %v763_v57 = vld [vmem:[#allocation7 + $0x2a0] sm:$0xff]  ;;  %v802_v12 = vld [vmem:[#allocation7 + $0x3d8] sm:$0xff] }
  0xaf   :  { %7458 = vmatprep.subr.bf16.mxu1 %v7457_v61  ;;  %7380 = vmatpush1.bf16.msra.mxu0 %v7379_v17  ;;  %v7477_v61 = vpack.c.bf16 %v772_v54, %v764_v53  ;;  %v7479_v5 = vpack.c.bf16 %v771_v62, %v763_v57  ;;  %v1184_v53 = vld [vmem:[#allocation8 + $0x58] sm:$0xff]  ;;  %v7445_v57 = vpack.c.bf16 %v770_v51, %v762_v50  ;;  %v1202_v51 = vld [vmem:[#allocation8 + $0xe8] sm:$0xff] }
  0xb0   :  { %7382 = vmatprep.subr.bf16.mxu0 %v7381_v25  ;;  %v730_v25 = vld [vmem:[#allocation7 + $0x198] sm:$0xff]  ;;  %v7529_v60 = vpack.c.bf16 %v1184_v53, %v1182_v52 }
  0xb1   :  { %914 = vmatmul.mubr.f32.vlgmr.msra.gmra.mrb[8].mxu1 %v8538_v27  ;;  %v778_v62 = vld [vmem:[#allocation7 + $0x318] sm:$0xff] }
  0xb2   :  { %7460 = vmatpush1.bf16.msra.mxu1 %v7459_v6  ;;  %919 = vmatprep.mubr.f32.mxu1 %v8385_v1  ;;  %v779_v6 = vld [vmem:[#allocation7 + $0x320] sm:$0xff]  ;;  %v726_v50 = vld [vmem:[#allocation7 + $0x178] sm:$0xff] }
  0xb3   :  { %7462 = vmatprep.subr.bf16.mxu1 %v7461_v9  ;;  %7384 = vmatpush1.bf16.msra.mxu0 %v7383_v31  ;;  %v705_v9 = vld [vmem:[#allocation7 + $0xd0] sm:$0xff]  ;;  %v7483_v17 = vpack.c.bf16 %v787_v11, %v779_v6  ;;  %v7449_v6 = vpack.c.bf16 %v786_v63, %v778_v62  ;;  %v794_v11 = vld [vmem:[#allocation7 + $0x398] sm:$0xff] }
  0xb4   :  { %7386 = vmatprep.subr.bf16.mxu0 %v7385_v34  ;;  %v7431_v16 = vpack.c.bf16 %v705_v9, %v697_v8  ;;  %v737_v34 = vld [vmem:[#allocation7 + $0x1d0] sm:$0xff]  ;;  %v7533_v9 = vpack.c.bf16 %v1188_v2, %v1186_v0  ;;  %v1204_v52 = vld [vmem:[#allocation8 + $0xf8] sm:$0xff]  ;;  %v1206_v0 = vld [vmem:[#allocation8 + $0x108] sm:$0xff] }
  0xb5   :  { %920 = vmatmul.mubr.f32.gmra.mrb[10].mxu1 %v8546_v20  ;;  %v7439_v42 = vpack.c.bf16 %v737_v34, %v729_v33  ;;  %v785_v8 = vld [vmem:[#allocation7 + $0x350] sm:$0xff]  ;;  %v8577_v53 = vld [vmem:[%s9357_s0] sm:$0xff] }
  0xb6   :  { %7464 = vmatpush1.bf16.msra.mxu1 %v7463_v18  ;;  %1067 = vmatprep.mubr.f32.mxu1 %v8385_v1  ;;  %v795_v18 = vld [vmem:[#allocation7 + $0x3a0] sm:$0xff]  ;;  %v685_v33 = vld [vmem:[#allocation7 + $0x30] sm:$0xff]  ;;  %v734_v62 = vld [vmem:[#allocation7 + $0x1b8] sm:$0xff] }
  0xb7   :  { %7466 = vmatprep.subr.bf16.mxu1 %v7465_v23  ;;  %7388 = vmatpush1.bf16.msra.mxu0 %v7387_v43  ;;  %v7485_v23 = vpack.c.bf16 %v804_v15, %v796_v14  ;;  %v7487_v31 = vpack.c.bf16 %v803_v24, %v795_v18  ;;  %v1192_v14 = vld [vmem:[#allocation8 + $0x98] sm:$0xff]  ;;  %v7453_v18 = vpack.c.bf16 %v802_v12, %v794_v11  ;;  %v693_v34 = vld [vmem:[#allocation7 + $0x70] sm:$0xff]  ;;  %v1210_v12 = vld [vmem:[#allocation8 + $0x128] sm:$0xff] }
  0xb8   :  { %7390 = vmatprep.subr.bf16.mxu0 %v7389_v46  ;;  %v753_v46 = vld [vmem:[#allocation7 + $0x250] sm:$0xff]  ;;  %v7537_v22 = vpack.c.bf16 %v1192_v14, %v1190_v13  ;;  %v686_v24 = vld [vmem:[#allocation7 + $0x38] sm:$0xff] }
  0xb9   :  { %v7443_v54 = vpack.c.bf16 %v753_v46, %v745_v45  ;;  %v701_v45 = vld [vmem:[#allocation7 + $0xb0] sm:$0xff]  ;;  %v742_v63 = vld [vmem:[#allocation7 + $0x1f8] sm:$0xff] }
  0xba   :  { %7468 = vmatpush1.bf16.msra.mxu1 %v7467_v32  ;;  %v7437_v32 = vpack.c.bf16 %v738_v26, %v730_v25  ;;  %v694_v25 = vld [vmem:[#allocation7 + $0x78] sm:$0xff]  ;;  %v1194_v26 = vld [vmem:[#allocation8 + $0xa8] sm:$0xff]  ;;  %v709_v46 = vld [vmem:[#allocation7 + $0xf0] sm:$0xff] }
  0xbb   :  { %7470 = vmatprep.subr.bf16.mxu1 %v7469_v37  ;;  %7392 = vmatpush1.bf16.msra.mxu0 %v7391_v55  ;;  %v1175_v37 = vld [vmem:[#allocation8 + $0x10] sm:$0xff]  ;;  %v1208_v2 = vld [vmem:[#allocation8 + $0x118] sm:$0xff] }
  0xbc   :  { %7426 = vmatprep.subr.bf16.mxu0 %v7425_v58  ;;  %v7523_v43 = vpack.c.bf16 %v1175_v37, %v1173_v36  ;;  %v761_v58 = vld [vmem:[#allocation7 + $0x290] sm:$0xff]  ;;  %v702_v37 = vld [vmem:[#allocation7 + $0xb8] sm:$0xff] }
  0xbd   :  { %v7447_v3 = vpack.c.bf16 %v769_v59, %v761_v58  ;;  %v1195_v36 = vld [vmem:[#allocation8 + $0xb0] sm:$0xff]  ;;  %v758_v11 = vld [vmem:[#allocation7 + $0x278] sm:$0xff] }
  0xbe   :  { %7472 = vmatpush1.bf16.msra.mxu1 %v7471_v44  ;;  %667 = vmatmul.mubr.f32.vlgmr.msra.gmra.mrb[6].mxu0 %v8538_v27  ;;  %v1177_v44 = vld [vmem:[#allocation8 + $0x20] sm:$0xff]  ;;  %v717_v58 = vld [vmem:[#allocation7 + $0x130] sm:$0xff]  ;;  %v1212_v13 = vld [vmem:[#allocation8 + $0x138] sm:$0xff] }
  0xbf   :  { %7474 = vmatprep.subr.bf16.mxu1 %v7473_v49  ;;  %7428 = vmatpush1.bf16.msra.mxu0 %v7427_v4  ;;  %v7441_v49 = vpack.c.bf16 %v754_v41, %v746_v40  ;;  %v7527_v55 = vpack.c.bf16 %v1179_v48, %v1177_v44  ;;  %v1200_v40 = vld [vmem:[#allocation8 + $0xd8] sm:$0xff]  ;;  %v7491_v41 = vpack.c.bf16 %v693_v34, %v685_v33  ;;  %v1199_v48 = vld [vmem:[#allocation8 + $0xd0] sm:$0xff] }
  0xc0   :  { %672 = vmatprep.mubr.f32.mxu0 %v8385_v1  ;;  %7430 = vmatprep.subr.bf16.mxu0 %v7429_v7  ;;  %v777_v7 = vld [vmem:[#allocation7 + $0x310] sm:$0xff]  ;;  %v7493_v44 = vpack.c.bf16 %v710_v38, %v702_v37  ;;  %v1218_v37 = vld [vmem:[#allocation8 + $0x168] sm:$0xff]  ;;  %v1220_v38 = vld [vmem:[#allocation8 + $0x178] sm:$0xff] }
  0xc1   :  { %v7451_v15 = vpack.c.bf16 %v785_v8, %v777_v7  ;;  %v725_v59 = vld [vmem:[#allocation7 + $0x170] sm:$0xff]  ;;  %v7553_v8 = vpack.c.bf16 %v1208_v2, %v1206_v0 }
  0xc2   :  { %7476 = vmatpush1.bf16.msra.mxu1 %v7475_v56  ;;  %673 = vmatmul.mubr.f32.gmra.mrb[8].mxu0 %v8546_v20  ;;  %v1181_v56 = vld [vmem:[#allocation8 + $0x40] sm:$0xff]  ;;  %v741_v7 = vld [vmem:[#allocation7 + $0x1f0] sm:$0xff] }
  0xc3   :  { %7478 = vmatprep.subr.bf16.mxu1 %v7477_v61  ;;  %7432 = vmatpush1.bf16.msra.mxu0 %v7431_v16  ;;  %v1183_v61 = vld [vmem:[#allocation8 + $0x50] sm:$0xff] }
  0xc4   :  { %990 = vmatprep.mubr.f32.mxu0 %v8385_v1  ;;  %7434 = vmatprep.subr.bf16.mxu0 %v7433_v19  ;;  %v7531_v4 = vpack.c.bf16 %v1183_v61, %v1181_v56  ;;  %v793_v19 = vld [vmem:[#allocation7 + $0x390] sm:$0xff]  ;;  %v1201_v56 = vld [vmem:[#allocation8 + $0xe0] sm:$0xff] }
  0xc5   :  { %v7455_v29 = vpack.c.bf16 %v801_v21, %v793_v19  ;;  %v1203_v61 = vld [vmem:[#allocation8 + $0xf0] sm:$0xff]  ;;  %v7557_v19 = vpack.c.bf16 %v1212_v13, %v1210_v12 }
  0xc6   :  { %7480 = vmatpush1.bf16.msra.mxu1 %v7479_v5  ;;  %v1185_v5 = vld [vmem:[#allocation8 + $0x60] sm:$0xff]  ;;  %v1211_v21 = vld [vmem:[#allocation8 + $0x130] sm:$0xff] }
  0xc7   :  { %7482 = vmatprep.subr.bf16.mxu1 %v7481_v10  ;;  %7436 = vmatpush1.bf16.msra.mxu0 %v7435_v30  ;;  %v1187_v10 = vld [vmem:[#allocation8 + $0x70] sm:$0xff] }
  0xc8   :  { %7438 = vmatprep.subr.bf16.mxu0 %v7437_v32  ;;  %v7535_v16 = vpack.c.bf16 %v1187_v10, %v1185_v5  ;;  %v7489_v32 = vpack.c.bf16 %v694_v25, %v686_v24  ;;  %v7501_v5 = vpack.c.bf16 %v742_v63, %v734_v62  ;;  %v750_v10 = vld [vmem:[#allocation7 + $0x238] sm:$0xff]  ;;  %v1214_v24 = vld [vmem:[#allocation8 + $0x148] sm:$0xff]  ;;  %v1215_v34 = vld [vmem:[#allocation8 + $0x150] sm:$0xff] }
  0xc9   :  { %v1216_v25 = vld [vmem:[#allocation8 + $0x158] sm:$0xff]  ;;  %v1226_v62 = vld [vmem:[#allocation8 + $0x1a8] sm:$0xff] }
  0xca   :  { %7484 = vmatpush1.bf16.msra.mxu1 %v7483_v17  ;;  %v1189_v17 = vld [vmem:[#allocation8 + $0x80] sm:$0xff]  ;;  %v7561_v33 = vpack.c.bf16 %v1216_v25, %v1214_v24  ;;  %v1228_v63 = vld [vmem:[#allocation8 + $0x1b8] sm:$0xff]  ;;  %v1759_v24 = vld [vmem:[%s9368_s11 + $0x30] sm:$0xff] }
  0xcb   :  { %7486 = vmatprep.subr.bf16.mxu1 %v7485_v23  ;;  %7440 = vmatpush1.bf16.msra.mxu0 %v7439_v42  ;;  %v1191_v23 = vld [vmem:[#allocation8 + $0x90] sm:$0xff] }
  0xcc   :  { %7442 = vmatprep.subr.bf16.mxu0 %v7441_v49  ;;  %v7539_v30 = vpack.c.bf16 %v1191_v23, %v1189_v17  ;;  %v718_v49 = vld [vmem:[#allocation7 + $0x138] sm:$0xff]  ;;  %v749_v17 = vld [vmem:[#allocation7 + $0x230] sm:$0xff] }
  0xcd   :  { %v774_v23 = vld [vmem:[#allocation7 + $0x2f8] sm:$0xff] }
  0xce   :  { %7488 = vmatpush1.bf16.msra.mxu1 %v7487_v31  ;;  %v1193_v31 = vld [vmem:[#allocation8 + $0xa0] sm:$0xff]  ;;  %v1760_v25 = vld [vmem:[%s9368_s11 + $0x38] sm:$0xff] }
  0xcf   :  { %7522 = vmatprep.subr.bf16.mxu1 %v7521_v35  ;;  %7444 = vmatpush1.bf16.msra.mxu0 %v7443_v54  ;;  %v7541_v35 = vpack.c.bf16 %v1196_v28, %v1194_v26  ;;  %v7543_v42 = vpack.c.bf16 %v1195_v36, %v1193_v31  ;;  %v7495_v54 = vpack.c.bf16 %v709_v46, %v701_v45  ;;  %v765_v31 = vld [vmem:[#allocation7 + $0x2b0] sm:$0xff]  ;;  %v790_v36 = vld [vmem:[#allocation7 + $0x378] sm:$0xff] }
  0xd0   :  { %7446 = vmatprep.subr.bf16.mxu0 %v7445_v57  ;;  %v7497_v57 = vpack.c.bf16 %v726_v50, %v718_v49  ;;  %v7565_v45 = vpack.c.bf16 %v1220_v38, %v1218_v37  ;;  %v1219_v46 = vld [vmem:[#allocation8 + $0x170] sm:$0xff]  ;;  %v1222_v49 = vld [vmem:[#allocation8 + $0x188] sm:$0xff]  ;;  %v1224_v50 = vld [vmem:[#allocation8 + $0x198] sm:$0xff] }
  0xd1   :  { %1068 = vmatmul.mubr.f32.vlgmr.msra.gmra.mrb[12].mxu1 %v8538_v27  ;;  %v1158_v27 = vld [vmem:[%s9358_s1 + $0x8] sm:$0xff]  ;;  %v1244_v37 = vld [vmem:[#allocation8 + $0x238] sm:$0xff] }
  0xd2   :  { %7524 = vmatpush1.bf16.msra.mxu1 %v7523_v43  ;;  %1073 = vmatprep.mubr.f32.mxu1 %v8385_v1  ;;  %v1197_v43 = vld [vmem:[#allocation8 + $0xc0] sm:$0xff] }
  0xd3   :  { %7526 = vmatprep.subr.bf16.mxu1 %v7525_v47  ;;  %7448 = vmatpush1.bf16.msra.mxu0 %v7447_v3  ;;  %v7545_v47 = vpack.c.bf16 %v1200_v40, %v1198_v39  ;;  %v7551_v3 = vpack.c.bf16 %v1203_v61, %v1201_v56  ;;  %v797_v56 = vld [vmem:[#allocation7 + $0x3b0] sm:$0xff]  ;;  %v1754_v61 = vld [vmem:[%s9368_s11 + $0x8] sm:$0xff] }
  0xd4   :  { %7450 = vmatprep.subr.bf16.mxu0 %v7449_v6  ;;  %v733_v6 = vld [vmem:[#allocation7 + $0x1b0] sm:$0xff] }
  0xd5   :  { %1074 = vmatmul.mubr.f32.gmra.mrb[14].mxu1 %v8546_v20 }
  0xd6   :  { %7528 = vmatpush1.bf16.msra.mxu1 %v7527_v55  ;;  %1505 = vmatprep.mubr.f32.mxu1 %v1158_v27  ;;  %v7547_v55 = vpack.c.bf16 %v1199_v48, %v1197_v43  ;;  %v7499_v27 = vpack.c.bf16 %v725_v59, %v717_v58  ;;  %v781_v43 = vld [vmem:[#allocation7 + $0x330] sm:$0xff]  ;;  %v806_v48 = vld [vmem:[#allocation7 + $0x3f8] sm:$0xff]  ;;  %v7569_v58 = vpack.c.bf16 %v1224_v50, %v1222_v49  ;;  %v1245_v49 = vld [vmem:[#allocation8 + $0x240] sm:$0xff] }
  0xd7   :  { %7530 = vmatprep.subr.bf16.mxu1 %v7529_v60  ;;  %7452 = vmatpush1.bf16.msra.mxu0 %v7451_v15  ;;  %v7549_v60 = vpack.c.bf16 %v1204_v52, %v1202_v51  ;;  %v1209_v15 = vld [vmem:[#allocation8 + $0x120] sm:$0xff]  ;;  %v1223_v59 = vld [vmem:[#allocation8 + $0x190] sm:$0xff] }
  0xd8   :  { %7454 = vmatprep.subr.bf16.mxu0 %v7453_v18  ;;  %v757_v18 = vld [vmem:[#allocation7 + $0x270] sm:$0xff]  ;;  %v7559_v28 = vpack.c.bf16 %v1211_v21, %v1209_v15  ;;  %v1758_v15 = vld [vmem:[%s9368_s11 + $0x28] sm:$0xff] }
  0xd9   :  { %v7507_v26 = vpack.c.bf16 %v757_v18, %v749_v17  ;;  %v1236_v17 = vld [vmem:[#allocation8 + $0x1f8] sm:$0xff] }
  0xda   :  { %7532 = vmatpush1.bf16.msra.mxu1 %v7531_v4  ;;  %v1205_v4 = vld [vmem:[#allocation8 + $0x100] sm:$0xff] }
  0xdb   :  { %7534 = vmatprep.subr.bf16.mxu1 %v7533_v9  ;;  %7456 = vmatpush1.bf16.msra.mxu0 %v7455_v29  ;;  %v1207_v9 = vld [vmem:[#allocation8 + $0x110] sm:$0xff]  ;;  %v1213_v29 = vld [vmem:[#allocation8 + $0x140] sm:$0xff] }
  0xdc   :  { %7490 = vmatprep.subr.bf16.mxu0 %v7489_v32  ;;  %v7555_v14 = vpack.c.bf16 %v1207_v9, %v1205_v4  ;;  %v773_v32 = vld [vmem:[#allocation7 + $0x2f0] sm:$0xff]  ;;  %v7563_v40 = vpack.c.bf16 %v1215_v34, %v1213_v29  ;;  %v7573_v4 = vpack.c.bf16 %v1228_v63, %v1226_v62  ;;  %v1232_v9 = vld [vmem:[#allocation8 + $0x1d8] sm:$0xff]  ;;  %v1249_v62 = vld [vmem:[#allocation8 + $0x260] sm:$0xff] }
  0xdd   :  { %v7511_v39 = vpack.c.bf16 %v773_v32, %v765_v31  ;;  %v7789_v31 = vpack.c.bf16 %v1760_v25, %v1759_v24  ;;  %v1761_v34 = vld [vmem:[%s9368_s11 + $0x40] sm:$0xff] }
  0xde   :  { %7536 = vmatpush1.bf16.msra.mxu1 %v7535_v16  ;;  %991 = vmatmul.mubr.f32.vlgmr.msra.gmra.mrb[10].mxu0 %v8577_v53  ;;  %v7505_v16 = vpack.c.bf16 %v758_v11, %v750_v10  ;;  %v1229_v11 = vld [vmem:[#allocation8 + $0x1c0] sm:$0xff]  ;;  %v1268_v24 = vld [vmem:[#allocation8 + $0x2f8] sm:$0xff] }
  0xdf   :  { %7538 = vmatprep.subr.bf16.mxu1 %v7537_v22  ;;  %7492 = vmatpush1.bf16.msra.mxu0 %v7491_v41  ;;  %v766_v22 = vld [vmem:[#allocation7 + $0x2b8] sm:$0xff]  ;;  %v1217_v41 = vld [vmem:[#allocation8 + $0x160] sm:$0xff] }
  0xe0   :  { %996 = vmatprep.mubr.f32.mxu0 %v8385_v1  ;;  %7494 = vmatprep.subr.bf16.mxu0 %v7493_v44  ;;  %v789_v44 = vld [vmem:[#allocation7 + $0x370] sm:$0xff]  ;;  %v7567_v52 = vpack.c.bf16 %v1219_v46, %v1217_v41  ;;  %v1248_v46 = vld [vmem:[#allocation8 + $0x258] sm:$0xff] }
  0xe1   :  { %v7515_v51 = vpack.c.bf16 %v789_v44, %v781_v43  ;;  %v1763_v43 = vld [vmem:[%s9368_s11 + $0x50] sm:$0xff]  ;;  %v1764_v44 = vld [vmem:[%s9368_s11 + $0x58] sm:$0xff] }
  0xe2   :  { %7540 = vmatpush1.bf16.msra.mxu1 %v7539_v30  ;;  %997 = vmatmul.mubr.f32.gmra.mrb[12].mxu0 %v8546_v20  ;;  %v7503_v20 = vpack.c.bf16 %v741_v7, %v733_v6  ;;  %v7509_v30 = vpack.c.bf16 %v774_v23, %v766_v22  ;;  %v1755_v6 = vld [vmem:[%s9368_s11 + $0x10] sm:$0xff]  ;;  %v1756_v7 = vld [vmem:[%s9368_s11 + $0x18] sm:$0xff]  ;;  %v7797_v50 = vpack.c.bf16 %v1764_v44, %v1763_v43  ;;  %v1277_v44 = vld [vmem:[#allocation8 + $0x340] sm:$0xff] }
  0xe3   :  { %7542 = vmatprep.subr.bf16.mxu1 %v7541_v35  ;;  %7496 = vmatpush1.bf16.msra.mxu0 %v7495_v54  ;;  %v782_v35 = vld [vmem:[#allocation7 + $0x338] sm:$0xff]  ;;  %v1221_v54 = vld [vmem:[#allocation8 + $0x180] sm:$0xff]  ;;  %v7781_v12 = vpack.c.bf16 %v1756_v7, %v1755_v6  ;;  %v1235_v23 = vld [vmem:[#allocation8 + $0x1f0] sm:$0xff] }
  0xe4   :  { %1144 = vmatprep.mubr.f32.mxu0 %v8385_v1  ;;  %7498 = vmatprep.subr.bf16.mxu0 %v7497_v57  ;;  %v805_v57 = vld [vmem:[#allocation7 + $0x3f0] sm:$0xff]  ;;  %v7571_v2 = vpack.c.bf16 %v1223_v59, %v1221_v54 }
  0xe5   :  { %v7519_v0 = vpack.c.bf16 %v805_v57, %v797_v56  ;;  %v1247_v54 = vld [vmem:[#allocation8 + $0x250] sm:$0xff]  ;;  %v1766_v56 = vld [vmem:[%s9368_s11 + $0x68] sm:$0xff] }
  0xe6   :  { %7544 = vmatpush1.bf16.msra.mxu1 %v7543_v42  ;;  %v7513_v42 = vpack.c.bf16 %v790_v36, %v782_v35  ;;  %v1762_v35 = vld [vmem:[%s9368_s11 + $0x48] sm:$0xff]  ;;  %v1160_v59 = vld [vmem:[%s9358_s1 + $0x18] sm:$0xff] }
  0xe7   :  { %7546 = vmatprep.subr.bf16.mxu1 %v7545_v47  ;;  %7500 = vmatpush1.bf16.msra.mxu0 %v7499_v27  ;;  %v798_v47 = vld [vmem:[#allocation7 + $0x3b8] sm:$0xff]  ;;  %v1225_v27 = vld [vmem:[#allocation8 + $0x1a0] sm:$0xff]  ;;  %v1242_v36 = vld [vmem:[#allocation8 + $0x228] sm:$0xff] }
  0xe8   :  { %7502 = vmatprep.subr.bf16.mxu0 %v7501_v5  ;;  %v1227_v5 = vld [vmem:[#allocation8 + $0x1b0] sm:$0xff]  ;;  %v7589_v41 = vpack.c.bf16 %v1244_v37, %v1242_v36  ;;  %v1250_v57 = vld [vmem:[#allocation8 + $0x268] sm:$0xff]  ;;  %v1276_v37 = vld [vmem:[#allocation8 + $0x338] sm:$0xff] }
  0xe9   :  { %v7575_v10 = vpack.c.bf16 %v1227_v5, %v1225_v27  ;;  %v1767_v27 = vld [vmem:[%s9368_s11 + $0x70] sm:$0xff]  ;;  %v1256_v5 = vld [vmem:[#allocation8 + $0x298] sm:$0xff] }
  0xea   :  { %7548 = vmatpush1.bf16.msra.mxu1 %v7547_v55  ;;  %v7517_v55 = vpack.c.bf16 %v806_v48, %v798_v47  ;;  %v1166_v47 = vld [vmem:[%s9358_s1 + $0x48] sm:$0xff] }
  0xeb   :  { %7550 = vmatprep.subr.bf16.mxu1 %v7549_v60  ;;  %7504 = vmatpush1.bf16.msra.mxu0 %v7503_v20  ;;  %v8586_v60 = vld [vmem:[%s9368_s11] sm:$0xff]  ;;  %v1231_v20 = vld [vmem:[#allocation8 + $0x1d0] sm:$0xff]  ;;  %v1274_v36 = vld [vmem:[#allocation8 + $0x328] sm:$0xff] }
  0xec   :  { %7506 = vmatprep.subr.bf16.mxu0 %v7505_v16  ;;  %v1234_v16 = vld [vmem:[#allocation8 + $0x1e8] sm:$0xff]  ;;  %v7579_v18 = vpack.c.bf16 %v1231_v20, %v1229_v11 }
  0xed   :  { %v7581_v22 = vpack.c.bf16 %v1236_v17, %v1234_v16  ;;  %v1258_v11 = vld [vmem:[#allocation8 + $0x2a8] sm:$0xff]  ;;  %v1264_v17 = vld [vmem:[#allocation8 + $0x2d8] sm:$0xff] }
  0xee   :  { %7552 = vmatpush1.bf16.msra.mxu1 %v7551_v3  ;;  %v7777_v3 = vpack.c.bf16 %v1754_v61, %v8586_v60  ;;  %v7595_v61 = vpack.c.bf16 %v1247_v54, %v1245_v49  ;;  %v1262_v16 = vld [vmem:[#allocation8 + $0x2c8] sm:$0xff] }
  0xef   :  { %7554 = vmatprep.subr.bf16.mxu1 %v7553_v8  ;;  %7508 = vmatpush1.bf16.msra.mxu0 %v7507_v26  ;;  %v1230_v8 = vld [vmem:[#allocation8 + $0x1c8] sm:$0xff] }
  0xf0   :  { %7510 = vmatprep.subr.bf16.mxu0 %v7509_v30  ;;  %v7577_v13 = vpack.c.bf16 %v1232_v9, %v1230_v8  ;;  %v1238_v26 = vld [vmem:[#allocation8 + $0x208] sm:$0xff]  ;;  %v1237_v30 = vld [vmem:[#allocation8 + $0x200] sm:$0xff] }
  0xf1   :  { %v1253_v9 = vld [vmem:[#allocation8 + $0x280] sm:$0xff]  ;;  %v1286_v54 = vld [vmem:[#allocation8 + $0x388] sm:$0xff] }
  0xf2   :  { %7556 = vmatpush1.bf16.msra.mxu1 %v7555_v14  ;;  %v1757_v14 = vld [vmem:[%s9368_s11 + $0x20] sm:$0xff] }
  0xf3   :  { %7558 = vmatprep.subr.bf16.mxu1 %v7557_v19  ;;  %7512 = vmatpush1.bf16.msra.mxu0 %v7511_v39  ;;  %v1233_v19 = vld [vmem:[#allocation8 + $0x1e0] sm:$0xff]  ;;  %v7785_v21 = vpack.c.bf16 %v1758_v15, %v1757_v14  ;;  %v1259_v15 = vld [vmem:[#allocation8 + $0x2b0] sm:$0xff] }
  0xf4   :  { %7514 = vmatprep.subr.bf16.mxu0 %v7513_v42  ;;  %v7583_v29 = vpack.c.bf16 %v1235_v23, %v1233_v19  ;;  %v1241_v39 = vld [vmem:[#allocation8 + $0x220] sm:$0xff]  ;;  %v1243_v42 = vld [vmem:[#allocation8 + $0x230] sm:$0xff]  ;;  %v7609_v19 = vpack.c.bf16 %v1264_v17, %v1262_v16  ;;  %v1266_v23 = vld [vmem:[#allocation8 + $0x2e8] sm:$0xff] }
  0xf5   :  { %v7591_v48 = vpack.c.bf16 %v1243_v42, %v1241_v39  ;;  %v1257_v14 = vld [vmem:[#allocation8 + $0x2a0] sm:$0xff]  ;;  %v1275_v39 = vld [vmem:[#allocation8 + $0x330] sm:$0xff] }
  0xf6   :  { %7560 = vmatpush1.bf16.msra.mxu1 %v7559_v28  ;;  %v1240_v28 = vld [vmem:[#allocation8 + $0x218] sm:$0xff] }
  0xf7   :  { %7562 = vmatprep.subr.bf16.mxu1 %v7561_v33  ;;  %7516 = vmatpush1.bf16.msra.mxu0 %v7515_v51  ;;  %v7585_v32 = vpack.c.bf16 %v1240_v28, %v1238_v26  ;;  %v1239_v33 = vld [vmem:[#allocation8 + $0x210] sm:$0xff]  ;;  %v1165_v51 = vld [vmem:[%s9358_s1 + $0x40] sm:$0xff]  ;;  %v7613_v26 = vpack.c.bf16 %v1268_v24, %v1266_v23 }
  0xf8   :  { %7518 = vmatprep.subr.bf16.mxu0 %v7517_v55  ;;  %v7587_v38 = vpack.c.bf16 %v1239_v33, %v1237_v30  ;;  %v1765_v55 = vld [vmem:[%s9368_s11 + $0x60] sm:$0xff]  ;;  %v1270_v30 = vld [vmem:[#allocation8 + $0x308] sm:$0xff] }
  0xf9   :  { %v7801_v63 = vpack.c.bf16 %v1766_v56, %v1765_v55  ;;  %v1265_v28 = vld [vmem:[#allocation8 + $0x2e0] sm:$0xff]  ;;  %v1288_v55 = vld [vmem:[#allocation8 + $0x398] sm:$0xff] }
  0xfa   :  { %7564 = vmatpush1.bf16.msra.mxu1 %v7563_v40  ;;  %v7793_v40 = vpack.c.bf16 %v1762_v35, %v1761_v34  ;;  %v1269_v34 = vld [vmem:[#allocation8 + $0x300] sm:$0xff]  ;;  %v1271_v35 = vld [vmem:[#allocation8 + $0x310] sm:$0xff]  ;;  %v1304_v23 = vld [vmem:[#allocation8 + $0x418] sm:$0xff] }
  0xfb   :  { %7566 = vmatprep.subr.bf16.mxu1 %v7565_v45  ;;  %7520 = vmatpush1.bf16.msra.mxu0 %v7519_v0  ;;  %v1246_v45 = vld [vmem:[#allocation8 + $0x248] sm:$0xff] }
  0xfc   :  { %7778 = vmatprep.subr.bf16.mxu0 %v7777_v3 }
  0xfe   :  { %7568 = vmatpush1.bf16.msra.mxu1 %v7567_v52  ;;  %1145 = vmatmul.mubr.f32.vlgmr.msra.gmra.mrb[14].mxu0 %v8577_v53  ;;  %v7593_v52 = vpack.c.bf16 %v1248_v46, %v1246_v45  ;;  %v1279_v45 = vld [vmem:[#allocation8 + $0x350] sm:$0xff]  ;;  %v1282_v46 = vld [vmem:[#allocation8 + $0x368] sm:$0xff] }
  0xff   :  { %7570 = vmatprep.subr.bf16.mxu1 %v7569_v58  ;;  %7780 = vmatpush3.bf16.msra.mxu0 %v7777_v3  ;;  %v1252_v58 = vld [vmem:[#allocation8 + $0x278] sm:$0xff]  ;;  %v7627_v49 = vpack.c.bf16 %v1279_v45, %v1277_v44  ;;  %v1311_v44 = vld [vmem:[#allocation8 + $0x450] sm:$0xff]  ;;  %v1162_v45 = vld [vmem:[%s9358_s1 + $0x28] sm:$0xff] }
 0x100   :  { %1150 = vmatprep.mubr.f32.mxu0 %v8385_v1  ;;  %7782 = vmatprep.subr.bf16.mxu0 %v7781_v12  ;;  %v8615_v1 = vld [vmem:[%s9357_s0 + $0x8] sm:$0xff]  ;;  %v7597_v0 = vpack.c.bf16 %v1252_v58, %v1250_v57  ;;  %v1768_v3 = vld [vmem:[%s9368_s11 + $0x78] sm:$0xff]  ;;  %v7633_v58 = vpack.c.bf16 %v1288_v55, %v1286_v54 }
 0x101   :  { %v7805_v7 = vpack.c.bf16 %v1768_v3, %v1767_v27  ;;  %v8664_v27 = vld [vmem:[%s9363_s6] sm:$0xff]  ;;  %v1318_v55 = vld [vmem:[#allocation8 + $0x488] sm:$0xff] }
 0x102   :  { %7572 = vmatpush1.bf16.msra.mxu1 %v7571_v2  ;;  %1151 = vmatmul.mubr.f32.gmra.mrb[16].mxu0 %v8615_v1  ;;  %v1251_v2 = vld [vmem:[#allocation8 + $0x270] sm:$0xff] }
 0x103   :  { %7574 = vmatprep.subr.bf16.mxu1 %v7573_v4  ;;  %7784 = vmatpush3.bf16.msra.mxu0 %v7781_v12  ;;  %v1254_v4 = vld [vmem:[#allocation8 + $0x288] sm:$0xff]  ;;  %v7599_v6 = vpack.c.bf16 %v1251_v2, %v1249_v62  ;;  %v1260_v12 = vld [vmem:[#allocation8 + $0x2b8] sm:$0xff] }
 0x104   :  { %6926 = vmatprep.mubr.f32.mxu0 %v8577_v53  ;;  %7786 = vmatprep.subr.bf16.mxu0 %v7785_v21  ;;  %v1157_v53 = vld [vmem:[%s9358_s1] sm:$0xff]  ;;  %v7601_v8 = vpack.c.bf16 %v1256_v5, %v1254_v4  ;;  %v7605_v20 = vpack.c.bf16 %v1260_v12, %v1258_v11  ;;  %v1290_v62 = vld [vmem:[#allocation8 + $0x3a8] sm:$0xff]  ;;  %v1291_v5 = vld [vmem:[#allocation8 + $0x3b0] sm:$0xff] }
 0x105   :  { %v1289_v4 = vld [vmem:[#allocation8 + $0x3a0] sm:$0xff]  ;;  %v1295_v12 = vld [vmem:[#allocation8 + $0x3d0] sm:$0xff] }
 0x106   :  { %7576 = vmatpush1.bf16.msra.mxu1 %v7575_v10  ;;  %v1255_v10 = vld [vmem:[#allocation8 + $0x290] sm:$0xff]  ;;  %v1293_v11 = vld [vmem:[#allocation8 + $0x3c0] sm:$0xff] }
 0x107   :  { %7578 = vmatprep.subr.bf16.mxu1 %v7577_v13  ;;  %7788 = vmatpush3.bf16.msra.mxu0 %v7785_v21  ;;  %v7603_v13 = vpack.c.bf16 %v1255_v10, %v1253_v9  ;;  %v1261_v21 = vld [vmem:[#allocation8 + $0x2c0] sm:$0xff]  ;;  %v7639_v9 = vpack.c.bf16 %v1291_v5, %v1289_v4  ;;  %v7643_v17 = vpack.c.bf16 %v1295_v12, %v1293_v11  ;;  %v1322_v5 = vld [vmem:[#allocation8 + $0x4a8] sm:$0xff]  ;;  %v1323_v11 = vld [vmem:[#allocation8 + $0x4b0] sm:$0xff] }
 0x108   :  { %7790 = vmatprep.subr.bf16.mxu0 %v7789_v31  ;;  %v1326_v12 = vld [vmem:[#allocation8 + $0x4c8] sm:$0xff] }
 0x10a   :  { %7580 = vmatpush1.bf16.msra.mxu1 %v7579_v18  ;;  %v7607_v18 = vpack.c.bf16 %v1259_v15, %v1257_v14  ;;  %v1300_v14 = vld [vmem:[#allocation8 + $0x3f8] sm:$0xff] }
 0x10b   :  { %7582 = vmatprep.subr.bf16.mxu1 %v7581_v22  ;;  %7792 = vmatpush3.bf16.msra.mxu0 %v7789_v31  ;;  %v1263_v22 = vld [vmem:[#allocation8 + $0x2d0] sm:$0xff]  ;;  %v1272_v31 = vld [vmem:[#allocation8 + $0x318] sm:$0xff] }
 0x10c   :  { %7794 = vmatprep.subr.bf16.mxu0 %v7793_v40  ;;  %v7611_v25 = vpack.c.bf16 %v1263_v22, %v1261_v21  ;;  %v7617_v33 = vpack.c.bf16 %v1272_v31, %v1270_v30  ;;  %v1299_v21 = vld [vmem:[#allocation8 + $0x3f0] sm:$0xff]  ;;  %v1302_v22 = vld [vmem:[#allocation8 + $0x408] sm:$0xff]  ;;  %v1301_v30 = vld [vmem:[#allocation8 + $0x400] sm:$0xff] }
 0x10d   :  { %v1303_v31 = vld [vmem:[#allocation8 + $0x410] sm:$0xff] }
 0x10e   :  { %7584 = vmatpush1.bf16.msra.mxu1 %v7583_v29  ;;  %v1267_v29 = vld [vmem:[#allocation8 + $0x2f0] sm:$0xff] }
 0x10f   :  { %7586 = vmatprep.subr.bf16.mxu1 %v7585_v32  ;;  %7796 = vmatpush3.bf16.msra.mxu0 %v7793_v40  ;;  %v7615_v32 = vpack.c.bf16 %v1267_v29, %v1265_v28  ;;  %v1278_v40 = vld [vmem:[#allocation8 + $0x348] sm:$0xff]  ;;  %v7649_v29 = vpack.c.bf16 %v1304_v23, %v1302_v22  ;;  %v1332_v23 = vld [vmem:[#allocation8 + $0x4f8] sm:$0xff] }
 0x110   :  { %7798 = vmatprep.subr.bf16.mxu0 %v7797_v50  ;;  %v1330_v22 = vld [vmem:[#allocation8 + $0x4e8] sm:$0xff] }
 0x111   :  { %1506 = vmatmul.mubr.f32.vlgmr.msra.gmra.mrb[16].mxu1 %v1157_v53  ;;  %v7619_v53 = vpack.c.bf16 %v1271_v35, %v1269_v34  ;;  %v1159_v34 = vld [vmem:[%s9358_s1 + $0x10] sm:$0xff]  ;;  %v7651_v35 = vpack.c.bf16 %v1303_v31, %v1301_v30  ;;  %v7677_v30 = vpack.c.bf16 %v1332_v23, %v1330_v22  ;;  %v1329_v31 = vld [vmem:[#allocation8 + $0x4e0] sm:$0xff] }
 0x112   :  { %7588 = vmatpush1.bf16.msra.mxu1 %v7587_v38  ;;  %1511 = vmatprep.mubr.f32.mxu1 %v1166_v47  ;;  %v1273_v38 = vld [vmem:[#allocation8 + $0x320] sm:$0xff]  ;;  %v1284_v47 = vld [vmem:[#allocation8 + $0x378] sm:$0xff]  ;;  %v1359_v23 = vld [vmem:[#allocation8 + $0x5d0] sm:$0xff] }
 0x113   :  { %7590 = vmatprep.subr.bf16.mxu1 %v7589_v41  ;;  %7800 = vmatpush3.bf16.msra.mxu0 %v7797_v50  ;;  %v1280_v41 = vld [vmem:[#allocation8 + $0x358] sm:$0xff]  ;;  %v7623_v42 = vpack.c.bf16 %v1275_v39, %v1273_v38  ;;  %v7629_v50 = vpack.c.bf16 %v1284_v47, %v1282_v46  ;;  %v1310_v38 = vld [vmem:[#allocation8 + $0x448] sm:$0xff] }
 0x114   :  { %7802 = vmatprep.subr.bf16.mxu0 %v7801_v63  ;;  %v7625_v43 = vpack.c.bf16 %v1280_v41, %v1278_v40  ;;  %v1312_v39 = vld [vmem:[#allocation8 + $0x458] sm:$0xff]  ;;  %v1167_v41 = vld [vmem:[%s9358_s1 + $0x50] sm:$0xff] }
 0x115   :  { %1512 = vmatmul.mubr.f32.gmra.mrb[18].mxu1 %v1165_v51  ;;  %v1281_v51 = vld [vmem:[#allocation8 + $0x360] sm:$0xff]  ;;  %v1314_v46 = vld [vmem:[#allocation8 + $0x468] sm:$0xff]  ;;  %v1316_v47 = vld [vmem:[#allocation8 + $0x478] sm:$0xff] }
 0x116   :  { %7592 = vmatpush1.bf16.msra.mxu1 %v7591_v48  ;;  %1582 = vmatprep.mubr.f32.mxu1 %v1160_v59  ;;  %v331_v48 = vlaneseq  ;;  %v1285_v59 = vld [vmem:[#allocation8 + $0x380] sm:$0xff] }
 0x117   :  { %7594 = vmatprep.subr.bf16.mxu1 %v7593_v52  ;;  %7804 = vmatpush3.bf16.msra.mxu0 %v7801_v63  ;;  %v1283_v52 = vld [vmem:[#allocation8 + $0x370] sm:$0xff]  ;;  %v1292_v63 = vld [vmem:[#allocation8 + $0x3b8] sm:$0xff] }
 0x118   :  { %7806 = vmatprep.subr.bf16.mxu0 %v7805_v7  ;;  %v8656_v56 = vshrl.u32 %v331_v48, 7  ;;  %v7631_v57 = vpack.c.bf16 %v1283_v52, %v1281_v51  ;;  %v7637_v3 = vpack.c.bf16 %v1292_v63, %v1290_v62  ;;  %v6515_v48 = vld [vmem:[%s9361_s4] ss:$0 sm:$0xff]  ;;  %v1313_v51 = vld [vmem:[#allocation8 + $0x460] sm:$0xff]  ;;  %v1315_v52 = vld [vmem:[#allocation8 + $0x470] sm:$0xff]  ;;  %s8395_s4 = smov 56  }
 0x119   :  { %v7663_v62 = vpack.c.bf16 %v1315_v52, %v1313_v51  ;;  %v1343_v51 = vld [vmem:[#allocation8 + $0x550] sm:$0xff]  ;;  %v1346_v52 = vld [vmem:[#allocation8 + $0x568] sm:$0xff] }
 0x11a   :  { %7596 = vmatpush1.bf16.msra.mxu1 %v7595_v61  ;;  %v1287_v61 = vld [vmem:[#allocation8 + $0x390] sm:$0xff] }
 0x11b   :  { %7598 = vmatprep.subr.bf16.mxu1 %v7597_v0  ;;  %7808 = vmatpush3.bf16.msra.mxu0 %v7805_v7  ;;  %v8659_v0 = vsub.s32 0, %v8656_v56  ;;  %v7635_v2 = vpack.c.bf16 %v1287_v61, %v1285_v59  ;;  %v1296_v7 = vld [vmem:[#allocation8 + $0x3d8] sm:$0xff] }
 0x11e   :  { %7600 = vmatpush1.bf16.msra.mxu1 %v7599_v6  ;;  %6927 = vmatmul.mubr.f32.vlgmr.msra.gmra.mrb[18].mxu0 %v8615_v1  ;;  %v7621_v1 = vpack.c.bf16 %v1276_v37, %v1274_v36  ;;  %v1294_v6 = vld [vmem:[#allocation8 + $0x3c8] sm:$0xff]  ;;  %v1305_v37 = vld [vmem:[#allocation8 + $0x420] sm:$0xff] }
 0x11f   :  { %7602 = vmatprep.subr.bf16.mxu1 %v7601_v8  ;;  %v334_v8 = vrot.slane %v8664_v27, %v8659_v0  ;;  %v7641_v10 = vpack.c.bf16 %v1296_v7, %v1294_v6  ;;  %v1324_v6 = vld [vmem:[#allocation8 + $0x4b8] sm:$0xff] }
 0x122   :  { %7604 = vmatpush1.bf16.msra.mxu1 %v7603_v13 }
 0x123   :  { %7606 = vmatprep.subr.bf16.mxu1 %v7605_v20  ;;  %v1298_v20 = vld [vmem:[#allocation8 + $0x3e8] sm:$0xff] }
 0x126   :  { %7608 = vmatpush1.bf16.msra.mxu1 %v7607_v18  ;;  %v7645_v18 = vpack.c.bf16 %v1300_v14, %v1298_v20 }
 0x127   :  { %7610 = vmatprep.subr.bf16.mxu1 %v7609_v19  ;;  %v1297_v19 = vld [vmem:[#allocation8 + $0x3e0] sm:$0xff] }
 0x128   :  { %v7647_v28 = vpack.c.bf16 %v1299_v21, %v1297_v19  ;;  %v1327_v19 = vld [vmem:[#allocation8 + $0x4d0] sm:$0xff] }
 0x12a   :  { %7612 = vmatpush1.bf16.msra.mxu1 %v7611_v25 }
 0x12b   :  { %7614 = vmatprep.subr.bf16.mxu1 %v7613_v26 }
 0x12e   :  { %7616 = vmatpush1.bf16.msra.mxu1 %v7615_v32  ;;  %v1306_v32 = vld [vmem:[#allocation8 + $0x428] sm:$0xff] }
 0x12f   :  { %7618 = vmatprep.subr.bf16.mxu1 %v7617_v33  ;;  %v1308_v33 = vld [vmem:[#allocation8 + $0x438] sm:$0xff] }
 0x130   :  { %v7653_v36 = vpack.c.bf16 %v1308_v33, %v1306_v32  ;;  %v1331_v32 = vld [vmem:[#allocation8 + $0x4f0] sm:$0xff]  ;;  %v1334_v33 = vld [vmem:[#allocation8 + $0x508] sm:$0xff] }
 0x132   :  { %7620 = vmatpush1.bf16.msra.mxu1 %v7619_v53  ;;  %v1307_v53 = vld [vmem:[#allocation8 + $0x430] sm:$0xff] }
 0x133   :  { %7622 = vmatprep.subr.bf16.mxu1 %v7621_v1  ;;  %v1168_v1 = vld [vmem:[%s9358_s1 + $0x58] sm:$0xff]  ;;  %v7655_v40 = vpack.c.bf16 %v1307_v53, %v1305_v37  ;;  %v7679_v37 = vpack.c.bf16 %v1331_v32, %v1329_v31  ;;  %v345_v32 = vsub.s32 3, %v8656_v56 }
 0x136   :  { %7624 = vmatpush1.bf16.msra.mxu1 %v7623_v42  ;;  %v7657_v42 = vpack.c.bf16 %v1312_v39, %v1310_v38  ;;  %v1333_v38 = vld [vmem:[#allocation8 + $0x500] sm:$0xff]  ;;  %v1335_v39 = vld [vmem:[#allocation8 + $0x510] sm:$0xff] }
 0x137   :  { %7626 = vmatprep.subr.bf16.mxu1 %v7625_v43  ;;  %v1309_v43 = vld [vmem:[#allocation8 + $0x440] sm:$0xff] }
 0x13a   :  { %7628 = vmatpush1.bf16.msra.mxu1 %v7627_v49  ;;  %v7659_v49 = vpack.c.bf16 %v1311_v44, %v1309_v43  ;;  %v1337_v44 = vld [vmem:[#allocation8 + $0x520] sm:$0xff] }
 0x13b   :  { %7630 = vmatprep.subr.bf16.mxu1 %v7629_v50  ;;  %v7661_v50 = vpack.c.bf16 %v1316_v47, %v1314_v46  ;;  %v1342_v46 = vld [vmem:[#allocation8 + $0x548] sm:$0xff]  ;;  %v1344_v47 = vld [vmem:[#allocation8 + $0x558] sm:$0xff] }
 0x13e   :  { %7632 = vmatpush1.bf16.msra.mxu1 %v7631_v57  ;;  %v1320_v57 = vld [vmem:[#allocation8 + $0x498] sm:$0xff] }
 0x13f   :  { %7634 = vmatprep.subr.bf16.mxu1 %v7633_v58  ;;  %v7665_v63 = vpack.c.bf16 %v1320_v57, %v1318_v55 }
 0x142   :  { %7636 = vmatpush1.bf16.msra.mxu1 %v7635_v2  ;;  %v1317_v2 = vld [vmem:[#allocation8 + $0x480] sm:$0xff] }
 0x143   :  { %7638 = vmatprep.subr.bf16.mxu1 %v7637_v3  ;;  %v1319_v3 = vld [vmem:[#allocation8 + $0x490] sm:$0xff] }
 0x144   :  { %v437_v13 = vpop.f32.mrb[0].mxu1  ;;  %v7667_v7 = vpack.c.bf16 %v1319_v3, %v1317_v2  ;;  %v1350_v2 = vld [vmem:[#allocation8 + $0x588] sm:$0xff]  ;;  %v1352_v3 = vld [vmem:[#allocation8 + $0x598] sm:$0xff] }
 0x145   :  { %v8668_v15 = vadd.f32 %v437_v13, %v334_v8  ;;  %v8670_v16 = vpop.f32.mrb[1].mxu1  ;;  %v1328_v13 = vld [vmem:[#allocation8 + $0x4d8] sm:$0xff] }
 0x146   :  { %7640 = vmatpush1.bf16.msra.mxu1 %v7639_v9  ;;  %v7669_v9 = vpack.c.bf16 %v1324_v6, %v1322_v5  ;;  %v7697_v6 = vpack.c.bf16 %v1352_v3, %v1350_v2 }
 0x147   :  { %6933 = vmatprep.mubr.msk.f32.mxu0 %vm1851_vm0, %v8668_v15  ;;  %7642 = vmatprep.subr.bf16.mxu1 %v7641_v10  ;;  %v1321_v10 = vld [vmem:[#allocation8 + $0x4a0] sm:$0xff] }
 0x148   :  { %v443_v24 = vpop.f32.mrb[2].mxu1  ;;  %v7671_v14 = vpack.c.bf16 %v1323_v11, %v1321_v10  ;;  %v1354_v10 = vld [vmem:[#allocation8 + $0x5a8] sm:$0xff]  ;;  %v1356_v11 = vld [vmem:[#allocation8 + $0x5b8] sm:$0xff] }
 0x149   :  { %v8674_v25 = vadd.f32 %v443_v24, %v334_v8  ;;  %v8676_v26 = vpop.f32.mrb[3].mxu1  ;;  %v353_v8 = vsub.s32 5, %v8656_v56 }
 0x14a   :  { %7644 = vmatpush1.bf16.msra.mxu1 %v7643_v17  ;;  %v7673_v17 = vpack.c.bf16 %v1328_v13, %v1326_v12  ;;  %v1355_v13 = vld [vmem:[#allocation8 + $0x5b0] sm:$0xff] }
 0x14b   :  { %7646 = vmatprep.subr.bf16.mxu1 %v7645_v18  ;;  %2127 = vrot.lane.b32.xlu1 %v8674_v25, %s8377_s20  ;;  %v354_v20 = vrot.slane %v8664_v27, %v353_v8  ;;  %v1325_v18 = vld [vmem:[#allocation8 + $0x4c0] sm:$0xff] }
 0x14e   :  { %7648 = vmatpush1.bf16.msra.mxu1 %v7647_v28 }
 0x14f   :  { %7650 = vmatprep.subr.bf16.mxu1 %v7649_v29  ;;  %v7675_v29 = vpack.c.bf16 %v1327_v19, %v1325_v18  ;;  %v1357_v19 = vld [vmem:[#allocation8 + $0x5c0] sm:$0xff] }
 0x151   :  { %1583 = vmatmul.mubr.f32.vlgmr.msra.gmra.mrb[16].mxu1 %v1159_v34  ;;  %v6893_v54 = vpop.f32.mrb[0].mxu0  ;;  %v1336_v34 = vld [vmem:[#allocation8 + $0x518] sm:$0xff] }
 0x152   :  { %7652 = vmatpush1.bf16.msra.mxu1 %v7651_v35  ;;  %1588 = vmatprep.mubr.f32.mxu1 %v1168_v1  ;;  %v8695_v58 = vadd.f32 %v6893_v54, %v6515_v48  ;;  %v192_v59 = vpop.f32.mrb[1].mxu0  ;;  %v7681_v1 = vpack.c.bf16 %v1336_v34, %v1334_v33  ;;  %v1348_v54 = vld [vmem:[#allocation8 + $0x578] sm:$0xff]  ;;  %v8727_v33 = vsub.s32 1, %v8656_v56 }
 0x153   :  { %7654 = vmatprep.subr.bf16.mxu1 %v7653_v36  ;;  %v8697_v61 = vadd.f32 %v6515_v48, %v192_v59  ;;  %v7693_v59 = vpack.c.bf16 %v1348_v54, %v1346_v52  ;;  %v1366_v52 = vld [vmem:[#allocation8 + $0x608] sm:$0xff]  ;;  %v1368_v54 = vld [vmem:[#allocation8 + $0x618] sm:$0xff] }
 0x155   :  { %1589 = vmatmul.mubr.f32.gmra.mrb[18].mxu1 %v1167_v41  ;;  %v8701_v4 = vpack.c.bf16 %v8695_v58, %v8697_v61  ;;  %v1340_v41 = vld [vmem:[#allocation8 + $0x538] sm:$0xff]  ;;  %v8717_v55 = vpack.i.bf16 %v8695_v58, %v8697_v61  ;;  %v7701_v58 = vpack.c.bf16 %v1356_v11, %v1354_v10  ;;  %v1353_v61 = vld [vmem:[#allocation8 + $0x5a0] sm:$0xff]  ;;  %v1367_v11 = vld [vmem:[#allocation8 + $0x610] sm:$0xff] }
 0x156   :  { %7656 = vmatpush1.bf16.msra.mxu1 %v7655_v40  ;;  %1659 = vmatprep.mubr.f32.mxu1 %v1162_v45  ;;  %v1338_v40 = vld [vmem:[#allocation8 + $0x528] sm:$0xff]  ;;  %v1339_v45 = vld [vmem:[#allocation8 + $0x530] sm:$0xff]  ;;  %v7703_v18 = vpack.c.bf16 %v1355_v13, %v1353_v61  ;;  %v1365_v10 = vld [vmem:[#allocation8 + $0x600] sm:$0xff] }
 0x157   :  { %7658 = vmatprep.subr.bf16.mxu1 %v7657_v42  ;;  %v7683_v42 = vpack.c.bf16 %v1335_v39, %v1333_v38  ;;  %v7685_v43 = vpack.c.bf16 %v1340_v41, %v1338_v40  ;;  %v7687_v48 = vpack.c.bf16 %v1339_v45, %v1337_v44  ;;  %v346_v39 = vrot.slane %v8664_v27, %v345_v32  ;;  %v1361_v45 = vld [vmem:[#allocation8 + $0x5e0] sm:$0xff]  ;;  %v1372_v61 = vld [vmem:[#allocation8 + $0x638] sm:$0xff] }
 0x15a   :  { %7660 = vmatpush1.bf16.msra.mxu1 %v7659_v49  ;;  %v7689_v49 = vpack.c.bf16 %v1344_v47, %v1342_v46  ;;  %v1363_v46 = vld [vmem:[#allocation8 + $0x5f0] sm:$0xff] }
 0x15b   :  { %7662 = vmatprep.subr.bf16.mxu1 %v7661_v50  ;;  %v1341_v50 = vld [vmem:[#allocation8 + $0x540] sm:$0xff] }
 0x15c   :  { %v7691_v57 = vpack.c.bf16 %v1343_v51, %v1341_v50 }
 0x15e   :  { %7664 = vmatpush1.bf16.msra.mxu1 %v7663_v62  ;;  %v1345_v62 = vld [vmem:[#allocation8 + $0x560] sm:$0xff] }
 0x15f   :  { %7666 = vmatprep.subr.bf16.mxu1 %v7665_v63  ;;  %v1347_v63 = vld [vmem:[#allocation8 + $0x570] sm:$0xff] }
 0x160   :  { %v7695_v5 = vpack.c.bf16 %v1347_v63, %v1345_v62 }
 0x162   :  { %7668 = vmatpush1.bf16.msra.mxu1 %v7667_v7  ;;  %v1349_v7 = vld [vmem:[#allocation8 + $0x580] sm:$0xff] }
 0x163   :  { %7670 = vmatprep.subr.bf16.mxu1 %v7669_v9  ;;  %v1351_v9 = vld [vmem:[#allocation8 + $0x590] sm:$0xff] }
 0x164   :  { %v8707_v21 = vpop.f32.mrb[4].mxu1  ;;  %v7699_v12 = vpack.c.bf16 %v1351_v9, %v1349_v7  ;;  %v7713_v9 = vpack.c.bf16 %v1368_v54, %v1366_v52  ;;  %v1384_v52 = vld [vmem:[#allocation8 + $0x698] sm:$0xff] }
 0x165   :  { %v593_v24 = vpop.f32.mrb[5].mxu1 }
 0x166   :  { %v8709_v28 = vadd.f32 %v593_v24, %v354_v20  ;;  %7672 = vmatpush1.bf16.msra.mxu1 %v7671_v14  ;;  %v1360_v14 = vld [vmem:[#allocation8 + $0x5d8] sm:$0xff]  ;;  %v1362_v24 = vld [vmem:[#allocation8 + $0x5e8] sm:$0xff] }
 0x167   :  { %7674 = vmatprep.subr.bf16.mxu1 %v7673_v17  ;;  %v8722_v17 = vld [vmem:[%s9365_s8] sm:$0xff]  ;;  %s8388_s8 = smov 32  }
 0x168   :  { %v8711_v35 = vpop.f32.mrb[6].mxu1  ;;  %v816_v41 = vrot.slane %v8722_v17, %v8727_v33 }
 0x169   :  { %v599_v36 = vpop.f32.mrb[7].mxu1 }
 0x16a   :  { %7676 = vmatpush1.bf16.msra.mxu1 %v7675_v29  ;;  %v8713_v53 = vadd.f32 %v599_v36, %v354_v20  ;;  %v1358_v20 = vld [vmem:[#allocation8 + $0x5c8] sm:$0xff]  ;;  %v1364_v29 = vld [vmem:[#allocation8 + $0x5f8] sm:$0xff] }
 0x16b   :  { %7678 = vmatprep.subr.bf16.mxu1 %v7677_v30  ;;  %v7705_v22 = vpack.c.bf16 %v1360_v14, %v1358_v20  ;;  %v341_v30 = vsub.s32 2, %v8656_v56  ;;  %v1161_v20 = vld [vmem:[%s9358_s1 + $0x20] sm:$0xff]  ;;  %v7715_v14 = vpack.c.bf16 %v1367_v11, %v1365_v10 }
 0x16d   :  { %v342_v38 = vrot.slane %v8664_v27, %v341_v30 }
 0x16e   :  { %7680 = vmatpush1.bf16.msra.mxu1 %v7679_v37  ;;  %v812_v37 = vrot.slane %v8722_v17, %v8659_v0 }
 0x16f   :  { %7682 = vmatprep.subr.bf16.mxu1 %v7681_v1 }
 0x171   :  { %v514_v31 = vpop.f32.mrb[2].mxu0 }
 0x172   :  { %7684 = vmatpush1.bf16.msra.mxu1 %v7683_v42  ;;  %v516_v36 = vpop.f32.mrb[3].mxu0  ;;  %v7707_v42 = vpack.c.bf16 %v1359_v23, %v1357_v19  ;;  %v8739_v47 = vadd.f32 %v514_v31, %v342_v38  ;;  %v1369_v19 = vld [vmem:[#allocation8 + $0x620] sm:$0xff]  ;;  %v357_v31 = vsub.s32 6, %v8656_v56 }
 0x173   :  { %7686 = vmatprep.subr.bf16.mxu1 %v7685_v43  ;;  %v7709_v43 = vpack.c.bf16 %v1364_v29, %v1362_v24  ;;  %v1170_v23 = vld [vmem:[%s9358_s1 + $0x68] sm:$0xff]  ;;  %v1376_v29 = vld [vmem:[#allocation8 + $0x658] sm:$0xff] }
 0x174   :  { %v1374_v24 = vld [vmem:[#allocation8 + $0x648] sm:$0xff] }
 0x175   :  { %v520_v40 = vpop.f32.mrb[4].mxu0 }
 0x176   :  { %7688 = vmatpush1.bf16.msra.mxu1 %v7687_v48  ;;  %v522_v44 = vpop.f32.mrb[5].mxu0  ;;  %v8741_v48 = vadd.f32 %v516_v36, %v346_v39  ;;  %v1169_v36 = vld [vmem:[%s9358_s1 + $0x60] sm:$0xff] }
 0x177   :  { %7690 = vmatprep.subr.bf16.mxu1 %v7689_v49  ;;  %v8743_v49 = vadd.f32 %v520_v40, %v342_v38  ;;  %v8745_v50 = vadd.f32 %v522_v44, %v346_v39  ;;  %v1375_v38 = vld [vmem:[#allocation8 + $0x650] sm:$0xff]  ;;  %v1378_v40 = vld [vmem:[#allocation8 + $0x668] sm:$0xff]  ;;  %v1377_v44 = vld [vmem:[#allocation8 + $0x660] sm:$0xff] }
 0x178   :  { %v1164_v39 = vld [vmem:[%s9358_s1 + $0x38] sm:$0xff] }
 0x17a   :  { %7692 = vmatpush1.bf16.msra.mxu1 %v7691_v57 }
 0x17b   :  { %7694 = vmatprep.subr.bf16.mxu1 %v7693_v59 }
 0x17e   :  { %7696 = vmatpush1.bf16.msra.mxu1 %v7695_v5  ;;  %v7711_v5 = vpack.c.bf16 %v1363_v46, %v1361_v45  ;;  %v1379_v45 = vld [vmem:[#allocation8 + $0x670] sm:$0xff] }
 0x17f   :  { %7698 = vmatprep.subr.bf16.mxu1 %v7697_v6 }
 0x182   :  { %7700 = vmatpush1.bf16.msra.mxu1 %v7699_v12 }
 0x183   :  { %7702 = vmatprep.subr.bf16.mxu1 %v7701_v58  ;;  %v1370_v58 = vld [vmem:[#allocation8 + $0x628] sm:$0xff] }
 0x184   :  { %v915_v34 = vpop.f32.mrb[8].mxu1 }
 0x185   :  { %v917_v1 = vpop.f32.mrb[9].mxu1  ;;  %v916_v57 = vadd.f32 %v915_v34, %v812_v37 }
 0x186   :  { %7704 = vmatpush1.bf16.msra.mxu1 %v7703_v18  ;;  %v8747_v63 = vadd.f32 %v917_v1, %v816_v41  ;;  %v7717_v18 = vpack.c.bf16 %v1372_v61, %v1370_v58  ;;  %v1373_v1 = vld [vmem:[#allocation8 + $0x640] sm:$0xff]  ;;  %v1387_v61 = vld [vmem:[#allocation8 + $0x6b0] sm:$0xff] }
 0x187   :  { %7706 = vmatprep.subr.bf16.mxu1 %v7705_v22  ;;  %v1371_v22 = vld [vmem:[#allocation8 + $0x630] sm:$0xff]  ;;  %v1385_v58 = vld [vmem:[#allocation8 + $0x6a0] sm:$0xff] }
 0x188   :  { %v921_v51 = vpop.f32.mrb[10].mxu1  ;;  %v7719_v34 = vpack.c.bf16 %v1371_v22, %v1369_v19  ;;  %v1389_v22 = vld [vmem:[#allocation8 + $0x6c0] sm:$0xff] }
 0x189   :  { %v922_v59 = vadd.f32 %v921_v51, %v812_v37  ;;  %v923_v62 = vpop.f32.mrb[11].mxu1  ;;  %v7721_v37 = vpack.c.bf16 %v1376_v29, %v1374_v24  ;;  %v1382_v51 = vld [vmem:[#allocation8 + $0x688] sm:$0xff] }
 0x18a   :  { %v8749_v2 = vadd.f32 %v923_v62, %v816_v41  ;;  %7708 = vmatpush1.bf16.msra.mxu1 %v7707_v42  ;;  %v1380_v41 = vld [vmem:[#allocation8 + $0x678] sm:$0xff]  ;;  %v7723_v42 = vpack.c.bf16 %v1375_v38, %v1373_v1  ;;  %v1383_v62 = vld [vmem:[#allocation8 + $0x690] sm:$0xff]  ;;  %v1394_v29 = vld [vmem:[#allocation8 + $0x6e8] sm:$0xff]  ;;  %v832_v1 = vrot.slane %v8722_v17, %v353_v8 }
 0x18b   :  { %v7809_v6 = vpack.c.bf16 %v922_v59, %v916_v57  ;;  %7710 = vmatprep.subr.bf16.mxu1 %v7709_v43  ;;  %v8042_v7 = vpack.i.bf16 %v922_v59, %v916_v57  ;;  %v7725_v43 = vpack.c.bf16 %v1380_v41, %v1378_v40  ;;  %v1381_v59 = vld [vmem:[#allocation8 + $0x680] sm:$0xff]  ;;  %v1395_v41 = vld [vmem:[#allocation8 + $0x6f0] sm:$0xff] }
 0x18c   :  { %v8759_v12 = vpack.c.bf16 %v8749_v2, %v8747_v63  ;;  %v8057_v13 = vpack.i.bf16 %v8749_v2, %v8747_v63  ;;  %v7731_v10 = vpack.c.bf16 %v1383_v62, %v1381_v59  ;;  %v1393_v40 = vld [vmem:[#allocation8 + $0x6e0] sm:$0xff]  ;;  %v1399_v62 = vld [vmem:[#allocation8 + $0x710] sm:$0xff] }
 0x18d   :  { %8043 = vrot.lane.b32.xlu0 %v8042_v7, %s8377_s20  ;;  %7811 = vmatprep.subr.msk.bf16.mxu0 %vm8753_vm1, %v7809_v6  ;;  %v1388_v7 = vld [vmem:[#allocation8 + $0x6b8] sm:$0xff]  ;;  %v7743_v8 = vpack.c.bf16 %v1395_v41, %v1393_v40  ;;  %v1397_v59 = vld [vmem:[#allocation8 + $0x700] sm:$0xff]  ;;  %v1411_v40 = vld [vmem:[#allocation8 + $0x770] sm:$0xff] }
 0x18e   :  { %7712 = vmatpush1.bf16.msra.mxu1 %v7711_v5  ;;  %7814 = vmatpush3.bf16.xpose.msk.msra.mxu0 %vm8753_vm1, %v7809_v6  ;;  %v1386_v6 = vld [vmem:[#allocation8 + $0x6a8] sm:$0xff] }
 0x18f   :  { %7714 = vmatprep.subr.bf16.mxu1 %v7713_v9  ;;  %7816 = vmatprep.subr.bf16.mxu0 %v8701_v4  ;;  %v7733_v11 = vpack.c.bf16 %v1388_v7, %v1386_v6  ;;  %v1402_v7 = vld [vmem:[#allocation8 + $0x728] sm:$0xff] }
 0x191   :  { %2125 = vrot.lane.b32.xlu0 %v8668_v15, %s8377_s20  ;;  %1660 = vmatmul.mubr.f32.vlgmr.msra.gmra.mrb[16].mxu1 %v1161_v20  ;;  %v358_v15 = vrot.slane %v8664_v27, %v357_v31  ;;  %v668_v46 = vpop.f32.mrb[6].mxu0  ;;  %v7727_v27 = vpack.c.bf16 %v1379_v45, %v1377_v44  ;;  %v1392_v20 = vld [vmem:[#allocation8 + $0x6d8] sm:$0xff] }
 0x192   :  { %7716 = vmatpush1.bf16.msra.mxu1 %v7715_v14  ;;  %1665 = vmatprep.mubr.f32.mxu1 %v1170_v23  ;;  %v8792_v57 = vpop.f32.mrb[7].mxu0  ;;  %v7735_v14 = vpack.c.bf16 %v1387_v61, %v1385_v58  ;;  %v1391_v23 = vld [vmem:[#allocation8 + $0x6d0] sm:$0xff]  ;;  %v7747_v58 = vpack.c.bf16 %v1399_v62, %v1397_v59  ;;  %v1413_v62 = vld [vmem:[#allocation8 + $0x780] sm:$0xff] }
 0x193   :  { %7718 = vmatprep.subr.bf16.mxu1 %v7717_v18  ;;  %v8790_v54 = vadd.f32 %v668_v46, %v358_v15  ;;  %v9372_v18 = vsub.s32 4, %v8656_v56  ;;  %v7739_v38 = vpack.c.bf16 %v1391_v23, %v1389_v22 }
 0x195   :  { %6934 = vmatmul.mubr.msk.f32.vlgmr.msra.gmra.mrb[20].mxu0 %vm1851_vm0, %v8674_v25  ;;  %1666 = vmatmul.mubr.f32.gmra.mrb[18].mxu1 %v1169_v36  ;;  %v7729_v25 = vpack.c.bf16 %v1384_v52, %v1382_v51  ;;  %v674_v5 = vpop.f32.mrb[8].mxu0  ;;  %v828_v36 = vrot.slane %v8722_v17, %v9372_v18 }
 0x196   :  { %7720 = vmatpush1.bf16.msra.mxu1 %v7719_v34  ;;  %1736 = vmatprep.mubr.f32.mxu1 %v1164_v39  ;;  %v8795_v9 = vadd.f32 %v674_v5, %v358_v15  ;;  %v1396_v34 = vld [vmem:[#allocation8 + $0x6f8] sm:$0xff] }
 0x197   :  { %7722 = vmatprep.subr.bf16.mxu1 %v7721_v37  ;;  %7818 = vmatpush3.bf16.msra.mxu0 %v8701_v4  ;;  %v8797_v4 = vpop.f32.mrb[9].mxu0  ;;  %v7741_v39 = vpack.c.bf16 %v1396_v34, %v1394_v29  ;;  %v1407_v29 = vld [vmem:[#allocation8 + $0x750] sm:$0xff]  ;;  %v1410_v34 = vld [vmem:[#allocation8 + $0x768] sm:$0xff] }
 0x198   :  { %6943 = vmatprep.subr.mxu0 %v8586_v60  ;;  %v1390_v60 = vld [vmem:[#allocation8 + $0x6c8] sm:$0xff] }
 0x199   :  { %v7737_v19 = vpack.c.bf16 %v1392_v20, %v1390_v60  ;;  %v1401_v60 = vld [vmem:[#allocation8 + $0x720] sm:$0xff]  ;;  %v1403_v20 = vld [vmem:[#allocation8 + $0x730] sm:$0xff] }
 0x19a   :  { %7724 = vmatpush1.bf16.msra.mxu1 %v7723_v42  ;;  %v1398_v42 = vld [vmem:[#allocation8 + $0x708] sm:$0xff]  ;;  %v7751_v22 = vpack.c.bf16 %v1403_v20, %v1401_v60 }
 0x19b   :  { %7726 = vmatprep.subr.bf16.mxu1 %v7725_v43  ;;  %v1400_v43 = vld [vmem:[#allocation8 + $0x718] sm:$0xff] }
 0x19e   :  { %7728 = vmatpush1.bf16.msra.mxu1 %v7727_v27 }
 0x19f   :  { %7730 = vmatprep.subr.bf16.mxu1 %v7729_v25  ;;  %v7745_v25 = vpack.c.bf16 %v1400_v43, %v1398_v42  ;;  %v1414_v42 = vld [vmem:[#allocation8 + $0x788] sm:$0xff]  ;;  %v1416_v43 = vld [vmem:[#allocation8 + $0x798] sm:$0xff] }
 0x1a0   :  { %v7761_v59 = vpack.c.bf16 %v1416_v43, %v1414_v42  ;;  %v1425_v43 = vld [vmem:[#allocation8 + $0x7e0] sm:$0xff] }
 0x1a2   :  { %7732 = vmatpush1.bf16.msra.mxu1 %v7731_v10  ;;  %v1404_v10 = vld [vmem:[#allocation8 + $0x738] sm:$0xff] }
 0x1a3   :  { %7734 = vmatprep.subr.bf16.mxu1 %v7733_v11  ;;  %v7749_v61 = vpack.c.bf16 %v1404_v10, %v1402_v7 }
 0x1a4   :  { %v1069_v24 = vpop.f32.mrb[12].mxu1 }
 0x1a5   :  { %v1071_v37 = vpop.f32.mrb[13].mxu1  ;;  %v8806_v44 = vadd.f32 %v1069_v24, %v828_v36  ;;  %v1405_v24 = vld [vmem:[#allocation8 + $0x740] sm:$0xff] }
 0x1a6   :  { %7736 = vmatpush1.bf16.msra.mxu1 %v7735_v14  ;;  %v8810_v51 = vadd.f32 %v1071_v37, %v832_v1  ;;  %v1406_v14 = vld [vmem:[#allocation8 + $0x748] sm:$0xff]  ;;  %v7755_v37 = vpack.c.bf16 %v1407_v29, %v1405_v24  ;;  %v1419_v24 = vld [vmem:[#allocation8 + $0x7b0] sm:$0xff] }
 0x1a7   :  { %7738 = vmatprep.subr.bf16.mxu1 %v7737_v19  ;;  %v1408_v19 = vld [vmem:[#allocation8 + $0x758] sm:$0xff] }
 0x1a8   :  { %v1075_v15 = vpop.f32.mrb[14].mxu1  ;;  %v7753_v23 = vpack.c.bf16 %v1408_v19, %v1406_v14 }
 0x1a9   :  { %v8808_v45 = vadd.f32 %v1075_v15, %v828_v36  ;;  %v1077_v46 = vpop.f32.mrb[15].mxu1  ;;  %v1412_v36 = vld [vmem:[#allocation8 + $0x778] sm:$0xff]  ;;  %v824_v15 = vrot.slane %v8722_v17, %v345_v32 }
 0x1aa   :  { %v8812_v52 = vadd.f32 %v1077_v46, %v832_v1  ;;  %7740 = vmatpush1.bf16.msra.mxu1 %v7739_v38  ;;  %v820_v1 = vrot.slane %v8722_v17, %v341_v30  ;;  %v7757_v38 = vpack.c.bf16 %v1412_v36, %v1410_v34  ;;  %v1415_v30 = vld [vmem:[#allocation8 + $0x790] sm:$0xff]  ;;  %v1422_v34 = vld [vmem:[#allocation8 + $0x7c8] sm:$0xff]  ;;  %v1424_v36 = vld [vmem:[#allocation8 + $0x7d8] sm:$0xff] }
 0x1ab   :  { %v8816_v27 = vpack.c.bf16 %v8808_v45, %v8806_v44  ;;  %7742 = vmatprep.subr.bf16.mxu1 %v7741_v39  ;;  %v1409_v39 = vld [vmem:[#allocation8 + $0x760] sm:$0xff]  ;;  %v7763_v14 = vpack.c.bf16 %v1415_v30, %v1413_v62  ;;  %v1172_v62 = vld [vmem:[%s9358_s1 + $0x78] sm:$0xff]  ;;  %v1171_v30 = vld [vmem:[%s9358_s1 + $0x70] sm:$0xff] }
 0x1ac   :  { %v8822_v6 = vpack.c.bf16 %v8812_v52, %v8810_v51 }
 0x1ae   :  { %7744 = vmatpush1.bf16.msra.mxu1 %v7743_v8  ;;  %v7759_v8 = vpack.c.bf16 %v1411_v40, %v1409_v39  ;;  %v1423_v39 = vld [vmem:[#allocation8 + $0x7d0] sm:$0xff]  ;;  %v1426_v40 = vld [vmem:[#allocation8 + $0x7e8] sm:$0xff] }
 0x1af   :  { %7746 = vmatprep.subr.bf16.mxu1 %v7745_v25 }
 0x1b1   :  { %v992_v41 = vpop.f32.mrb[10].mxu0 }
 0x1b2   :  { %7748 = vmatpush1.bf16.msra.mxu1 %v7747_v58  ;;  %v994_v46 = vpop.f32.mrb[11].mxu0  ;;  %v8832_v25 = vadd.f32 %v992_v41, %v820_v1  ;;  %v1418_v58 = vld [vmem:[#allocation8 + $0x7a8] sm:$0xff]  ;;  %v1428_v41 = vld [vmem:[#allocation8 + $0x7f8] sm:$0xff] }
 0x1b3   :  { %7750 = vmatprep.subr.bf16.mxu1 %v7749_v61  ;;  %v8834_v7 = vadd.f32 %v994_v46, %v824_v15  ;;  %v1420_v61 = vld [vmem:[#allocation8 + $0x7b8] sm:$0xff]  ;;  %v7773_v42 = vpack.c.bf16 %v1428_v41, %v1426_v40  ;;  %v1427_v46 = vld [vmem:[#allocation8 + $0x7f0] sm:$0xff] }
 0x1b5   :  { %v998_v10 = vpop.f32.mrb[12].mxu0 }
 0x1b6   :  { %7752 = vmatpush1.bf16.msra.mxu1 %v7751_v22  ;;  %v8836_v60 = vadd.f32 %v998_v10, %v820_v1  ;;  %v1000_v20 = vpop.f32.mrb[13].mxu0  ;;  %v7765_v22 = vpack.c.bf16 %v1420_v61, %v1418_v58  ;;  %v7769_v1 = vpack.c.bf16 %v1424_v36, %v1422_v34  ;;  %v9371_v10 = vsub.s32 7, %v8656_v56 }
 0x1b7   :  { %7754 = vmatprep.subr.bf16.mxu1 %v7753_v23  ;;  %v8838_v32 = vadd.f32 %v1000_v20, %v824_v15  ;;  %v1417_v23 = vld [vmem:[#allocation8 + $0x7a0] sm:$0xff]  ;;  %v836_v58 = vrot.slane %v8722_v17, %v357_v31 }
 0x1b8   :  { %v8842_v19 = vpack.c.bf16 %v8836_v60, %v8832_v25  ;;  %v840_v20 = vrot.slane %v8722_v17, %v9371_v10 }
 0x1b9   :  { %v8846_v29 = vpack.c.bf16 %v8838_v32, %v8834_v7 }
 0x1ba   :  { %7756 = vmatpush1.bf16.msra.mxu1 %v7755_v37  ;;  %v7767_v37 = vpack.c.bf16 %v1419_v24, %v1417_v23  ;;  %v8087_v23 = vpack.i.bf16 %v8838_v32, %v8834_v7 }
 0x1bb   :  { %7758 = vmatprep.subr.bf16.mxu1 %v7757_v38  ;;  %v1421_v38 = vld [vmem:[#allocation8 + $0x7c0] sm:$0xff] }
 0x1bc   :  { %v7771_v15 = vpack.c.bf16 %v1423_v39, %v1421_v38 }
 0x1be   :  { %7760 = vmatpush1.bf16.msra.mxu1 %v7759_v8  ;;  %v7775_v8 = vpack.c.bf16 %v1427_v46, %v1425_v43 }
 0x1bf   :  { %7762 = vmatprep.subr.bf16.mxu1 %v7761_v59  ;;  %v1163_v59 = vld [vmem:[%s9358_s1 + $0x30] sm:$0xff] }
 0x1c2   :  { %7764 = vmatpush1.bf16.msra.mxu1 %v7763_v14  ;;  %v8072_v14 = vpack.i.bf16 %v8836_v60, %v8832_v25 }
 0x1c3   :  { %7766 = vmatprep.subr.bf16.mxu1 %v7765_v22 }
 0x1c6   :  { %7768 = vmatpush1.bf16.msra.mxu1 %v7767_v37 }
 0x1c7   :  { %7770 = vmatprep.subr.bf16.mxu1 %v7769_v1 }
 0x1ca   :  { %7772 = vmatpush1.bf16.msra.mxu1 %v7771_v15 }
 0x1cb   :  { %7774 = vmatprep.subr.bf16.mxu1 %v7773_v42 }
 0x1ce   :  { %7776 = vmatpush1.bf16.msra.mxu1 %v7775_v8 }
 0x1d1   :  { %1737 = vmatmul.mubr.f32.vlgmr.msra.gmra.mrb[16].mxu1 %v1163_v59  ;;  %v1146_v61 = vpop.f32.mrb[14].mxu0  ;;  %v1429_v59 = vld [vmem:[%s9367_s10] sm:$0x3]  ;;  %s8394_s10 = smov 72  }
 0x1d2   :  { %1742 = vmatprep.mubr.f32.mxu1 %v1172_v62  ;;  %v1148_v22 = vpop.f32.mrb[15].mxu0  ;;  %v8868_v24 = vadd.f32 %v1146_v61, %v836_v58  ;;  %v1434_v62 = vrot.slane %v1429_v59, %v8659_v0 }
 0x1d3   :  { %v8870_v34 = vadd.f32 %v1148_v22, %v840_v20 }
 0x1d5   :  { %1743 = vmatmul.mubr.f32.gmra.mrb[18].mxu1 %v1171_v30  ;;  %v1152_v36 = vpop.f32.mrb[16].mxu0  ;;  %v1438_v30 = vrot.slane %v1429_v59, %v8727_v33 }
 0x1d6   :  { %v8872_v37 = vadd.f32 %v1152_v36, %v836_v58  ;;  %v1154_v31 = vpop.f32.mrb[17].mxu0 }
 0x1d7   :  { %v8874_v1 = vadd.f32 %v1154_v31, %v840_v20 }
 0x1d8   :  { %v8878_v17 = vpack.c.bf16 %v8872_v37, %v8868_v24 }
 0x1d9   :  { %v8882_v38 = vpack.c.bf16 %v8874_v1, %v8870_v34 }
 0x268   :  { %v6935_v41 = vpop.f32.mrb[20].mxu0 }
 0x269   :  { %v1930_v15 = vpop.f32.mrb[21].mxu0  ;;  %v1940_v43 = vmul.f32 0.125, %v6935_v41 }
 0x26a   :  { %v1939_v42 = vmul.f32 0.125, %v1930_v15 }
 0x26b   :  { %v1943_v8 = vmul.f32 1.442695, %v1940_v43 }
 0x26c   :  { %v1941_v46 = vmul.f32 1.442695, %v1939_v42 }
 0x26e   :  { %8157 = vpow2.f32 %v1941_v46 }
 0x26f   :  { %8159 = vpow2.f32 %v1943_v8 }
 0x278   :  { %v8158_v42 = vpop.eup %8157 }
 0x279   :  { %v8160_v46 = vpop.eup %8159 }
 0x2a4   :  { %v1738_v58 = vpop.f32.mrb[16].mxu1 }
 0x2a5   :  { %v7969_v61 = vadd.f32 %v1738_v58, %v1434_v62  ;;  %v1740_v20 = vpop.f32.mrb[17].mxu1 }
 0x2a6   :  { %v8893_v22 = vadd.f32 %v1740_v20, %v1438_v30 }
 0x2a7   :  { %v8895_v36 = vmax.f32 %v7969_v61, 0.0 }
 0x2a8   :  { %v1744_v31 = vpop.f32.mrb[18].mxu1 }
 0x2a9   :  { %v7971_v41 = vadd.f32 %v1744_v31, %v1434_v62  ;;  %v1746_v15 = vpop.f32.mrb[19].mxu1  ;;  %v1945_v0 = vmul.f32 %v8158_v42, %v8895_v36 }
 0x2aa   :  { %v8897_v43 = vadd.f32 %v1746_v15, %v1438_v30 }
 0x2ab   :  { %v8899_v40 = vmax.f32 %v7971_v41, 0.0  ;;  %v1948_v59 = vsel %vm1947_vm2, %v1945_v0, 0.0  ;;  %v8044_v41 = vpop.permute.xlu0 %8043 }
 0x2ac   :  { %v8046_v11 = vunpack.i.h.bf16 %v8044_v41  ;;  %v8045_v42 = vunpack.i.l.bf16 %v8044_v41 }
 0x2ad   :  { %v1946_v8 = vmul.f32 %v8160_v46, %v8899_v40 }
 0x2ae   :  { %v7819_v46 = vpack.c.bf16 %v8046_v11, %v8045_v42 }
 0x2af   :  { %v1949_v58 = vsel %vm1947_vm2, %v1946_v8, 0.0 }
 0x2b0   :  { %v1950_v61 = vadd.f32 %v1949_v58, %v1948_v59  ;;  %v8263_v59 = vld [vmem:[%s9368_s11] sm:$0xff] }
 0x2b2   :  { %v1951_v20 = vrot.slane %v1950_v61, 4 }
 0x2b4   :  { %v1952_v10 = vadd.f32 %v1951_v20, %v1950_v61 }
 0x2b6   :  { %v1953_v62 = vrot.slane %v1952_v10, 2 }
 0x2b8   :  { %v1954_v31 = vadd.f32 %v1953_v62, %v1952_v10 }
 0x2ba   :  { %v1955_v39 = vrot.slane %v1954_v31, 1 }
 0x2bc   :  { %v1956_v30 = vadd.f32 %v1955_v39, %v1954_v31 }
 0x2be   :  { %8161 = vrcp.f32 %v1956_v30 }
 0x2c8   :  { %v8162_v15 = vpop.eup %8161 }
 0x2c9   :  { %v1958_v5 = vmul.f32 %v8162_v15, %v1945_v0  ;;  %v1959_v18 = vmul.f32 %v8162_v15, %v1946_v8  ;;  %v2126_v0 = vpop.permute.xlu0 %2125 }
 0x2cb   :  { %6940 = vmatprep.mubr.msk.f32.mxu0 %vm1947_vm2, %v1958_v5 }
 0x2cc   :  { %6941 = vmatmul.mubr.msk.f32.vlgmr.msra.gmra.mrb[22].mxu0 %vm1947_vm2, %v1959_v18  ;;  %v2128_v18 = vpop.permute.xlu1 %2127 }
 0x2cd   :  { %6944 = vmatpush3.msra.mxu0 %v8263_v59 }
 0x2ce   :  { %7821 = vmatprep.subr.msk.bf16.mxu0 %vm8753_vm1, %v7819_v46 }
 0x39f   :  { %v6942_v10 = vpop.f32.mrb[22].mxu0 }
 0x3a0   :  { %v2032_v39 = vpop.f32.mrb[23].mxu0 }
 0x3a1   :  { %6945 = vmatprep.mubr.msk.f32.mxu0 %vm2041_vm3, %v2032_v39 }
 0x3a2   :  { %6946 = vmatmul.mubr.msk.f32.vlgmr.msra.gmra.mrb[18].mxu0 %vm2041_vm3, %v6942_v10 }
 0x3a3   :  { %7824 = vmatpush3.bf16.xpose.msk.msra.mxu0 %vm8753_vm1, %v7819_v46  ;;  %6952 = vmatprep.mubr.msk.f32.mxu0 %vm1851_vm0, %v2126_v0 }
 0x3aa   :  { %6953 = vmatmul.mubr.msk.f32.vlgmr.msra.gmra.mrb[24].mxu0 %vm1851_vm0, %v2128_v18 }
 0x47d   :  { %v6954_v5 = vpop.f32.mrb[24].mxu0 }
 0x47e   :  { %v2217_v11 = vmul.f32 0.125, %v6954_v5  ;;  %v2207_v8 = vpop.f32.mrb[25].mxu0 }
 0x47f   :  { %v2216_v58 = vmul.f32 0.125, %v2207_v8 }
 0x480   :  { %v2220_v61 = vmul.f32 1.442695, %v2217_v11 }
 0x481   :  { %v2218_v20 = vmul.f32 1.442695, %v2216_v58 }
 0x482   :  { %8163 = vpow2.f32 %v2220_v61  ;;  %v8264_v61 = vld [vmem:[%s9368_s11 + $0x8] sm:$0xff] }
 0x483   :  { %8165 = vpow2.f32 %v2218_v20 }
 0x48c   :  { %v8164_v62 = vpop.eup %8163 }
 0x48d   :  { %v8166_v31 = vpop.eup %8165  ;;  %2226 = vrot.lane.b32.xlu0 %v8164_v62, %s8384_s19 }
 0x48e   :  { %2224 = vrot.lane.b32.xlu1 %v8166_v31, %s8384_s19 }
 0x492   :  { %8048 = vrot.lane.b32.xlu1 %v8717_v55, %s8386_s29 }
 0x4ff   :  { %v2227_v30 = vpop.permute.xlu0 %2226 }
 0x500   :  { %v2231_v41 = vmul.f32 %v2227_v30, %v8899_v40  ;;  %v2225_v15 = vpop.permute.xlu1 %2224 }
 0x501   :  { %v2230_v42 = vmul.f32 %v2225_v15, %v8895_v36 }
 0x502   :  { %v2234_v46 = vsel %vm2232_vm4, %v2231_v41, 0.0 }
 0x503   :  { %v2233_v59 = vsel %vm2232_vm4, %v2230_v42, 0.0 }
 0x504   :  { %v2235_v10 = vadd.f32 %v2234_v46, %v2233_v59  ;;  %v8049_v39 = vpop.permute.xlu1 %8048 }
 0x505   :  { %v8051_v0 = vunpack.i.h.bf16 %v8049_v39  ;;  %v8050_v18 = vunpack.i.l.bf16 %v8049_v39 }
 0x506   :  { %v2236_v5 = vrot.slane %v2235_v10, 4 }
 0x507   :  { %v7825_v11 = vpack.c.bf16 %v8051_v0, %v8050_v18 }
 0x508   :  { %v2237_v8 = vadd.f32 %v2236_v5, %v2235_v10 }
 0x509   :  { %7826 = vmatprep.subr.bf16.mxu0 %v7825_v11 }
 0x50a   :  { %v2238_v58 = vrot.slane %v2237_v8, 2  ;;  %7828 = vmatpush3.bf16.msra.mxu0 %v7825_v11 }
 0x50b   :  { %6962 = vmatprep.subr.mxu0 %v8264_v61 }
 0x50c   :  { %v2239_v20 = vadd.f32 %v2238_v58, %v2237_v8 }
 0x50e   :  { %v2240_v62 = vrot.slane %v2239_v20, 1 }
 0x510   :  { %v2241_v31 = vadd.f32 %v2240_v62, %v2239_v20 }
 0x512   :  { %8167 = vrcp.f32 %v2241_v31 }
 0x51c   :  { %v8168_v30 = vpop.eup %8167 }
 0x51d   :  { %v2243_v15 = vmul.f32 %v8168_v30, %v2230_v42  ;;  %v2244_v46 = vmul.f32 %v8168_v30, %v2231_v41  ;;  %v8938_v41 = vld [vmem:[%s9363_s6] sm:$0xff] }
 0x51e   :  { %v338_v42 = vrot.slane %v8938_v41, %v8727_v33 }
 0x51f   :  { %2249 = vrot.lane.b32.xlu1 %v2244_v46, %s8387_s30  ;;  %2247 = vrot.lane.b32.xlu0 %v2243_v15, %s8387_s30 }
 0x520   :  { %v440_v18 = vadd.f32 %v8670_v16, %v338_v42  ;;  %v446_v5 = vadd.f32 %v8676_v26, %v338_v42 }
 0x591   :  { %v2248_v59 = vpop.permute.xlu0 %2247  ;;  %v2250_v10 = vpop.permute.xlu1 %2249 }
 0x592   :  { %6959 = vmatprep.mubr.msk.f32.mxu0 %vm1947_vm2, %v2248_v59 }
 0x593   :  { %6960 = vmatmul.mubr.msk.f32.vlgmr.msra.gmra.mrb[26].mxu0 %vm1947_vm2, %v2250_v10 }
 0x594   :  { %6963 = vmatpush3.msra.mxu0 %v8264_v61 }
 0x595   :  { %7831 = vmatprep.subr.msk.bf16.mxu0 %vm8753_vm1, %v8759_v12 }
 0x666   :  { %v6961_v39 = vpop.f32.mrb[26].mxu0 }
 0x667   :  { %v2329_v0 = vpop.f32.mrb[27].mxu0 }
 0x668   :  { %6964 = vmatprep.mubr.msk.f32.mxu0 %vm2041_vm3, %v2329_v0 }
 0x669   :  { %6965 = vmatmul.mubr.msk.f32.vlgmr.msra.gmra.mrb[18].mxu0 %vm2041_vm3, %v6961_v39 }
 0x66a   :  { %7834 = vmatpush3.bf16.xpose.msk.msra.mxu0 %vm8753_vm1, %v8759_v12  ;;  %6971 = vmatprep.mubr.msk.f32.mxu0 %vm1851_vm0, %v440_v18 }
 0x671   :  { %6972 = vmatmul.mubr.msk.f32.vlgmr.msra.gmra.mrb[28].mxu0 %vm1851_vm0, %v446_v5 }
 0x744   :  { %v6973_v11 = vpop.f32.mrb[28].mxu0 }
 0x745   :  { %v2509_v33 = vmul.f32 0.125, %v6973_v11  ;;  %v2499_v8 = vpop.f32.mrb[29].mxu0 }
 0x746   :  { %v2508_v58 = vmul.f32 0.125, %v2499_v8 }
 0x747   :  { %v2512_v61 = vmul.f32 1.442695, %v2509_v33 }
 0x748   :  { %v2510_v16 = vmul.f32 1.442695, %v2508_v58  ;;  %v8266_v58 = vld [vmem:[%s9368_s11 + $0x10] sm:$0xff] }
 0x749   :  { %8169 = vpow2.f32 %v2512_v61 }
 0x74a   :  { %8171 = vpow2.f32 %v2510_v16 }
 0x753   :  { %v8170_v20 = vpop.eup %8169 }
 0x754   :  { %v8172_v62 = vpop.eup %8171  ;;  %2518 = vrot.lane.b32.xlu1 %v8170_v20, %s8388_s8 }
 0x755   :  { %2516 = vrot.lane.b32.xlu0 %v8172_v62, %s8388_s8 }
 0x759   :  { %8053 = vrot.lane.b32.xlu0 %v8717_v55, %s8387_s30 }
 0x7c6   :  { %v2519_v26 = vpop.permute.xlu1 %2518 }
 0x7c7   :  { %v2523_v12 = vmul.f32 %v2519_v26, %v8899_v40  ;;  %v2517_v31 = vpop.permute.xlu0 %2516 }
 0x7c8   :  { %v2522_v30 = vmul.f32 %v2517_v31, %v8895_v36 }
 0x7c9   :  { %v2526_v15 = vsel %vm2524_vm5, %v2523_v12, 0.0 }
 0x7ca   :  { %v2525_v46 = vsel %vm2524_vm5, %v2522_v30, 0.0 }
 0x7cb   :  { %v2527_v59 = vadd.f32 %v2526_v15, %v2525_v46  ;;  %v8054_v10 = vpop.permute.xlu0 %8053 }
 0x7cc   :  { %v8056_v42 = vunpack.i.h.bf16 %v8054_v10  ;;  %v8055_v39 = vunpack.i.l.bf16 %v8054_v10 }
 0x7cd   :  { %v2528_v0 = vrot.slane %v2527_v59, 4 }
 0x7ce   :  { %v7835_v11 = vpack.c.bf16 %v8056_v42, %v8055_v39 }
 0x7cf   :  { %v2529_v33 = vadd.f32 %v2528_v0, %v2527_v59 }
 0x7d0   :  { %7836 = vmatprep.subr.bf16.mxu0 %v7835_v11 }
 0x7d1   :  { %v2530_v8 = vrot.slane %v2529_v33, 2  ;;  %7838 = vmatpush3.bf16.msra.mxu0 %v7835_v11 }
 0x7d2   :  { %6981 = vmatprep.subr.mxu0 %v8266_v58 }
 0x7d3   :  { %v2531_v61 = vadd.f32 %v2530_v8, %v2529_v33 }
 0x7d5   :  { %v2532_v16 = vrot.slane %v2531_v61, 1 }
 0x7d7   :  { %v2533_v20 = vadd.f32 %v2532_v16, %v2531_v61 }
 0x7d9   :  { %8173 = vrcp.f32 %v2533_v20 }
 0x7e3   :  { %v8174_v62 = vpop.eup %8173 }
 0x7e4   :  { %v2535_v26 = vmul.f32 %v8174_v62, %v2522_v30  ;;  %v2536_v31 = vmul.f32 %v8174_v62, %v2523_v12 }
 0x7e6   :  { %2541 = vrot.lane.b32.xlu0 %v2536_v31, %s8389_s24  ;;  %2539 = vrot.lane.b32.xlu1 %v2535_v26, %s8389_s24 }
 0x7ea   :  { %2711 = vrot.lane.b32.xlu0 %v440_v18, %s8377_s20  ;;  %8058 = vrot.lane.b32.xlu1 %v8057_v13, %s8377_s20 }
 0x7ee   :  { %2713 = vrot.lane.b32.xlu1 %v446_v5, %s8377_s20 }
 0x858   :  { %v2540_v15 = vpop.permute.xlu1 %2539  ;;  %v2542_v46 = vpop.permute.xlu0 %2541 }
 0x859   :  { %6978 = vmatprep.mubr.msk.f32.mxu0 %vm1947_vm2, %v2540_v15 }
 0x85a   :  { %6979 = vmatmul.mubr.msk.f32.vlgmr.msra.gmra.mrb[30].mxu0 %vm1947_vm2, %v2542_v46 }
 0x85b   :  { %6982 = vmatpush3.msra.mxu0 %v8266_v58 }
 0x85c   :  { %v8059_v12 = vpop.permute.xlu1 %8058  ;;  %v2712_v63 = vpop.permute.xlu0 %2711 }
 0x85d   :  { %v8061_v30 = vunpack.i.h.bf16 %v8059_v12  ;;  %v8060_v59 = vunpack.i.l.bf16 %v8059_v12 }
 0x85f   :  { %v7839_v10 = vpack.c.bf16 %v8061_v30, %v8060_v59 }
 0x860   :  { %v2714_v2 = vpop.permute.xlu1 %2713 }
 0x861   :  { %7841 = vmatprep.subr.msk.bf16.mxu0 %vm8753_vm1, %v7839_v10 }
 0x92d   :  { %v6980_v18 = vpop.f32.mrb[30].mxu0 }
 0x92e   :  { %v2619_v42 = vpop.f32.mrb[31].mxu0 }
 0x92f   :  { %6983 = vmatprep.mubr.msk.f32.mxu0 %vm2041_vm3, %v2619_v42 }
 0x930   :  { %6984 = vmatmul.mubr.msk.f32.vlgmr.msra.gmra.mrb[18].mxu0 %vm2041_vm3, %v6980_v18 }
 0x931   :  { %7844 = vmatpush3.bf16.xpose.msk.msra.mxu0 %vm8753_vm1, %v7839_v10  ;;  %6990 = vmatprep.mubr.msk.f32.mxu0 %vm1851_vm0, %v2712_v63  ;;  %v8267_v63 = vld [vmem:[%s9368_s11 + $0x18] sm:$0xff] }
 0x938   :  { %6991 = vmatmul.mubr.msk.f32.vlgmr.msra.gmra.mrb[32].mxu0 %vm1851_vm0, %v2714_v2 }
 0xa0b   :  { %v6992_v13 = vpop.f32.mrb[32].mxu0 }
 0xa0c   :  { %v2803_v5 = vmul.f32 0.125, %v6992_v13  ;;  %v2793_v39 = vpop.f32.mrb[33].mxu0 }
 0xa0d   :  { %v2802_v0 = vmul.f32 0.125, %v2793_v39 }
 0xa0e   :  { %v2806_v11 = vmul.f32 1.442695, %v2803_v5 }
 0xa0f   :  { %v2804_v33 = vmul.f32 1.442695, %v2802_v0 }
 0xa10   :  { %8175 = vpow2.f32 %v2806_v11 }
 0xa11   :  { %8177 = vpow2.f32 %v2804_v33 }
 0xa1a   :  { %v8176_v8 = vpop.eup %8175 }
 0xa1b   :  { %v8178_v58 = vpop.eup %8177  ;;  %2812 = vrot.lane.b32.xlu1 %v8176_v8, %s8390_s16 }
 0xa1c   :  { %2810 = vrot.lane.b32.xlu0 %v8178_v58, %s8390_s16 }
 0xa20   :  { %8063 = vrot.lane.b32.xlu0 %v8717_v55, %s8391_s5 }
 0xa8d   :  { %v2813_v61 = vpop.permute.xlu1 %2812 }
 0xa8e   :  { %v2817_v16 = vmul.f32 %v2813_v61, %v8899_v40  ;;  %v2811_v20 = vpop.permute.xlu0 %2810 }
 0xa8f   :  { %v2816_v62 = vmul.f32 %v2811_v20, %v8895_v36 }
 0xa90   :  { %v2820_v26 = vsel %vm2818_vm6, %v2817_v16, 0.0 }
 0xa91   :  { %v2819_v31 = vsel %vm2818_vm6, %v2816_v62, 0.0 }
 0xa92   :  { %v2821_v15 = vadd.f32 %v2820_v26, %v2819_v31  ;;  %v8064_v46 = vpop.permute.xlu0 %8063 }
 0xa93   :  { %v8066_v12 = vunpack.i.h.bf16 %v8064_v46  ;;  %v8065_v30 = vunpack.i.l.bf16 %v8064_v46 }
 0xa94   :  { %v2822_v59 = vrot.slane %v2821_v15, 4 }
 0xa95   :  { %v7845_v10 = vpack.c.bf16 %v8066_v12, %v8065_v30 }
 0xa96   :  { %v2823_v18 = vadd.f32 %v2822_v59, %v2821_v15 }
 0xa97   :  { %7846 = vmatprep.subr.bf16.mxu0 %v7845_v10 }
 0xa98   :  { %v2824_v42 = vrot.slane %v2823_v18, 2  ;;  %7848 = vmatpush3.bf16.msra.mxu0 %v7845_v10 }
 0xa99   :  { %7000 = vmatprep.subr.mxu0 %v8267_v63 }
 0xa9a   :  { %v2825_v2 = vadd.f32 %v2824_v42, %v2823_v18 }
 0xa9c   :  { %v2826_v13 = vrot.slane %v2825_v2, 1 }
 0xa9e   :  { %v2827_v5 = vadd.f32 %v2826_v13, %v2825_v2 }
 0xaa0   :  { %8179 = vrcp.f32 %v2827_v5 }
 0xaaa   :  { %v8180_v39 = vpop.eup %8179 }
 0xaab   :  { %v2829_v0 = vmul.f32 %v8180_v39, %v2816_v62  ;;  %v2830_v11 = vmul.f32 %v8180_v39, %v2817_v16 }
 0xaad   :  { %2835 = vrot.lane.b32.xlu0 %v2830_v11, %s8392_s18  ;;  %2833 = vrot.lane.b32.xlu1 %v2829_v0, %s8392_s18 }
 0xb1f   :  { %v2834_v33 = vpop.permute.xlu1 %2833  ;;  %v2836_v8 = vpop.permute.xlu0 %2835 }
 0xb20   :  { %6997 = vmatprep.mubr.msk.f32.mxu0 %vm1947_vm2, %v2834_v33 }
 0xb21   :  { %6998 = vmatmul.mubr.msk.f32.vlgmr.msra.gmra.mrb[34].mxu0 %vm1947_vm2, %v2836_v8  ;;  %v8268_v8 = vld [vmem:[%s9368_s11 + $0x20] sm:$0xff] }
 0xb22   :  { %7001 = vmatpush3.msra.mxu0 %v8267_v63 }
 0xb23   :  { %7851 = vmatprep.subr.msk.bf16.mxu0 %vm8753_vm1, %v8842_v19 }
 0xbf4   :  { %v6999_v58 = vpop.f32.mrb[34].mxu0 }
 0xbf5   :  { %v2913_v61 = vpop.f32.mrb[35].mxu0 }
 0xbf6   :  { %7002 = vmatprep.mubr.msk.f32.mxu0 %vm2041_vm3, %v2913_v61 }
 0xbf7   :  { %7003 = vmatmul.mubr.msk.f32.vlgmr.msra.gmra.mrb[18].mxu0 %vm2041_vm3, %v6999_v58 }
 0xbf8   :  { %7854 = vmatpush3.bf16.xpose.msk.msra.mxu0 %vm8753_vm1, %v8842_v19  ;;  %7009 = vmatprep.mubr.msk.f32.mxu0 %vm1851_vm0, %v8739_v47 }
 0xbff   :  { %7010 = vmatmul.mubr.msk.f32.vlgmr.msra.gmra.mrb[36].mxu0 %vm1851_vm0, %v8743_v49 }
 0xcd2   :  { %v7011_v16 = vpop.f32.mrb[36].mxu0 }
 0xcd3   :  { %v3093_v20 = vmul.f32 0.125, %v7011_v16  ;;  %v3083_v62 = vpop.f32.mrb[37].mxu0 }
 0xcd4   :  { %v3092_v26 = vmul.f32 0.125, %v3083_v62 }
 0xcd5   :  { %v3096_v31 = vmul.f32 1.442695, %v3093_v20 }
 0xcd6   :  { %v3094_v15 = vmul.f32 1.442695, %v3092_v26 }
 0xcd7   :  { %8181 = vpow2.f32 %v3096_v31 }
 0xcd8   :  { %8183 = vpow2.f32 %v3094_v15 }
 0xce1   :  { %v8182_v46 = vpop.eup %8181 }
 0xce2   :  { %v8184_v12 = vpop.eup %8183  ;;  %3102 = vrot.lane.b32.xlu0 %v8182_v46, %s8377_s20 }
 0xce3   :  { %3100 = vrot.lane.b32.xlu1 %v8184_v12, %s8377_s20 }
 0xce7   :  { %8068 = vrot.lane.b32.xlu1 %v8717_v55, %s8389_s24 }
 0xd54   :  { %v3103_v19 = vpop.permute.xlu0 %3102 }
 0xd55   :  { %v3107_v30 = vmul.f32 %v3103_v19, %v8899_v40  ;;  %v3101_v59 = vpop.permute.xlu1 %3100 }
 0xd56   :  { %v3106_v10 = vmul.f32 %v3101_v59, %v8895_v36 }
 0xd57   :  { %v3110_v18 = vsel %vm3108_vm7, %v3107_v30, 0.0 }
 0xd58   :  { %v3109_v42 = vsel %vm3108_vm7, %v3106_v10, 0.0 }
 0xd59   :  { %v3111_v63 = vadd.f32 %v3110_v18, %v3109_v42  ;;  %v8069_v2 = vpop.permute.xlu1 %8068 }
 0xd5a   :  { %v8071_v13 = vunpack.i.h.bf16 %v8069_v2  ;;  %v8070_v5 = vunpack.i.l.bf16 %v8069_v2 }
 0xd5b   :  { %v3112_v39 = vrot.slane %v3111_v63, 4 }
 0xd5c   :  { %v7855_v0 = vpack.c.bf16 %v8071_v13, %v8070_v5 }
 0xd5d   :  { %v3113_v11 = vadd.f32 %v3112_v39, %v3111_v63 }
 0xd5e   :  { %7856 = vmatprep.subr.bf16.mxu0 %v7855_v0 }
 0xd5f   :  { %v3114_v33 = vrot.slane %v3113_v11, 2  ;;  %7858 = vmatpush3.bf16.msra.mxu0 %v7855_v0 }
 0xd60   :  { %7019 = vmatprep.subr.mxu0 %v8268_v8 }
 0xd61   :  { %v3115_v58 = vadd.f32 %v3114_v33, %v3113_v11 }
 0xd63   :  { %v3116_v61 = vrot.slane %v3115_v58, 1 }
 0xd65   :  { %v3117_v16 = vadd.f32 %v3116_v61, %v3115_v58 }
 0xd67   :  { %8185 = vrcp.f32 %v3117_v16 }
 0xd71   :  { %v8186_v20 = vpop.eup %8185 }
 0xd72   :  { %v3120_v62 = vmul.f32 %v8186_v20, %v3107_v30  ;;  %v3119_v26 = vmul.f32 %v8186_v20, %v3106_v10 }
 0xd74   :  { %3125 = vrot.lane.b32.xlu1 %v3120_v62, %s8377_s20  ;;  %3123 = vrot.lane.b32.xlu0 %v3119_v26, %s8377_s20 }
 0xd78   :  { %3295 = vrot.lane.b32.xlu1 %v8739_v47, %s8377_s20  ;;  %8073 = vrot.lane.b32.xlu0 %v8072_v14, %s8377_s20 }
 0xd7c   :  { %3297 = vrot.lane.b32.xlu0 %v8743_v49, %s8377_s20 }
 0xde6   :  { %v3124_v31 = vpop.permute.xlu0 %3123  ;;  %v3126_v15 = vpop.permute.xlu1 %3125 }
 0xde7   :  { %7016 = vmatprep.mubr.msk.f32.mxu0 %vm1947_vm2, %v3124_v31 }
 0xde8   :  { %7017 = vmatmul.mubr.msk.f32.vlgmr.msra.gmra.mrb[38].mxu0 %vm1947_vm2, %v3126_v15 }
 0xde9   :  { %7020 = vmatpush3.msra.mxu0 %v8268_v8 }
 0xdea   :  { %v8074_v46 = vpop.permute.xlu0 %8073  ;;  %v3296_v60 = vpop.permute.xlu1 %3295 }
 0xdeb   :  { %v8076_v12 = vunpack.i.h.bf16 %v8074_v46  ;;  %v8075_v19 = vunpack.i.l.bf16 %v8074_v46  ;;  %v8269_v46 = vld [vmem:[%s9368_s11 + $0x28] sm:$0xff] }
 0xded   :  { %v7859_v30 = vpack.c.bf16 %v8076_v12, %v8075_v19 }
 0xdee   :  { %v3298_v49 = vpop.permute.xlu0 %3297 }
 0xdef   :  { %7861 = vmatprep.subr.msk.bf16.mxu0 %vm8753_vm1, %v7859_v30 }
 0xebb   :  { %v7018_v47 = vpop.f32.mrb[38].mxu0 }
 0xebc   :  { %v3203_v25 = vpop.f32.mrb[39].mxu0 }
 0xebd   :  { %7021 = vmatprep.mubr.msk.f32.mxu0 %vm2041_vm3, %v3203_v25 }
 0xebe   :  { %7022 = vmatmul.mubr.msk.f32.vlgmr.msra.gmra.mrb[18].mxu0 %vm2041_vm3, %v7018_v47 }
 0xebf   :  { %7864 = vmatpush3.bf16.xpose.msk.msra.mxu0 %vm8753_vm1, %v7859_v30  ;;  %7028 = vmatprep.mubr.msk.f32.mxu0 %vm1851_vm0, %v3296_v60 }
 0xec6   :  { %7029 = vmatmul.mubr.msk.f32.vlgmr.msra.gmra.mrb[40].mxu0 %vm1851_vm0, %v3298_v49 }
 0xf99   :  { %v7030_v14 = vpop.f32.mrb[40].mxu0 }
 0xf9a   :  { %v3387_v59 = vmul.f32 0.125, %v7030_v14  ;;  %v3377_v10 = vpop.f32.mrb[41].mxu0 }
 0xf9b   :  { %v3386_v18 = vmul.f32 0.125, %v3377_v10 }
 0xf9c   :  { %v3390_v42 = vmul.f32 1.442695, %v3387_v59 }
 0xf9d   :  { %v3388_v63 = vmul.f32 1.442695, %v3386_v18 }
 0xf9e   :  { %8187 = vpow2.f32 %v3390_v42 }
 0xf9f   :  { %8189 = vpow2.f32 %v3388_v63 }
 0xfa8   :  { %v8188_v2 = vpop.eup %8187 }
 0xfa9   :  { %v8190_v13 = vpop.eup %8189  ;;  %3396 = vrot.lane.b32.xlu0 %v8188_v2, %s8392_s18 }
 0xfaa   :  { %3394 = vrot.lane.b32.xlu1 %v8190_v13, %s8392_s18 }
 0xfae   :  { %8078 = vrot.lane.b32.xlu1 %v8717_v55, %s8393_s25 }
0x101b   :  { %v3397_v5 = vpop.permute.xlu0 %3396 }
0x101c   :  { %v3401_v39 = vmul.f32 %v3397_v5, %v8899_v40  ;;  %v3395_v0 = vpop.permute.xlu1 %3394 }
0x101d   :  { %v3400_v11 = vmul.f32 %v3395_v0, %v8895_v36 }
0x101e   :  { %v3404_v33 = vsel %vm3402_vm8, %v3401_v39, 0.0 }
0x101f   :  { %v3403_v8 = vsel %vm3402_vm8, %v3400_v11, 0.0 }
0x1020   :  { %v3405_v58 = vadd.f32 %v3404_v33, %v3403_v8  ;;  %v8079_v61 = vpop.permute.xlu1 %8078 }
0x1021   :  { %v8081_v16 = vunpack.i.h.bf16 %v8079_v61  ;;  %v8080_v20 = vunpack.i.l.bf16 %v8079_v61 }
0x1022   :  { %v3406_v62 = vrot.slane %v3405_v58, 4 }
0x1023   :  { %v7865_v26 = vpack.c.bf16 %v8081_v16, %v8080_v20 }
0x1024   :  { %v3407_v31 = vadd.f32 %v3406_v62, %v3405_v58 }
0x1025   :  { %7866 = vmatprep.subr.bf16.mxu0 %v7865_v26 }
0x1026   :  { %v3408_v15 = vrot.slane %v3407_v31, 2  ;;  %7868 = vmatpush3.bf16.msra.mxu0 %v7865_v26 }
0x1027   :  { %7038 = vmatprep.subr.mxu0 %v8269_v46 }
0x1028   :  { %v3409_v12 = vadd.f32 %v3408_v15, %v3407_v31 }
0x102a   :  { %v3410_v19 = vrot.slane %v3409_v12, 1 }
0x102c   :  { %v3411_v30 = vadd.f32 %v3410_v19, %v3409_v12  ;;  %v8270_v19 = vld [vmem:[%s9368_s11 + $0x30] sm:$0xff] }
0x102e   :  { %8191 = vrcp.f32 %v3411_v30 }
0x1038   :  { %v8192_v47 = vpop.eup %8191 }
0x1039   :  { %v3413_v25 = vmul.f32 %v8192_v47, %v3400_v11  ;;  %v3414_v60 = vmul.f32 %v8192_v47, %v3401_v39 }
0x103b   :  { %3419 = vrot.lane.b32.xlu1 %v3414_v60, %s8390_s16  ;;  %3417 = vrot.lane.b32.xlu0 %v3413_v25, %s8390_s16 }
0x10ad   :  { %v3418_v49 = vpop.permute.xlu0 %3417  ;;  %v3420_v14 = vpop.permute.xlu1 %3419 }
0x10ae   :  { %7035 = vmatprep.mubr.msk.f32.mxu0 %vm1947_vm2, %v3418_v49 }
0x10af   :  { %7036 = vmatmul.mubr.msk.f32.vlgmr.msra.gmra.mrb[42].mxu0 %vm1947_vm2, %v3420_v14 }
0x10b0   :  { %7039 = vmatpush3.msra.mxu0 %v8269_v46 }
0x10b1   :  { %7871 = vmatprep.subr.msk.bf16.mxu0 %vm8753_vm1, %v8846_v29 }
0x1182   :  { %v7037_v59 = vpop.f32.mrb[42].mxu0 }
0x1183   :  { %v3497_v10 = vpop.f32.mrb[43].mxu0 }
0x1184   :  { %7040 = vmatprep.mubr.msk.f32.mxu0 %vm2041_vm3, %v3497_v10 }
0x1185   :  { %7041 = vmatmul.mubr.msk.f32.vlgmr.msra.gmra.mrb[18].mxu0 %vm2041_vm3, %v7037_v59 }
0x1186   :  { %7874 = vmatpush3.bf16.xpose.msk.msra.mxu0 %vm8753_vm1, %v8846_v29  ;;  %7047 = vmatprep.mubr.msk.f32.mxu0 %vm1851_vm0, %v8741_v48 }
0x118d   :  { %7048 = vmatmul.mubr.msk.f32.vlgmr.msra.gmra.mrb[44].mxu0 %vm1851_vm0, %v8745_v50 }
0x1260   :  { %v7049_v18 = vpop.f32.mrb[44].mxu0 }
0x1261   :  { %v3677_v42 = vmul.f32 0.125, %v7049_v18  ;;  %v3667_v63 = vpop.f32.mrb[45].mxu0 }
0x1262   :  { %v3676_v2 = vmul.f32 0.125, %v3667_v63 }
0x1263   :  { %v3680_v13 = vmul.f32 1.442695, %v3677_v42 }
0x1264   :  { %v3678_v5 = vmul.f32 1.442695, %v3676_v2 }
0x1265   :  { %8193 = vpow2.f32 %v3680_v13 }
0x1266   :  { %8195 = vpow2.f32 %v3678_v5 }
0x126f   :  { %v8194_v39 = vpop.eup %8193 }
0x1270   :  { %v8196_v0 = vpop.eup %8195  ;;  %3686 = vrot.lane.b32.xlu1 %v8194_v39, %s8389_s24 }
0x1271   :  { %3684 = vrot.lane.b32.xlu0 %v8196_v0, %s8389_s24 }
0x1275   :  { %8083 = vrot.lane.b32.xlu0 %v8717_v55, %s8392_s18 }
0x12e2   :  { %v3687_v29 = vpop.permute.xlu1 %3686 }
0x12e3   :  { %v3691_v11 = vmul.f32 %v3687_v29, %v8899_v40  ;;  %v3685_v33 = vpop.permute.xlu0 %3684 }
0x12e4   :  { %v3690_v8 = vmul.f32 %v3685_v33, %v8895_v36 }
0x12e5   :  { %v3694_v58 = vsel %vm3692_vm9, %v3691_v11, 0.0 }
0x12e6   :  { %v3693_v61 = vsel %vm3692_vm9, %v3690_v8, 0.0 }
0x12e7   :  { %v3695_v16 = vadd.f32 %v3694_v58, %v3693_v61  ;;  %v8084_v20 = vpop.permute.xlu0 %8083 }
0x12e8   :  { %v8086_v62 = vunpack.i.h.bf16 %v8084_v20  ;;  %v8085_v26 = vunpack.i.l.bf16 %v8084_v20 }
0x12e9   :  { %v3696_v31 = vrot.slane %v3695_v16, 4 }
0x12ea   :  { %v7875_v15 = vpack.c.bf16 %v8086_v62, %v8085_v26 }
0x12eb   :  { %v3697_v46 = vadd.f32 %v3696_v31, %v3695_v16 }
0x12ec   :  { %7876 = vmatprep.subr.bf16.mxu0 %v7875_v15 }
0x12ed   :  { %v3698_v12 = vrot.slane %v3697_v46, 2  ;;  %7878 = vmatpush3.bf16.msra.mxu0 %v7875_v15 }
0x12ee   :  { %7057 = vmatprep.subr.mxu0 %v8270_v19 }
0x12ef   :  { %v3699_v30 = vadd.f32 %v3698_v12, %v3697_v46 }
0x12f1   :  { %v3700_v47 = vrot.slane %v3699_v30, 1 }
0x12f3   :  { %v3701_v25 = vadd.f32 %v3700_v47, %v3699_v30 }
0x12f5   :  { %8197 = vrcp.f32 %v3701_v25 }
0x12ff   :  { %v8198_v60 = vpop.eup %8197 }
0x1300   :  { %v3703_v49 = vmul.f32 %v8198_v60, %v3690_v8  ;;  %v3704_v14 = vmul.f32 %v8198_v60, %v3691_v11 }
0x1302   :  { %3709 = vrot.lane.b32.xlu0 %v3704_v14, %s8388_s8  ;;  %3707 = vrot.lane.b32.xlu1 %v3703_v49, %s8388_s8 }
0x1306   :  { %3879 = vrot.lane.b32.xlu0 %v8741_v48, %s8377_s20  ;;  %8088 = vrot.lane.b32.xlu1 %v8087_v23, %s8377_s20 }
0x130a   :  { %3881 = vrot.lane.b32.xlu1 %v8745_v50, %s8377_s20 }
0x1374   :  { %v3708_v59 = vpop.permute.xlu1 %3707  ;;  %v3710_v10 = vpop.permute.xlu0 %3709 }
0x1375   :  { %7054 = vmatprep.mubr.msk.f32.mxu0 %vm1947_vm2, %v3708_v59 }
0x1376   :  { %7055 = vmatmul.mubr.msk.f32.vlgmr.msra.gmra.mrb[46].mxu0 %vm1947_vm2, %v3710_v10  ;;  %v9375_v10 = vsub.s32 4, %v8656_v56 }
0x1377   :  { %7058 = vmatpush3.msra.mxu0 %v8270_v19 }
0x1378   :  { %v8089_v18 = vpop.permute.xlu1 %8088  ;;  %v3880_v32 = vpop.permute.xlu0 %3879 }
0x1379   :  { %v8091_v42 = vunpack.i.h.bf16 %v8089_v18  ;;  %v8090_v63 = vunpack.i.l.bf16 %v8089_v18  ;;  %v350_v18 = vrot.slane %v8938_v41, %v9375_v10 }
0x137b   :  { %v7879_v2 = vpack.c.bf16 %v8091_v42, %v8090_v63  ;;  %v9376_v42 = vpack.i.bf16 %v8808_v45, %v8806_v44  ;;  %v592_v63 = vadd.f32 %v8707_v21, %v350_v18 }
0x137c   :  { %v3882_v50 = vpop.permute.xlu1 %3881 }
0x137d   :  { %7881 = vmatprep.subr.msk.bf16.mxu0 %vm8753_vm1, %v7879_v2 }
0x1449   :  { %v7056_v48 = vpop.f32.mrb[46].mxu0 }
0x144a   :  { %v3787_v7 = vpop.f32.mrb[47].mxu0 }
0x144b   :  { %7059 = vmatprep.mubr.msk.f32.mxu0 %vm2041_vm3, %v3787_v7 }
0x144c   :  { %7060 = vmatmul.mubr.msk.f32.vlgmr.msra.gmra.mrb[18].mxu0 %vm2041_vm3, %v7056_v48 }
0x144d   :  { %7884 = vmatpush3.bf16.xpose.msk.msra.mxu0 %vm8753_vm1, %v7879_v2  ;;  %7066 = vmatprep.mubr.msk.f32.mxu0 %vm1851_vm0, %v3880_v32  ;;  %v598_v2 = vadd.f32 %v8711_v35, %v350_v18 }
0x1454   :  { %7067 = vmatmul.mubr.msk.f32.vlgmr.msra.gmra.mrb[48].mxu0 %vm1851_vm0, %v3882_v50  ;;  %v8272_v50 = vld [vmem:[%s9368_s11 + $0x40] sm:$0xff] }
0x1527   :  { %v7068_v23 = vpop.f32.mrb[48].mxu0 }
0x1528   :  { %v3971_v13 = vmul.f32 0.125, %v7068_v23  ;;  %v3961_v5 = vpop.f32.mrb[49].mxu0 }
0x1529   :  { %v3970_v39 = vmul.f32 0.125, %v3961_v5 }
0x152a   :  { %v3974_v0 = vmul.f32 1.442695, %v3971_v13 }
0x152b   :  { %v3972_v29 = vmul.f32 1.442695, %v3970_v39 }
0x152c   :  { %8199 = vpow2.f32 %v3974_v0 }
0x152d   :  { %8201 = vpow2.f32 %v3972_v29 }
0x1536   :  { %v8200_v11 = vpop.eup %8199 }
0x1537   :  { %v8202_v33 = vpop.eup %8201  ;;  %3980 = vrot.lane.b32.xlu1 %v8200_v11, %s8387_s30 }
0x1538   :  { %3978 = vrot.lane.b32.xlu0 %v8202_v33, %s8387_s30  ;;  %v9138_v33 = vmax.f32 %v8893_v22, 0.0 }
0x153c   :  { %8093 = vrot.lane.b32.xlu0 %v8717_v55, %s8394_s10 }
0x15a9   :  { %v3981_v8 = vpop.permute.xlu1 %3980 }
0x15aa   :  { %v3985_v58 = vmul.f32 %v3981_v8, %v8899_v40  ;;  %v3979_v61 = vpop.permute.xlu0 %3978  ;;  %v8271_v40 = vld [vmem:[%s9368_s11 + $0x38] sm:$0xff] }
0x15ab   :  { %v3984_v16 = vmul.f32 %v3979_v61, %v8895_v36 }
0x15ac   :  { %v3988_v20 = vsel %vm3986_vm10, %v3985_v58, 0.0 }
0x15ad   :  { %v3987_v62 = vsel %vm3986_vm10, %v3984_v16, 0.0 }
0x15ae   :  { %v3989_v26 = vadd.f32 %v3988_v20, %v3987_v62  ;;  %v8094_v31 = vpop.permute.xlu0 %8093 }
0x15af   :  { %v8096_v15 = vunpack.i.h.bf16 %v8094_v31  ;;  %v8095_v46 = vunpack.i.l.bf16 %v8094_v31 }
0x15b0   :  { %v3990_v12 = vrot.slane %v3989_v26, 4 }
0x15b1   :  { %v7885_v19 = vpack.c.bf16 %v8096_v15, %v8095_v46 }
0x15b2   :  { %v3991_v30 = vadd.f32 %v3990_v12, %v3989_v26 }
0x15b3   :  { %7886 = vmatprep.subr.bf16.mxu0 %v7885_v19 }
0x15b4   :  { %v3992_v47 = vrot.slane %v3991_v30, 2  ;;  %7888 = vmatpush3.bf16.msra.mxu0 %v7885_v19 }
0x15b5   :  { %7076 = vmatprep.subr.mxu0 %v8271_v40 }
0x15b6   :  { %v3993_v36 = vadd.f32 %v3992_v47, %v3991_v30 }
0x15b8   :  { %v3994_v25 = vrot.slane %v3993_v36, 1 }
0x15ba   :  { %v3995_v60 = vadd.f32 %v3994_v25, %v3993_v36 }
0x15bc   :  { %8203 = vrcp.f32 %v3995_v60 }
0x15c6   :  { %v8204_v49 = vpop.eup %8203 }
0x15c7   :  { %v3998_v14 = vmul.f32 %v8204_v49, %v3985_v58  ;;  %v3997_v59 = vmul.f32 %v8204_v49, %v3984_v16 }
0x15c9   :  { %4003 = vrot.lane.b32.xlu0 %v3998_v14, %s8384_s19  ;;  %4001 = vrot.lane.b32.xlu1 %v3997_v59, %s8384_s19 }
0x15cd   :  { %8103 = vrot.lane.b32.xlu0 %v9376_v42, %s8377_s20  ;;  %8098 = vrot.lane.b32.xlu1 %v8717_v55, %s8377_s20 }
0x15d1   :  { %4452 = vrot.lane.b32.xlu0 %v598_v2, %s8377_s20  ;;  %4450 = vrot.lane.b32.xlu1 %v592_v63, %s8377_s20 }
0x163b   :  { %v4002_v48 = vpop.permute.xlu1 %4001  ;;  %v4004_v7 = vpop.permute.xlu0 %4003 }
0x163c   :  { %7073 = vmatprep.mubr.msk.f32.mxu0 %vm1947_vm2, %v4002_v48 }
0x163d   :  { %7074 = vmatmul.mubr.msk.f32.vlgmr.msra.gmra.mrb[50].mxu0 %vm1947_vm2, %v4004_v7 }
0x163e   :  { %7077 = vmatpush3.msra.mxu0 %v8271_v40 }
0x163f   :  { %7891 = vmatprep.subr.msk.bf16.mxu0 %vm8753_vm1, %v8816_v27  ;;  %v8099_v44 = vpop.permute.xlu1 %8098  ;;  %v8104_v19 = vpop.permute.xlu0 %8103 }
0x1640   :  { %v8101_v45 = vunpack.i.h.bf16 %v8099_v44  ;;  %v8100_v21 = vunpack.i.l.bf16 %v8099_v44  ;;  %v8106_v30 = vunpack.i.h.bf16 %v8104_v19  ;;  %v8105_v47 = vunpack.i.l.bf16 %v8104_v19 }
0x1642   :  { %v7895_v32 = vpack.c.bf16 %v8101_v45, %v8100_v21  ;;  %v7899_v25 = vpack.c.bf16 %v8106_v30, %v8105_v47 }
0x1643   :  { %v4451_v14 = vpop.permute.xlu1 %4450  ;;  %v4453_v59 = vpop.permute.xlu0 %4452 }
0x1710   :  { %v7075_v41 = vpop.f32.mrb[50].mxu0 }
0x1711   :  { %v4081_v35 = vpop.f32.mrb[51].mxu0 }
0x1712   :  { %7078 = vmatprep.mubr.msk.f32.mxu0 %vm2041_vm3, %v4081_v35 }
0x1713   :  { %7079 = vmatmul.mubr.msk.f32.vlgmr.msra.gmra.mrb[18].mxu0 %vm2041_vm3, %v7075_v41 }
0x1714   :  { %7894 = vmatpush3.bf16.xpose.msk.msra.mxu0 %vm8753_vm1, %v8816_v27  ;;  %7085 = vmatprep.mubr.msk.f32.mxu0 %vm1851_vm0, %v592_v63  ;;  %v9135_v27 = vmax.f32 %v8897_v43, 0.0 }
0x1715   :  { %7896 = vmatprep.subr.bf16.mxu0 %v7895_v32 }
0x171b   :  { %7086 = vmatmul.mubr.msk.f32.vlgmr.msra.gmra.mrb[52].mxu0 %vm1851_vm0, %v598_v2 }
0x171c   :  { %7898 = vmatpush3.bf16.msra.mxu0 %v7895_v32 }
0x171d   :  { %7095 = vmatprep.subr.mxu0 %v8272_v50 }
0x17ee   :  { %v7087_v23 = vpop.f32.mrb[52].mxu0 }
0x17ef   :  { %v4261_v13 = vmul.f32 0.125, %v7087_v23  ;;  %v4251_v5 = vpop.f32.mrb[53].mxu0 }
0x17f0   :  { %v4260_v39 = vmul.f32 0.125, %v4251_v5 }
0x17f1   :  { %v4264_v0 = vmul.f32 1.442695, %v4261_v13 }
0x17f2   :  { %v4262_v29 = vmul.f32 1.442695, %v4260_v39 }
0x17f3   :  { %8205 = vpow2.f32 %v4264_v0 }
0x17f4   :  { %8207 = vpow2.f32 %v4262_v29 }
0x17fd   :  { %v8206_v11 = vpop.eup %8205 }
0x17fe   :  { %v8208_v8 = vpop.eup %8207  ;;  %v4267_v58 = vmul.f32 %v8206_v11, %v9135_v27 }
0x17ff   :  { %v4266_v61 = vmul.f32 %v8208_v8, %v9138_v33 }
0x1800   :  { %v4269_v16 = vsel %vm1947_vm2, %v4267_v58, 0.0 }
0x1801   :  { %v4268_v20 = vsel %vm1947_vm2, %v4266_v61, 0.0 }
0x1802   :  { %v4270_v62 = vadd.f32 %v4269_v16, %v4268_v20 }
0x1804   :  { %v4271_v26 = vrot.slane %v4270_v62, 4 }
0x1806   :  { %v4272_v31 = vadd.f32 %v4271_v26, %v4270_v62 }
0x1808   :  { %v4273_v15 = vrot.slane %v4272_v31, 2 }
0x180a   :  { %v4274_v46 = vadd.f32 %v4273_v15, %v4272_v31 }
0x180c   :  { %v4275_v43 = vrot.slane %v4274_v46, 1 }
0x180e   :  { %v4276_v12 = vadd.f32 %v4275_v43, %v4274_v46 }
0x1810   :  { %8209 = vrcp.f32 %v4276_v12 }
0x181a   :  { %v8210_v22 = vpop.eup %8209 }
0x181b   :  { %v4278_v40 = vmul.f32 %v8210_v22, %v4266_v61  ;;  %v4279_v36 = vmul.f32 %v8210_v22, %v4267_v58  ;;  %v8273_v58 = vld [vmem:[%s9368_s11 + $0x48] sm:$0xff] }
0x181d   :  { %7092 = vmatprep.mubr.msk.f32.mxu0 %vm1947_vm2, %v4278_v40 }
0x181e   :  { %7093 = vmatmul.mubr.msk.f32.vlgmr.msra.gmra.mrb[54].mxu0 %vm1947_vm2, %v4279_v36 }
0x181f   :  { %7096 = vmatpush3.msra.mxu0 %v8272_v50 }
0x1820   :  { %7901 = vmatprep.subr.msk.bf16.mxu0 %vm8753_vm1, %v7899_v25 }
0x18f1   :  { %v7094_v60 = vpop.f32.mrb[54].mxu0 }
0x18f2   :  { %v4358_v49 = vpop.f32.mrb[55].mxu0 }
0x18f3   :  { %7097 = vmatprep.mubr.msk.f32.mxu0 %vm2041_vm3, %v4358_v49 }
0x18f4   :  { %7098 = vmatmul.mubr.msk.f32.vlgmr.msra.gmra.mrb[18].mxu0 %vm2041_vm3, %v7094_v60 }
0x18f5   :  { %7904 = vmatpush3.bf16.xpose.msk.msra.mxu0 %vm8753_vm1, %v7899_v25  ;;  %7104 = vmatprep.mubr.msk.f32.mxu0 %vm1851_vm0, %v4451_v14 }
0x18fc   :  { %7105 = vmatmul.mubr.msk.f32.vlgmr.msra.gmra.mrb[56].mxu0 %vm1851_vm0, %v4453_v59 }
0x19cf   :  { %v7106_v10 = vpop.f32.mrb[56].mxu0 }
0x19d0   :  { %v4542_v18 = vmul.f32 0.125, %v7106_v10  ;;  %v4532_v42 = vpop.f32.mrb[57].mxu0 }
0x19d1   :  { %v4541_v63 = vmul.f32 0.125, %v4532_v42 }
0x19d2   :  { %v4545_v2 = vmul.f32 1.442695, %v4542_v18 }
0x19d3   :  { %v4543_v48 = vmul.f32 1.442695, %v4541_v63 }
0x19d4   :  { %8211 = vpow2.f32 %v4545_v2 }
0x19d5   :  { %8213 = vpow2.f32 %v4543_v48 }
0x19de   :  { %v8212_v7 = vpop.eup %8211 }
0x19df   :  { %v8214_v44 = vpop.eup %8213  ;;  %4551 = vrot.lane.b32.xlu0 %v8212_v7, %s8384_s19 }
0x19e0   :  { %4549 = vrot.lane.b32.xlu1 %v8214_v44, %s8384_s19 }
0x19e4   :  { %8108 = vrot.lane.b32.xlu1 %v8717_v55, %s8395_s4 }
0x1a51   :  { %v4552_v45 = vpop.permute.xlu0 %4551 }
0x1a52   :  { %v4556_v21 = vmul.f32 %v4552_v45, %v9135_v27  ;;  %v4550_v41 = vpop.permute.xlu1 %4549 }
0x1a53   :  { %v4555_v35 = vmul.f32 %v4550_v41, %v9138_v33  ;;  %v8274_v41 = vld [vmem:[%s9368_s11 + $0x50] sm:$0xff] }
0x1a54   :  { %v4558_v32 = vsel %vm2232_vm4, %v4556_v21, 0.0 }
0x1a55   :  { %v4557_v50 = vsel %vm2232_vm4, %v4555_v35, 0.0 }
0x1a56   :  { %v4559_v23 = vadd.f32 %v4558_v32, %v4557_v50  ;;  %v8109_v13 = vpop.permute.xlu1 %8108 }
0x1a57   :  { %v8111_v5 = vunpack.i.h.bf16 %v8109_v13  ;;  %v8110_v39 = vunpack.i.l.bf16 %v8109_v13 }
0x1a58   :  { %v4560_v0 = vrot.slane %v4559_v23, 4 }
0x1a59   :  { %v7905_v29 = vpack.c.bf16 %v8111_v5, %v8110_v39  ;;  %v9377_v39 = vpack.i.bf16 %v8812_v52, %v8810_v51 }
0x1a5a   :  { %v4561_v11 = vadd.f32 %v4560_v0, %v4559_v23 }
0x1a5b   :  { %7906 = vmatprep.subr.bf16.mxu0 %v7905_v29 }
0x1a5c   :  { %v4562_v8 = vrot.slane %v4561_v11, 2  ;;  %7908 = vmatpush3.bf16.msra.mxu0 %v7905_v29 }
0x1a5d   :  { %7114 = vmatprep.subr.mxu0 %v8273_v58 }
0x1a5e   :  { %v4563_v61 = vadd.f32 %v4562_v8, %v4561_v11 }
0x1a60   :  { %v4564_v16 = vrot.slane %v4563_v61, 1 }
0x1a62   :  { %v4565_v20 = vadd.f32 %v4564_v16, %v4563_v61 }
0x1a64   :  { %8215 = vrcp.f32 %v4565_v20 }
0x1a6e   :  { %v8216_v62 = vpop.eup %8215 }
0x1a6f   :  { %v4567_v26 = vmul.f32 %v8216_v62, %v4555_v35  ;;  %v4568_v31 = vmul.f32 %v8216_v62, %v4556_v21 }
0x1a71   :  { %4573 = vrot.lane.b32.xlu1 %v4568_v31, %s8387_s30  ;;  %4571 = vrot.lane.b32.xlu0 %v4567_v26, %s8387_s30 }
0x1ae3   :  { %v4572_v15 = vpop.permute.xlu0 %4571  ;;  %v4574_v46 = vpop.permute.xlu1 %4573 }
0x1ae4   :  { %7111 = vmatprep.mubr.msk.f32.mxu0 %vm1947_vm2, %v4572_v15 }
0x1ae5   :  { %7112 = vmatmul.mubr.msk.f32.vlgmr.msra.gmra.mrb[58].mxu0 %vm1947_vm2, %v4574_v46 }
0x1ae6   :  { %7115 = vmatpush3.msra.mxu0 %v8273_v58 }
0x1ae7   :  { %7911 = vmatprep.subr.msk.bf16.mxu0 %vm8753_vm1, %v8822_v6 }
0x1bb8   :  { %v7113_v43 = vpop.f32.mrb[58].mxu0 }
0x1bb9   :  { %v4651_v12 = vpop.f32.mrb[59].mxu0 }
0x1bba   :  { %7116 = vmatprep.mubr.msk.f32.mxu0 %vm2041_vm3, %v4651_v12 }
0x1bbb   :  { %7117 = vmatmul.mubr.msk.f32.vlgmr.msra.gmra.mrb[18].mxu0 %vm2041_vm3, %v7113_v43 }
0x1bbc   :  { %7914 = vmatpush3.bf16.xpose.msk.msra.mxu0 %vm8753_vm1, %v8822_v6  ;;  %7123 = vmatprep.mubr.msk.f32.mxu0 %vm1851_vm0, %v8709_v28 }
0x1bc3   :  { %7124 = vmatmul.mubr.msk.f32.vlgmr.msra.gmra.mrb[60].mxu0 %vm1851_vm0, %v8713_v53 }
0x1c96   :  { %v7125_v19 = vpop.f32.mrb[60].mxu0 }
0x1c97   :  { %v4831_v22 = vmul.f32 0.125, %v7125_v19  ;;  %v4821_v30 = vpop.f32.mrb[61].mxu0 }
0x1c98   :  { %v4830_v47 = vmul.f32 0.125, %v4821_v30 }
0x1c99   :  { %v4834_v40 = vmul.f32 1.442695, %v4831_v22 }
0x1c9a   :  { %v4832_v36 = vmul.f32 1.442695, %v4830_v47 }
0x1c9b   :  { %8217 = vpow2.f32 %v4834_v40 }
0x1c9c   :  { %8219 = vpow2.f32 %v4832_v36 }
0x1ca5   :  { %v8218_v25 = vpop.eup %8217 }
0x1ca6   :  { %v8220_v60 = vpop.eup %8219  ;;  %4840 = vrot.lane.b32.xlu1 %v8218_v25, %s8388_s8 }
0x1ca7   :  { %4838 = vrot.lane.b32.xlu0 %v8220_v60, %s8388_s8 }
0x1cab   :  { %8113 = vrot.lane.b32.xlu0 %v8717_v55, %s8390_s16 }
0x1d18   :  { %v4841_v6 = vpop.permute.xlu1 %4840 }
0x1d19   :  { %v4845_v49 = vmul.f32 %v4841_v6, %v9135_v27  ;;  %v4839_v14 = vpop.permute.xlu0 %4838 }
0x1d1a   :  { %v4844_v59 = vmul.f32 %v4839_v14, %v9138_v33 }
0x1d1b   :  { %v4847_v10 = vsel %vm2524_vm5, %v4845_v49, 0.0 }
0x1d1c   :  { %v4846_v18 = vsel %vm2524_vm5, %v4844_v59, 0.0 }
0x1d1d   :  { %v4848_v42 = vadd.f32 %v4847_v10, %v4846_v18  ;;  %v8114_v63 = vpop.permute.xlu0 %8113  ;;  %v8275_v18 = vld [vmem:[%s9368_s11 + $0x58] sm:$0xff] }
0x1d1e   :  { %v8116_v2 = vunpack.i.h.bf16 %v8114_v63  ;;  %v8115_v48 = vunpack.i.l.bf16 %v8114_v63 }
0x1d1f   :  { %v4849_v7 = vrot.slane %v4848_v42, 4 }
0x1d20   :  { %v7915_v44 = vpack.c.bf16 %v8116_v2, %v8115_v48 }
0x1d21   :  { %v4850_v45 = vadd.f32 %v4849_v7, %v4848_v42 }
0x1d22   :  { %7916 = vmatprep.subr.bf16.mxu0 %v7915_v44 }
0x1d23   :  { %v4851_v21 = vrot.slane %v4850_v45, 2  ;;  %7918 = vmatpush3.bf16.msra.mxu0 %v7915_v44 }
0x1d24   :  { %7133 = vmatprep.subr.mxu0 %v8274_v41 }
0x1d25   :  { %v4852_v35 = vadd.f32 %v4851_v21, %v4850_v45 }
0x1d27   :  { %v4853_v32 = vrot.slane %v4852_v35, 1 }
0x1d29   :  { %v4854_v50 = vadd.f32 %v4853_v32, %v4852_v35  ;;  %v8276_v32 = vld [vmem:[%s9368_s11 + $0x60] sm:$0xff] }
0x1d2b   :  { %8221 = vrcp.f32 %v4854_v50 }
0x1d35   :  { %v8222_v23 = vpop.eup %8221 }
0x1d36   :  { %v4856_v13 = vmul.f32 %v8222_v23, %v4844_v59  ;;  %v4857_v5 = vmul.f32 %v8222_v23, %v4845_v49 }
0x1d38   :  { %4862 = vrot.lane.b32.xlu0 %v4857_v5, %s8389_s24  ;;  %4860 = vrot.lane.b32.xlu1 %v4856_v13, %s8389_s24 }
0x1d3c   :  { %5032 = vrot.lane.b32.xlu0 %v8709_v28, %s8377_s20  ;;  %8118 = vrot.lane.b32.xlu1 %v9377_v39, %s8377_s20 }
0x1d40   :  { %5034 = vrot.lane.b32.xlu1 %v8713_v53, %s8377_s20 }
0x1daa   :  { %v4861_v0 = vpop.permute.xlu1 %4860  ;;  %v4863_v29 = vpop.permute.xlu0 %4862 }
0x1dab   :  { %7130 = vmatprep.mubr.msk.f32.mxu0 %vm1947_vm2, %v4861_v0 }
0x1dac   :  { %7131 = vmatmul.mubr.msk.f32.vlgmr.msra.gmra.mrb[62].mxu0 %vm1947_vm2, %v4863_v29 }
0x1dad   :  { %7134 = vmatpush3.msra.mxu0 %v8274_v41 }
0x1dae   :  { %v8119_v11 = vpop.permute.xlu1 %8118  ;;  %v5033_v52 = vpop.permute.xlu0 %5032 }
0x1daf   :  { %v8121_v8 = vunpack.i.h.bf16 %v8119_v11  ;;  %v8120_v58 = vunpack.i.l.bf16 %v8119_v11  ;;  %v9378_v11 = vpack.i.bf16 %v8872_v37, %v8868_v24 }
0x1db1   :  { %v7919_v61 = vpack.c.bf16 %v8121_v8, %v8120_v58 }
0x1db2   :  { %v5035_v53 = vpop.permute.xlu1 %5034 }
0x1db3   :  { %7921 = vmatprep.subr.msk.bf16.mxu0 %vm8753_vm1, %v7919_v61 }
0x1e7f   :  { %v7132_v28 = vpop.f32.mrb[62].mxu0 }
0x1e80   :  { %v4940_v51 = vpop.f32.mrb[63].mxu0 }
0x1e81   :  { %7135 = vmatprep.mubr.msk.f32.mxu0 %vm2041_vm3, %v4940_v51 }
0x1e82   :  { %7136 = vmatmul.mubr.msk.f32.vlgmr.msra.gmra.mrb[18].mxu0 %vm2041_vm3, %v7132_v28 }
0x1e83   :  { %7924 = vmatpush3.bf16.xpose.msk.msra.mxu0 %vm8753_vm1, %v7919_v61  ;;  %7142 = vmatprep.mubr.msk.f32.mxu0 %vm1851_vm0, %v5033_v52 }
0x1e8a   :  { %7143 = vmatmul.mubr.msk.f32.vlgmr.msra.gmra.mrb[64].mxu0 %vm1851_vm0, %v5035_v53 }
0x1f5d   :  { %v7144_v16 = vpop.f32.mrb[64].mxu0 }
0x1f5e   :  { %v5124_v20 = vmul.f32 0.125, %v7144_v16  ;;  %v5114_v62 = vpop.f32.mrb[65].mxu0 }
0x1f5f   :  { %v5123_v26 = vmul.f32 0.125, %v5114_v62 }
0x1f60   :  { %v5127_v31 = vmul.f32 1.442695, %v5124_v20 }
0x1f61   :  { %v5125_v15 = vmul.f32 1.442695, %v5123_v26 }
0x1f62   :  { %8223 = vpow2.f32 %v5127_v31 }
0x1f63   :  { %8225 = vpow2.f32 %v5125_v15 }
0x1f6c   :  { %v8224_v46 = vpop.eup %8223 }
0x1f6d   :  { %v8226_v43 = vpop.eup %8225  ;;  %5133 = vrot.lane.b32.xlu1 %v8224_v46, %s8390_s16 }
0x1f6e   :  { %5131 = vrot.lane.b32.xlu0 %v8226_v43, %s8390_s16 }
0x1f72   :  { %8123 = vrot.lane.b32.xlu0 %v8717_v55, %s8396_s17 }
0x1fdf   :  { %v5134_v12 = vpop.permute.xlu1 %5133 }
0x1fe0   :  { %v5138_v19 = vmul.f32 %v5134_v12, %v9135_v27  ;;  %v5132_v22 = vpop.permute.xlu0 %5131 }
0x1fe1   :  { %v5137_v30 = vmul.f32 %v5132_v22, %v9138_v33 }
0x1fe2   :  { %v5140_v47 = vsel %vm2818_vm6, %v5138_v19, 0.0 }
0x1fe3   :  { %v5139_v40 = vsel %vm2818_vm6, %v5137_v30, 0.0 }
0x1fe4   :  { %v5141_v36 = vadd.f32 %v5140_v47, %v5139_v40  ;;  %v8124_v25 = vpop.permute.xlu0 %8123 }
0x1fe5   :  { %v8126_v60 = vunpack.i.h.bf16 %v8124_v25  ;;  %v8125_v6 = vunpack.i.l.bf16 %v8124_v25 }
0x1fe6   :  { %v5142_v49 = vrot.slane %v5141_v36, 4 }
0x1fe7   :  { %v7925_v14 = vpack.c.bf16 %v8126_v60, %v8125_v6 }
0x1fe8   :  { %v5143_v59 = vadd.f32 %v5142_v49, %v5141_v36 }
0x1fe9   :  { %7926 = vmatprep.subr.bf16.mxu0 %v7925_v14 }
0x1fea   :  { %v5144_v10 = vrot.slane %v5143_v59, 2  ;;  %7928 = vmatpush3.bf16.msra.mxu0 %v7925_v14 }
0x1feb   :  { %7152 = vmatprep.subr.mxu0 %v8275_v18 }
0x1fec   :  { %v5145_v42 = vadd.f32 %v5144_v10, %v5143_v59 }
0x1fee   :  { %v5146_v63 = vrot.slane %v5145_v42, 1 }
0x1ff0   :  { %v5147_v2 = vadd.f32 %v5146_v63, %v5145_v42 }
0x1ff2   :  { %8227 = vrcp.f32 %v5147_v2 }
0x1ffc   :  { %v8228_v48 = vpop.eup %8227 }
0x1ffd   :  { %v5149_v7 = vmul.f32 %v8228_v48, %v5137_v30  ;;  %v5150_v44 = vmul.f32 %v8228_v48, %v5138_v19 }
0x1fff   :  { %5155 = vrot.lane.b32.xlu0 %v5150_v44, %s8392_s18  ;;  %5153 = vrot.lane.b32.xlu1 %v5149_v7, %s8392_s18 }
0x2071   :  { %v5154_v45 = vpop.permute.xlu1 %5153  ;;  %v5156_v21 = vpop.permute.xlu0 %5155 }
0x2072   :  { %7149 = vmatprep.mubr.msk.f32.mxu0 %vm1947_vm2, %v5154_v45 }
0x2073   :  { %7150 = vmatmul.mubr.msk.f32.vlgmr.msra.gmra.mrb[66].mxu0 %vm1947_vm2, %v5156_v21 }
0x2074   :  { %7153 = vmatpush3.msra.mxu0 %v8275_v18 }
0x2075   :  { %7931 = vmatprep.subr.msk.bf16.mxu0 %vm8753_vm1, %v8878_v17 }
0x2146   :  { %v7151_v41 = vpop.f32.mrb[66].mxu0 }
0x2147   :  { %v5233_v35 = vpop.f32.mrb[67].mxu0 }
0x2148   :  { %7154 = vmatprep.mubr.msk.f32.mxu0 %vm2041_vm3, %v5233_v35 }
0x2149   :  { %7155 = vmatmul.mubr.msk.f32.vlgmr.msra.gmra.mrb[18].mxu0 %vm2041_vm3, %v7151_v41 }
0x214a   :  { %7934 = vmatpush3.bf16.xpose.msk.msra.mxu0 %vm8753_vm1, %v8878_v17  ;;  %7161 = vmatprep.mubr.msk.f32.mxu0 %vm1851_vm0, %v8790_v54 }
0x214b   :  { %7171 = vmatprep.subr.mxu0 %v8276_v32 }
0x2151   :  { %7162 = vmatmul.mubr.msk.f32.vlgmr.msra.gmra.mrb[68].mxu0 %vm1851_vm0, %v8795_v9 }
0x2152   :  { %7172 = vmatpush3.msra.mxu0 %v8276_v32 }
0x2224   :  { %v7163_v50 = vpop.f32.mrb[68].mxu0 }
0x2225   :  { %v5413_v23 = vmul.f32 0.125, %v7163_v50  ;;  %v5403_v13 = vpop.f32.mrb[69].mxu0 }
0x2226   :  { %v5412_v5 = vmul.f32 0.125, %v5403_v13 }
0x2227   :  { %v5416_v39 = vmul.f32 1.442695, %v5413_v23 }
0x2228   :  { %v5414_v0 = vmul.f32 1.442695, %v5412_v5 }
0x2229   :  { %8229 = vpow2.f32 %v5416_v39 }
0x222a   :  { %8231 = vpow2.f32 %v5414_v0 }
0x2233   :  { %v8230_v17 = vpop.eup %8229 }
0x2234   :  { %v8232_v29 = vpop.eup %8231  ;;  %5422 = vrot.lane.b32.xlu0 %v8230_v17, %s8377_s20 }
0x2235   :  { %5420 = vrot.lane.b32.xlu1 %v8232_v29, %s8377_s20 }
0x2238   :  { %8133 = vrot.lane.b32.xlu0 %v9378_v11, %s8377_s20 }
0x2239   :  { %8128 = vrot.lane.b32.xlu1 %v8717_v55, %s8388_s8 }
0x22a6   :  { %v5423_v8 = vpop.permute.xlu0 %5422 }
0x22a7   :  { %v5427_v58 = vmul.f32 %v5423_v8, %v9135_v27  ;;  %v5421_v61 = vpop.permute.xlu1 %5420 }
0x22a8   :  { %v5426_v28 = vmul.f32 %v5421_v61, %v9138_v33 }
0x22a9   :  { %v5429_v51 = vsel %vm3108_vm7, %v5427_v58, 0.0 }
0x22aa   :  { %v5428_v52 = vsel %vm3108_vm7, %v5426_v28, 0.0  ;;  %v8134_v53 = vpop.permute.xlu0 %8133 }
0x22ab   :  { %v5430_v16 = vadd.f32 %v5429_v51, %v5428_v52  ;;  %v8129_v20 = vpop.permute.xlu1 %8128  ;;  %v8136_v62 = vunpack.i.h.bf16 %v8134_v53  ;;  %v8135_v26 = vunpack.i.l.bf16 %v8134_v53 }
0x22ac   :  { %v8131_v24 = vunpack.i.h.bf16 %v8129_v20  ;;  %v8130_v37 = vunpack.i.l.bf16 %v8129_v20 }
0x22ad   :  { %v5431_v31 = vrot.slane %v5430_v16, 4  ;;  %v7939_v43 = vpack.c.bf16 %v8136_v62, %v8135_v26 }
0x22ae   :  { %v7935_v15 = vpack.c.bf16 %v8131_v24, %v8130_v37  ;;  %v9380_v37 = vpack.i.bf16 %v8874_v1, %v8870_v34 }
0x22af   :  { %v5432_v46 = vadd.f32 %v5431_v31, %v5430_v16 }
0x22b0   :  { %7936 = vmatprep.subr.bf16.mxu1 %v7935_v15 }
0x22b1   :  { %v5433_v12 = vrot.slane %v5432_v46, 2  ;;  %7938 = vmatpush3.bf16.msra.mxu1 %v7935_v15 }
0x22b2   :  { %7941 = vmatprep.subr.msk.bf16.mxu1 %vm8753_vm1, %v7939_v43 }
0x22b3   :  { %v5434_v19 = vadd.f32 %v5433_v12, %v5432_v46 }
0x22b5   :  { %v5435_v22 = vrot.slane %v5434_v19, 1 }
0x22b7   :  { %v5436_v30 = vadd.f32 %v5435_v22, %v5434_v19 }
0x22b9   :  { %8233 = vrcp.f32 %v5436_v30 }
0x22c3   :  { %v8234_v47 = vpop.eup %8233 }
0x22c4   :  { %v5439_v40 = vmul.f32 %v8234_v47, %v5427_v58  ;;  %v5438_v36 = vmul.f32 %v8234_v47, %v5426_v28  ;;  %v8278_v58 = vld [vmem:[%s9368_s11 + $0x68] sm:$0xff] }
0x22c6   :  { %5444 = vrot.lane.b32.xlu0 %v5439_v40, %s8377_s20  ;;  %5442 = vrot.lane.b32.xlu1 %v5438_v36, %s8377_s20 }
0x22ca   :  { %5616 = vrot.lane.b32.xlu0 %v8795_v9, %s8377_s20  ;;  %5614 = vrot.lane.b32.xlu1 %v8790_v54, %s8377_s20  ;;  %v8277_v9 = vld [vmem:[%s9363_s6] sm:$0xff]  ;;  %v9379_v54 = vsub.s32 7, %v8656_v56  ;;  %s8397_s6 = smov 24  }
0x22cc   :  { %v362_v49 = vrot.slane %v8277_v9, %v9379_v54 }
0x22ce   :  { %v671_v14 = vadd.f32 %v8792_v57, %v362_v49  ;;  %v677_v10 = vadd.f32 %v8797_v4, %v362_v49 }
0x2338   :  { %v5445_v25 = vpop.permute.xlu0 %5444  ;;  %v5443_v60 = vpop.permute.xlu1 %5442 }
0x2339   :  { %7168 = vmatprep.mubr.msk.f32.mxu1 %vm1947_vm2, %v5443_v60 }
0x233a   :  { %7169 = vmatmul.mubr.msk.f32.vlgmr.msra.gmra.mrb[20].mxu1 %vm1947_vm2, %v5445_v25 }
0x233b   :  { %7944 = vmatpush3.bf16.xpose.msk.msra.mxu1 %vm8753_vm1, %v7939_v43 }
0x233c   :  { %7951 = vmatprep.subr.msk.bf16.mxu1 %vm8753_vm1, %v8882_v38  ;;  %v5615_v6 = vpop.permute.xlu1 %5614  ;;  %v5617_v59 = vpop.permute.xlu0 %5616 }
0x233d   :  { %7180 = vmatprep.mubr.msk.f32.mxu1 %vm1851_vm0, %v5615_v6 }
0x2342   :  { %7181 = vmatmul.mubr.msk.f32.vlgmr.msra.gmra.mrb[22].mxu1 %vm1851_vm0, %v5617_v59 }
0x2343   :  { %7954 = vmatpush3.bf16.xpose.msk.msra.mxu1 %vm8753_vm1, %v8882_v38  ;;  %7199 = vmatprep.mubr.msk.f32.mxu1 %vm1851_vm0, %v671_v14 }
0x234a   :  { %7200 = vmatmul.mubr.msk.f32.vlgmr.msra.gmra.mrb[24].mxu1 %vm1851_vm0, %v677_v10 }
0x240d   :  { %v7170_v18 = vpop.f32.mrb[20].mxu1 }
0x240e   :  { %v5522_v56 = vpop.f32.mrb[21].mxu1 }
0x240f   :  { %7173 = vmatprep.mubr.msk.f32.mxu0 %vm2041_vm3, %v5522_v56 }
0x2410   :  { %7174 = vmatmul.mubr.msk.f32.vlgmr.msra.gmra.mrb[18].mxu0 %vm2041_vm3, %v7170_v18 }
0x2415   :  { %v7182_v57 = vpop.f32.mrb[22].mxu1 }
0x2416   :  { %v5706_v42 = vmul.f32 0.125, %v7182_v57  ;;  %v5696_v63 = vpop.f32.mrb[23].mxu1 }
0x2417   :  { %v5705_v2 = vmul.f32 0.125, %v5696_v63 }
0x2418   :  { %v5709_v48 = vmul.f32 1.442695, %v5706_v42 }
0x2419   :  { %v5707_v7 = vmul.f32 1.442695, %v5705_v2 }
0x241a   :  { %8235 = vpow2.f32 %v5709_v48 }
0x241b   :  { %8237 = vpow2.f32 %v5707_v7 }
0x241d   :  { %v7201_v38 = vpop.f32.mrb[24].mxu1 }
0x241e   :  { %v5985_v44 = vpop.f32.mrb[25].mxu1  ;;  %v5995_v53 = vmul.f32 0.125, %v7201_v38 }
0x241f   :  { %v5994_v52 = vmul.f32 0.125, %v5985_v44 }
0x2420   :  { %v5998_v62 = vmul.f32 1.442695, %v5995_v53 }
0x2421   :  { %v5996_v16 = vmul.f32 1.442695, %v5994_v52 }
0x2424   :  { %v8236_v45 = vpop.eup %8235 }
0x2425   :  { %v8238_v4 = vpop.eup %8237  ;;  %5715 = vrot.lane.b32.xlu0 %v8236_v45, %s8392_s18  ;;  %v8279_v45 = vld [vmem:[%s9368_s11 + $0x70] sm:$0xff] }
0x2426   :  { %5713 = vrot.lane.b32.xlu1 %v8238_v4, %s8392_s18 }
0x242a   :  { %8138 = vrot.lane.b32.xlu1 %v8717_v55, %s8397_s6 }
0x2497   :  { %v5716_v21 = vpop.permute.xlu0 %5715 }
0x2498   :  { %v5720_v41 = vmul.f32 %v5716_v21, %v9135_v27  ;;  %v5714_v35 = vpop.permute.xlu1 %5713 }
0x2499   :  { %v5719_v32 = vmul.f32 %v5714_v35, %v9138_v33 }
0x249a   :  { %v5722_v50 = vsel %vm3402_vm8, %v5720_v41, 0.0 }
0x249b   :  { %v5721_v23 = vsel %vm3402_vm8, %v5719_v32, 0.0 }
0x249c   :  { %v5723_v13 = vadd.f32 %v5722_v50, %v5721_v23  ;;  %v8139_v5 = vpop.permute.xlu1 %8138 }
0x249d   :  { %v8141_v39 = vunpack.i.h.bf16 %v8139_v5  ;;  %v8140_v0 = vunpack.i.l.bf16 %v8139_v5 }
0x249e   :  { %v5724_v17 = vrot.slane %v5723_v13, 4 }
0x249f   :  { %v7945_v29 = vpack.c.bf16 %v8141_v39, %v8140_v0 }
0x24a0   :  { %v5725_v11 = vadd.f32 %v5724_v17, %v5723_v13 }
0x24a1   :  { %7946 = vmatprep.subr.bf16.mxu0 %v7945_v29 }
0x24a2   :  { %v5726_v8 = vrot.slane %v5725_v11, 2  ;;  %7948 = vmatpush3.bf16.msra.mxu0 %v7945_v29 }
0x24a3   :  { %7190 = vmatprep.subr.mxu0 %v8278_v58 }
0x24a4   :  { %v5727_v61 = vadd.f32 %v5726_v8, %v5725_v11 }
0x24a6   :  { %v5728_v28 = vrot.slane %v5727_v61, 1 }
0x24a8   :  { %v5729_v51 = vadd.f32 %v5728_v28, %v5727_v61 }
0x24aa   :  { %8239 = vrcp.f32 %v5729_v51 }
0x24ab   :  { %8241 = vpow2.f32 %v5996_v16 }
0x24ac   :  { %8243 = vpow2.f32 %v5998_v62 }
0x24b4   :  { %v8240_v20 = vpop.eup %8239 }
0x24b5   :  { %v5731_v26 = vmul.f32 %v8240_v20, %v5719_v32  ;;  %v5732_v24 = vmul.f32 %v8240_v20, %v5720_v41  ;;  %v8242_v31 = vpop.eup %8241 }
0x24b6   :  { %v8244_v15 = vpop.eup %8243 }
0x24b7   :  { %5737 = vrot.lane.b32.xlu1 %v5732_v24, %s8390_s16  ;;  %5735 = vrot.lane.b32.xlu0 %v5731_v26, %s8390_s16 }
0x24bb   :  { %6196 = vrot.lane.b32.xlu1 %v671_v14, %s8377_s20  ;;  %8143 = vrot.lane.b32.xlu0 %v9380_v37, %s8377_s20 }
0x24bf   :  { %6002 = vrot.lane.b32.xlu1 %v8242_v31, %s8389_s24  ;;  %6198 = vrot.lane.b32.xlu0 %v677_v10, %s8377_s20 }
0x24c3   :  { %8148 = vrot.lane.b32.xlu1 %v8717_v55, %s8384_s19  ;;  %6004 = vrot.lane.b32.xlu0 %v8244_v15, %s8389_s24  ;;  %v8280_v15 = vld [vmem:[%s9368_s11 + $0x78] sm:$0xff] }
0x2529   :  { %v5736_v46 = vpop.permute.xlu0 %5735  ;;  %v5738_v43 = vpop.permute.xlu1 %5737 }
0x252a   :  { %7187 = vmatprep.mubr.msk.f32.mxu0 %vm1947_vm2, %v5736_v46 }
0x252b   :  { %7188 = vmatmul.mubr.msk.f32.vlgmr.msra.gmra.mrb[70].mxu0 %vm1947_vm2, %v5738_v43 }
0x252c   :  { %7191 = vmatpush3.msra.mxu0 %v8278_v58 }
0x252d   :  { %v8144_v34 = vpop.permute.xlu0 %8143  ;;  %v6197_v1 = vpop.permute.xlu1 %6196 }
0x252e   :  { %v8146_v12 = vunpack.i.h.bf16 %v8144_v34  ;;  %v8145_v19 = vunpack.i.l.bf16 %v8144_v34  ;;  %7218 = vmatprep.mubr.msk.f32.mxu1 %vm1851_vm0, %v6197_v1 }
0x2530   :  { %v7959_v22 = vpack.c.bf16 %v8146_v12, %v8145_v19  ;;  %v6516_v12 = vld [vmem:[#allocation2] ss:$0 sm:$0xff] }
0x2531   :  { %v6199_v30 = vpop.permute.xlu0 %6198  ;;  %v6003_v47 = vpop.permute.xlu1 %6002 }
0x2532   :  { %7961 = vmatprep.subr.msk.bf16.mxu1 %vm8753_vm1, %v7959_v22  ;;  %v6008_v40 = vmul.f32 %v6003_v47, %v9138_v33 }
0x2533   :  { %7964 = vmatpush3.bf16.xpose.msk.msra.mxu1 %vm8753_vm1, %v7959_v22 }
0x2534   :  { %v6010_v54 = vsel %vm3692_vm9, %v6008_v40, 0.0 }
0x2535   :  { %v6005_v36 = vpop.permute.xlu0 %6004  ;;  %v8149_v25 = vpop.permute.xlu1 %8148 }
0x2536   :  { %v6009_v60 = vmul.f32 %v6005_v36, %v9135_v27  ;;  %v8151_v6 = vunpack.i.h.bf16 %v8149_v25  ;;  %v8150_v9 = vunpack.i.l.bf16 %v8149_v25 }
0x2538   :  { %v6011_v49 = vsel %vm3692_vm9, %v6009_v60, 0.0  ;;  %v7955_v14 = vpack.c.bf16 %v8151_v6, %v8150_v9 }
0x2539   :  { %v6012_v59 = vadd.f32 %v6011_v49, %v6010_v54  ;;  %v6490_v54 = vld [vmem:[%s9359_s2 + $0x8] sm:$0xff]  ;;  %v6489_v49 = vld [vmem:[%s9359_s2] sm:$0xff] }
0x253a   :  { %7956 = vmatprep.subr.bf16.mxu0 %v7955_v14  ;;  %7219 = vmatmul.mubr.msk.f32.vlgmr.msra.gmra.mrb[26].mxu1 %vm1851_vm0, %v6199_v30 }
0x253b   :  { %v6013_v10 = vrot.slane %v6012_v59, 4 }
0x253d   :  { %v6014_v3 = vadd.f32 %v6013_v10, %v6012_v59 }
0x253f   :  { %v6015_v18 = vrot.slane %v6014_v3, 2 }
0x2541   :  { %v6016_v56 = vadd.f32 %v6015_v18, %v6014_v3 }
0x2543   :  { %v6017_v57 = vrot.slane %v6016_v56, 1 }
0x2545   :  { %v6018_v42 = vadd.f32 %v6017_v57, %v6016_v56 }
0x2547   :  { %8245 = vrcp.f32 %v6018_v42 }
0x2551   :  { %v8246_v63 = vpop.eup %8245 }
0x2552   :  { %v6021_v2 = vmul.f32 %v8246_v63, %v6009_v60  ;;  %v6020_v48 = vmul.f32 %v8246_v63, %v6008_v40 }
0x2554   :  { %6026 = vrot.lane.b32.xlu1 %v6021_v2, %s8388_s8  ;;  %6024 = vrot.lane.b32.xlu0 %v6020_v48, %s8388_s8 }
0x25c6   :  { %v6025_v44 = vpop.permute.xlu0 %6024  ;;  %v6027_v4 = vpop.permute.xlu1 %6026 }
0x25fe   :  { %v7189_v7 = vpop.f32.mrb[70].mxu0 }
0x25ff   :  { %v5815_v38 = vpop.f32.mrb[71].mxu0 }
0x2600   :  { %7192 = vmatprep.mubr.msk.f32.mxu0 %vm2041_vm3, %v5815_v38 }
0x2601   :  { %7193 = vmatmul.mubr.msk.f32.vlgmr.msra.gmra.mrb[18].mxu0 %vm2041_vm3, %v7189_v7 }
0x2602   :  { %7958 = vmatpush3.bf16.msra.mxu0 %v7955_v14  ;;  %7206 = vmatprep.mubr.msk.f32.mxu0 %vm1947_vm2, %v6025_v44 }
0x2603   :  { %7209 = vmatprep.subr.mxu0 %v8279_v45 }
0x2605   :  { %7207 = vmatmul.mubr.msk.f32.vlgmr.msra.gmra.mrb[72].mxu0 %vm1947_vm2, %v6027_v4 }
0x2606   :  { %7210 = vmatpush3.msra.mxu0 %v8279_v45 }
0x260d   :  { %v7220_v21 = vpop.f32.mrb[26].mxu1 }
0x260e   :  { %v6288_v41 = vmul.f32 0.125, %v7220_v21  ;;  %v6278_v35 = vpop.f32.mrb[27].mxu1 }
0x260f   :  { %v6287_v32 = vmul.f32 0.125, %v6278_v35 }
0x2610   :  { %v6291_v50 = vmul.f32 1.442695, %v6288_v41 }
0x2611   :  { %v6289_v23 = vmul.f32 1.442695, %v6287_v32 }
0x2612   :  { %8247 = vpow2.f32 %v6291_v50 }
0x2613   :  { %8249 = vpow2.f32 %v6289_v23 }
0x261c   :  { %v8248_v13 = vpop.eup %8247 }
0x261d   :  { %v8250_v5 = vpop.eup %8249  ;;  %6297 = vrot.lane.b32.xlu1 %v8248_v13, %s8387_s30 }
0x261e   :  { %6295 = vrot.lane.b32.xlu0 %v8250_v5, %s8387_s30 }
0x2622   :  { %8153 = vrot.lane.b32.xlu0 %v8717_v55, %s8380_s28 }
0x268f   :  { %v6298_v39 = vpop.permute.xlu1 %6297 }
0x2690   :  { %v6302_v0 = vmul.f32 %v6298_v39, %v9135_v27  ;;  %v6296_v17 = vpop.permute.xlu0 %6295 }
0x2691   :  { %v6301_v29 = vmul.f32 %v6296_v17, %v9138_v33 }
0x2692   :  { %v6304_v11 = vsel %vm3986_vm10, %v6302_v0, 0.0 }
0x2693   :  { %v6303_v8 = vsel %vm3986_vm10, %v6301_v29, 0.0 }
0x2694   :  { %v6305_v58 = vadd.f32 %v6304_v11, %v6303_v8  ;;  %v8154_v61 = vpop.permute.xlu0 %8153 }
0x2695   :  { %v8156_v28 = vunpack.i.h.bf16 %v8154_v61  ;;  %v8155_v51 = vunpack.i.l.bf16 %v8154_v61 }
0x2696   :  { %v6306_v52 = vrot.slane %v6305_v58, 4 }
0x2697   :  { %v7965_v53 = vpack.c.bf16 %v8156_v28, %v8155_v51 }
0x2698   :  { %v6307_v16 = vadd.f32 %v6306_v52, %v6305_v58 }
0x2699   :  { %7966 = vmatprep.subr.bf16.mxu0 %v7965_v53 }
0x269a   :  { %v6308_v20 = vrot.slane %v6307_v16, 2 }
0x269c   :  { %v6309_v55 = vadd.f32 %v6308_v20, %v6307_v16 }
0x269e   :  { %v6310_v62 = vrot.slane %v6309_v55, 1 }
0x26a0   :  { %v6311_v26 = vadd.f32 %v6310_v62, %v6309_v55 }
0x26a2   :  { %8251 = vrcp.f32 %v6311_v26 }
0x26ac   :  { %v8252_v27 = vpop.eup %8251 }
0x26ad   :  { %v6314_v24 = vmul.f32 %v8252_v27, %v6302_v0  ;;  %v6313_v33 = vmul.f32 %v8252_v27, %v6301_v29 }
0x26af   :  { %6319 = vrot.lane.b32.xlu0 %v6314_v24, %s8384_s19  ;;  %6317 = vrot.lane.b32.xlu1 %v6313_v33, %s8384_s19 }
0x26d8   :  { %v7208_v37 = vpop.f32.mrb[72].mxu0 }
0x26d9   :  { %v6104_v31 = vpop.f32.mrb[73].mxu0 }
0x26da   :  { %7211 = vmatprep.mubr.msk.f32.mxu0 %vm2041_vm3, %v6104_v31 }
0x26db   :  { %7212 = vmatmul.mubr.msk.f32.vlgmr.msra.gmra.mrb[18].mxu0 %vm2041_vm3, %v7208_v37 }
0x26dc   :  { %7968 = vmatpush3.bf16.msra.mxu0 %v7965_v53 }
0x26dd   :  { %7228 = vmatprep.subr.mxu0 %v8280_v15 }
0x2721   :  { %v6320_v46 = vpop.permute.xlu0 %6319  ;;  %v6318_v43 = vpop.permute.xlu1 %6317 }
0x2722   :  { %7225 = vmatprep.mubr.msk.f32.mxu0 %vm1947_vm2, %v6318_v43 }
0x2723   :  { %7226 = vmatmul.mubr.msk.f32.vlgmr.msra.gmra.mrb[74].mxu0 %vm1947_vm2, %v6320_v46 }
0x2724   :  { %7229 = vmatpush3.msra.mxu0 %v8280_v15 }
0x27f6   :  { %v7227_v34 = vpop.f32.mrb[74].mxu0 }
0x27f7   :  { %v6397_v1 = vpop.f32.mrb[75].mxu0 }
0x27f8   :  { %7230 = vmatprep.mubr.msk.f32.mxu0 %vm2041_vm3, %v6397_v1 }
0x27f9   :  { %7231 = vmatmul.mubr.msk.f32.vlgmr.msra.gmra.mrb[18].mxu0 %vm2041_vm3, %v7227_v34 }
0x28cc   :  { %v7232_v19 = vpop.f32.mrb[18].mxu0 }
0x28cd   :  { %v7973_v22 = vadd.f32 %v7232_v19, %v6516_v12  ;;  %v6478_v30 = vpop.f32.mrb[19].mxu0 }
0x28ce   :  { %v7974_v47 = vadd.f32 %v6516_v12, %v6478_v30 }
0x28cf   :  { %v6646_v40 = vmul.f32 -1.442695, %v7973_v22 }
0x28d0   :  { %v6645_v36 = vmul.f32 -1.442695, %v7974_v47 }
0x28d1   :  { %8253 = vpow2.f32 %v6646_v40 }
0x28d2   :  { %8255 = vpow2.f32 %v6645_v36 }
0x28db   :  { %v8254_v25 = vpop.eup %8253 }
0x28dc   :  { %v8256_v60 = vpop.eup %8255  ;;  %v6498_v6 = vadd.f32 1.0, %v8254_v25 }
0x28dd   :  { %v6497_v9 = vadd.f32 1.0, %v8256_v60 }
0x28de   :  { %8257 = vrcp.f32 %v6498_v6 }
0x28df   :  { %8259 = vrcp.f32 %v6497_v9 }
0x28e8   :  { %v8258_v14 = vpop.eup %8257 }
0x28e9   :  { %v8260_v59 = vpop.eup %8259  ;;  %v6504_v10 = vmul.f32 %v8258_v14, %v6490_v54 }
0x28ea   :  { %v6503_v3 = vmul.f32 %v8260_v59, %v6489_v49 }
0x28eb   :  { %6507 = vst.msk [vmem:[%s9370_s13 + $0x8] sm:$0xff] %vm6505_vm11, %v6504_v10 }
0x28ec   :  { %6506 = vst.msk [vmem:[%s9370_s13] sm:$0xff] %vm6505_vm11, %v6503_v3 }
0x28ed   :  { %6512 = vsyncpa [#allocation4], 1 }
0x28ee   :  { %6513 = vsyncpa [#allocation6], 1 }
0x28ef   :  { %6514 = vsyncpa [#allocation9], 1 }

</bundles_post_ra>
